<compile_context>
chip_gen: v6e
topology: v6e:2x2x1
jax: 0.10.0
libtpu: 0.0.40
codegen_flags: <defaults>
</compile_context>

<pallas_src>
import functools
import math

import jax
import jax.numpy as jnp
from jax import lax
from jax.experimental import pallas as pl
from jax.experimental.pallas import tpu as pltpu


# ------------------------------ shared helper --------------------------------

def _ln(x, g, b, eps=1e-5):
    """LayerNorm over the last axis; statistics in f32."""
    x = x.astype(jnp.float32)
    m = jnp.mean(x, axis=-1, keepdims=True)
    v = jnp.mean(jnp.square(x - m), axis=-1, keepdims=True)
    return (x - m) * lax.rsqrt(v + eps) * g + b


# ------------------------------ Pallas kernel ---------------------------------

def _vit_kernel(patches_ref, convw_ref, pos_ref, lnpre_g_ref, lnpre_b_ref,
                ln1g_ref, ln1b_ref, wqkv_ref, bqkv_ref, wo_ref, bo_ref,
                ln2g_ref, ln2b_ref, wfc_ref, bfc_ref, wpr_ref, bpr_ref,
                lnpost_g_ref, lnpost_b_ref, proj_ref,
                o_ref, x_sc, *, heads, t_real):
    """Whole ViT forward: stem (layer 0), one fused block per grid step,
    tail (last layer).  The residual stream is resident in VMEM scratch."""
    layer = pl.program_id(0)
    tp, d = x_sc.shape
    dh = d // heads

    # ---- stem (layer 0 only): patch-embed + pos emb (CLS folded) + ln_pre ----
    @pl.when(layer == 0)
    def _():
        e = jnp.dot(patches_ref[...], convw_ref[...],
                    preferred_element_type=jnp.float32)             # (Tp, D) f32
        x_sc[...] = _ln(e + pos_ref[...], lnpre_g_ref[...], lnpre_b_ref[...])

    x = x_sc[...]                                                   # (Tp, D) f32

    # key-padding additive bias: 0 on real keys, -1e30 on padded keys (one row).
    kbias = jnp.where(
        lax.broadcasted_iota(jnp.int32, (1, tp), 1) < t_real, 0.0, -1e30)

    # ---- attention sub-block (pre-LN) ----
    y = _ln(x, ln1g_ref[0], ln1b_ref[0]).astype(jnp.bfloat16)
    # one full-width fused QKV matmul (Q weights/bias pre-scaled by 1/sqrt(dh))
    qkv = jnp.dot(y, wqkv_ref[0], preferred_element_type=jnp.float32) + bqkv_ref[0]
    q = qkv[:, :d].astype(jnp.bfloat16)
    k = qkv[:, d:2 * d].astype(jnp.bfloat16)
    v = qkv[:, 2 * d:].astype(jnp.bfloat16)

    # TODO(synk): switch to lax.fori_loop over heads at real CLIP head counts.
    heads_out = []
    for h in range(heads):                                          # tiny -> unrolled
        sl = slice(h * dh, (h + 1) * dh)
        s = lax.dot_general(q[:, sl], k[:, sl], (((1,), (1,)), ((), ())),
                            preferred_element_type=jnp.float32)     # (Tp, Tp)
        s = s + kbias
        s = s - jnp.max(s, axis=-1, keepdims=True)
        p = jnp.exp(s)
        # approx reciprocal is within the 5e-2 accuracy budget of this test.
        p = p * pl.reciprocal(jnp.sum(p, axis=-1, keepdims=True), approx=True)
        heads_out.append(jnp.dot(p.astype(jnp.bfloat16), v[:, sl],
                                 preferred_element_type=jnp.float32))
    attn = jnp.concatenate(heads_out, axis=-1).astype(jnp.bfloat16)  # (Tp, D)
    # single full-width output projection + fused residual add
    x = x + jnp.dot(attn, wo_ref[0], preferred_element_type=jnp.float32) + bo_ref[0]

    # ---- MLP sub-block (pre-LN, QuickGELU) ----
    y = _ln(x, ln2g_ref[0], ln2b_ref[0]).astype(jnp.bfloat16)
    hmid = jnp.dot(y, wfc_ref[0], preferred_element_type=jnp.float32) + bfc_ref[0]
    # QuickGELU h*sigmoid(1.702h) via tanh (exact, no exp overflow, EUP op)
    hmid = hmid * (0.5 * (jnp.tanh(0.851 * hmid) + 1.0))
    x = x + jnp.dot(hmid.astype(jnp.bfloat16), wpr_ref[0],
                    preferred_element_type=jnp.float32) + bpr_ref[0]
    x_sc[...] = x

    # ---- tail (last layer only): ln_post + projection to embedding dim ----
    @pl.when(layer == pl.num_programs(0) - 1)
    def _():
        yt = _ln(x, lnpost_g_ref[...], lnpost_b_ref[...]).astype(jnp.bfloat16)
        o_ref[...] = jnp.dot(yt, proj_ref[...],
                             preferred_element_type=jnp.float32).astype(o_ref.dtype)


# ------------------------------ forward wrapper -------------------------------

def _forward_impl(img, prep, *, patch, heads, t_pad, t_real):
    c, hh, ww = img.shape
    gh, gw = hh // patch, ww // patch
    assert gh * gw + 1 == t_real, "image size inconsistent with positional embedding"

    d = prep["conv_w"].shape[1]
    mlp = prep["wfc"].shape[2]
    e_dim = prep["proj"].shape[1]
    layers = prep["wqkv"].shape[0]
    d3 = 3 * d

    # patch extraction (stride = kernel = patch, no bias) as a matmul operand;
    # row 0 is the CLS slot (zero patch; the CLS embedding is folded into
    # pos_emb[0]); rows >= t_real are key-masked padding.
    patches = (img.reshape(c, gh, patch, gw, patch)
                  .transpose(1, 3, 0, 2, 4)
                  .reshape(gh * gw, c * patch * patch))
    patches = jnp.pad(patches, ((1, t_pad - t_real), (0, 0))).astype(jnp.bfloat16)
    cpp = patches.shape[1]

    emb = pl.pallas_call(
        functools.partial(_vit_kernel, heads=heads, t_real=t_real),
        grid=(layers,),
        out_shape=jax.ShapeDtypeStruct((t_pad, e_dim), jnp.float32),
        in_specs=[
            pl.BlockSpec((t_pad, cpp), lambda l: (0, 0)),      # patches (stem)
            pl.BlockSpec((cpp, d), lambda l: (0, 0)),          # conv_w  (stem)
            pl.BlockSpec((t_pad, d), lambda l: (0, 0)),        # pos (+CLS)
            pl.BlockSpec((1, d), lambda l: (0, 0)),            # ln_pre_g
            pl.BlockSpec((1, d), lambda l: (0, 0)),            # ln_pre_b
            pl.BlockSpec((1, 1, d), lambda l: (l, 0, 0)),      # ln1_g
            pl.BlockSpec((1, 1, d), lambda l: (l, 0, 0)),      # ln1_b
            pl.BlockSpec((1, d, d3), lambda l: (l, 0, 0)),     # w_qkv fused
            pl.BlockSpec((1, 1, d3), lambda l: (l, 0, 0)),     # b_qkv fused
            pl.BlockSpec((1, d, d), lambda l: (l, 0, 0)),      # w_out
            pl.BlockSpec((1, 1, d), lambda l: (l, 0, 0)),      # b_out
            pl.BlockSpec((1, 1, d), lambda l: (l, 0, 0)),      # ln2_g
            pl.BlockSpec((1, 1, d), lambda l: (l, 0, 0)),      # ln2_b
            pl.BlockSpec((1, d, mlp), lambda l: (l, 0, 0)),    # w_fc
            pl.BlockSpec((1, 1, mlp), lambda l: (l, 0, 0)),    # b_fc
            pl.BlockSpec((1, mlp, d), lambda l: (l, 0, 0)),    # w_proj
            pl.BlockSpec((1, 1, d), lambda l: (l, 0, 0)),      # b_proj
            pl.BlockSpec((1, d), lambda l: (0, 0)),            # ln_post_g
            pl.BlockSpec((1, d), lambda l: (0, 0)),            # ln_post_b
            pl.BlockSpec((d, e_dim), lambda l: (0, 0)),        # proj (tail)
        ],
        out_specs=pl.BlockSpec((t_pad, e_dim), lambda l: (0, 0)),   # resident
        scratch_shapes=[pltpu.VMEM((t_pad, d), jnp.float32)],       # residual
        compiler_params=pltpu.CompilerParams(
            dimension_semantics=("arbitrary",),
            # explicit scoped-VMEM budget; re-derive (and tile MLP weights) at
            # real CLIP widths, especially on v7x (64 MiB physical).
            vmem_limit_bytes=48 * 1024 * 1024),
    )(patches, prep["conv_w"], prep["pos"], prep["ln_pre_g"], prep["ln_pre_b"],
      prep["ln1_g"], prep["ln1_b"], prep["wqkv"], prep["bqkv"],
      prep["wo"], prep["bo"], prep["ln2_g"], prep["ln2_b"],
      prep["wfc"], prep["bfc"], prep["wpr"], prep["bpr"],
      prep["ln_post_g"], prep["ln_post_b"], prep["proj"])

    # einops: 'b (h w) c -> b h w c' (CLS row and padded rows dropped)
    return emb[1:t_real].reshape(1, gh, gw, e_dim)


# ------------------------------ parameters -----------------------------------

def init_params(key, *, channels, patch, width, layers, mlp_dim, embed_dim, grid_hw):
    num_patches = grid_hw * grid_hw
    keys = jax.random.split(key, 4 + layers)

    def nrm(k, shape, scale=0.02):
        return (scale * jax.random.normal(k, shape)).astype(jnp.float32)

    params = {
        # conv1 (patch embedding, bias=False), stored as (C*P*P, width) matmul weight
        "conv_w": nrm(keys[0], (channels * patch * patch, width)),
        "class_emb": nrm(keys[1], (width,)),
        "pos_emb": nrm(keys[2], (num_patches + 1, width)),
        "ln_pre_g": jnp.ones((width,), jnp.float32),
        "ln_pre_b": jnp.zeros((width,), jnp.float32),
        "ln_post_g": jnp.ones((width,), jnp.float32),
        "ln_post_b": jnp.zeros((width,), jnp.float32),
        "proj": nrm(keys[3], (width, embed_dim)),
        "blocks": [],
    }
    for l in range(layers):
        bk = jax.random.split(keys[4 + l], 8)
        params["blocks"].append({
            "ln1_g": jnp.ones((width,), jnp.float32),
            "ln1_b": jnp.zeros((width,), jnp.float32),
            "ln2_g": jnp.ones((width,), jnp.float32),
            "ln2_b": jnp.zeros((width,), jnp.float32),
            "w_qkv": nrm(bk[0], (width, 3 * width)),
            "b_qkv": nrm(bk[1], (3 * width,)),
            "w_out": nrm(bk[2], (width, width)),
            "b_out": nrm(bk[3], (width,)),
            "w_fc": nrm(bk[4], (width, mlp_dim)),
            "b_fc": nrm(bk[5], (mlp_dim,)),
            "w_proj": nrm(bk[6], (mlp_dim, width)),
            "b_proj": nrm(bk[7], (width,)),
        })
    return params


def prepare_params(params, heads, t_pad):
    """Repack weights for the fused kernel: bf16 MXU operands, fused full-width
    QKV / out-proj weights, CLS folded into pos_emb[0], 1/sqrt(dh) folded into
    the Q projection, every per-layer tensor stacked on a leading layer axis so
    the stack kernel can stream one layer's weights per grid step."""
    p = params
    d = p["conv_w"].shape[1]
    dh = d // heads
    layers = len(p["blocks"])
    bf = jnp.bfloat16
    t_real = p["pos_emb"].shape[0]
    scale = 1.0 / math.sqrt(dh)

    def st(name):
        return jnp.stack([blk[name] for blk in p["blocks"]])

    # fold the CLS embedding into pos_emb row 0 (its patch row is zero).
    pos = p["pos_emb"].at[0].add(p["class_emb"])
    pos = jnp.pad(pos, ((0, t_pad - t_real), (0, 0)))

    # fold 1/sqrt(dh) into the Q third of the fused QKV projection.
    qkv_scale = jnp.concatenate(
        [jnp.full((d,), scale, jnp.float32), jnp.ones((2 * d,), jnp.float32)])
    wqkv = st("w_qkv") * qkv_scale                      # (L, D, 3D)
    bqkv = st("b_qkv") * qkv_scale                      # (L, 3D)

    return {
        "conv_w": p["conv_w"].astype(bf),
        "pos": pos,
        "ln_pre_g": p["ln_pre_g"].reshape(1, d),
        "ln_pre_b": p["ln_pre_b"].reshape(1, d),
        "ln_post_g": p["ln_post_g"].reshape(1, d),
        "ln_post_b": p["ln_post_b"].reshape(1, d),
        "proj": p["proj"].astype(bf),
        "ln1_g": st("ln1_g").reshape(layers, 1, d),
        "ln1_b": st("ln1_b").reshape(layers, 1, d),
        "ln2_g": st("ln2_g").reshape(layers, 1, d),
        "ln2_b": st("ln2_b").reshape(layers, 1, d),
        "wqkv": wqkv.astype(bf),                        # (L, D, 3D), Q pre-scaled
        "bqkv": bqkv.reshape(layers, 1, 3 * d),         # f32
        "wo": st("w_out").astype(bf),                   # (L, D, D)
        "bo": st("b_out").reshape(layers, 1, d),
        "wfc": st("w_fc").astype(bf),                   # (L, D, MLP)
        "bfc": st("b_fc").reshape(layers, 1, -1),
        "wpr": st("w_proj").astype(bf),                 # (L, MLP, D)
        "bpr": st("b_proj").reshape(layers, 1, d),
    }


class DenseFeatures:
    """JAX/Pallas port of the DenseFeatures wrapper (synthetic ViT CLIP)."""

    def __init__(self, model_name, params, patch_size, heads):
        self.model_name = model_name
        self.params = params
        self.patch_size = patch_size
        self.heads = heads
        self.t_real = params["pos_emb"].shape[0]
        # pad tokens only to the bf16 sublane-packing granularity (16 rows)
        self.t_pad = ((self.t_real + 15) // 16) * 16
        self.prep = prepare_params(params, heads, self.t_pad)
        self._fwd = jax.jit(functools.partial(
            _forward_impl, patch=patch_size, heads=heads,
            t_pad=self.t_pad, t_real=self.t_real))

    def get_output_dims(self, h_in, w_in):
        if self.model_name.startswith("ViT"):
            return h_in // self.patch_size, w_in // self.patch_size
        # TODO(synk): RN attnpool (spacial_dim) path not implemented for the synthetic model.
        raise ValueError(f"unknown clip model: {self.model_name}")

    def forward(self, img):
        # img: (C, H, W) -> (1, h_out, w_out, embed_dim)
        return self._fwd(img, self.prep)


# --------------------------- pure-jnp f32 reference ---------------------------

def reference_forward(img, params, patch, heads):
    p = params
    c, hh, ww = img.shape
    gh, gw = hh // patch, ww // patch
    d = p["conv_w"].shape[1]
    dh = d // heads
    patches = (img.reshape(c, gh, patch, gw, patch)
                  .transpose(1, 3, 0, 2, 4)
                  .reshape(gh * gw, c * patch * patch))
    x = patches @ p["conv_w"]
    x = jnp.concatenate([p["class_emb"][None, :], x], axis=0) + p["pos_emb"]
    x = _ln(x, p["ln_pre_g"], p["ln_pre_b"])
    t = x.shape[0]
    for blk in p["blocks"]:
        y = _ln(x, blk["ln1_g"], blk["ln1_b"])
        qkv = y @ blk["w_qkv"] + blk["b_qkv"]
        q, k, v = jnp.split(qkv, 3, axis=-1)
        q = q.reshape(t, heads, dh).transpose(1, 0, 2)
        k = k.reshape(t, heads, dh).transpose(1, 0, 2)
        v = v.reshape(t, heads, dh).transpose(1, 0, 2)
        s = jnp.einsum("hqd,hkd->hqk", q, k) / math.sqrt(dh)
        a = jnp.einsum("hqk,hkd->hqd", jax.nn.softmax(s, axis=-1), v)
        a = a.transpose(1, 0, 2).reshape(t, d)
        x = x + a @ blk["w_out"] + blk["b_out"]
        y = _ln(x, blk["ln2_g"], blk["ln2_b"])
        h = y @ blk["w_fc"] + blk["b_fc"]
        h = h * jax.nn.sigmoid(1.702 * h)                 # QuickGELU
        x = x + h @ blk["w_proj"] + blk["b_proj"]
    x = _ln(x[1:], p["ln_post_g"], p["ln_post_b"])
    emb = x @ p["proj"]
    return emb.reshape(1, gh, gw, -1)


if __name__ == "__main__":
    C, H, W = 3, 32, 32
    PATCH, WIDTH, HEADS, LAYERS, MLP, EMBED = 8, 128, 4, 2, 512, 128

    key = jax.random.PRNGKey(0)
    pkey, ikey = jax.random.split(key)
    params = init_params(pkey, channels=C, patch=PATCH, width=WIDTH,
                         layers=LAYERS, mlp_dim=MLP, embed_dim=EMBED,
                         grid_hw=H // PATCH)
    img = jax.random.normal(ikey, (C, H, W), dtype=jnp.float32)

    model = DenseFeatures("ViT-synthetic/8", params, PATCH, HEADS)
    out = jax.block_until_ready(model.forward(img))

    assert out.shape == (1, H // PATCH, W // PATCH, EMBED), out.shape
    assert bool(jnp.all(jnp.isfinite(out)))

    ref = reference_forward(img, params, PATCH, HEADS)
    err = float(jnp.max(jnp.abs(out - ref)))
    assert err < 5e-2, f"kernel vs f32 reference max-abs-diff too large: {err}"
    print("KERNEL_OK")
</pallas_src>

<mosaic_0001>
module attributes {stable_mosaic.version = 11 : i64} {
  func.func @_vit_kernel(%arg0: i32, %arg1: memref<32x192xbf16, #tpu.memory_space<vmem>>, %arg2: memref<192x128xbf16, #tpu.memory_space<vmem>>, %arg3: memref<32x128xf32, #tpu.memory_space<vmem>>, %arg4: memref<1x128xf32, #tpu.memory_space<vmem>>, %arg5: memref<1x128xf32, #tpu.memory_space<vmem>>, %arg6: memref<1x1x128xf32, #tpu.memory_space<vmem>>, %arg7: memref<1x1x128xf32, #tpu.memory_space<vmem>>, %arg8: memref<1x128x384xbf16, #tpu.memory_space<vmem>>, %arg9: memref<1x1x384xf32, #tpu.memory_space<vmem>>, %arg10: memref<1x128x128xbf16, #tpu.memory_space<vmem>>, %arg11: memref<1x1x128xf32, #tpu.memory_space<vmem>>, %arg12: memref<1x1x128xf32, #tpu.memory_space<vmem>>, %arg13: memref<1x1x128xf32, #tpu.memory_space<vmem>>, %arg14: memref<1x128x512xbf16, #tpu.memory_space<vmem>>, %arg15: memref<1x1x512xf32, #tpu.memory_space<vmem>>, %arg16: memref<1x512x128xbf16, #tpu.memory_space<vmem>>, %arg17: memref<1x1x128xf32, #tpu.memory_space<vmem>>, %arg18: memref<1x128xf32, #tpu.memory_space<vmem>>, %arg19: memref<1x128xf32, #tpu.memory_space<vmem>>, %arg20: memref<128x128xbf16, #tpu.memory_space<vmem>>, %arg21: memref<32x128xf32, #tpu.memory_space<vmem>>, %arg22: memref<32x128xf32, #tpu.memory_space<vmem>>) attributes {dimension_semantics = [#tpu.dimension_semantics<arbitrary>], iteration_bounds = array<i64: 2>, scalar_prefetch = 0 : i64, scratch_operands = 1 : i64, tpu.core_type = #tpu.core_type<tc>, window_params = [{pipeline_mode = #tpu.pipeline_mode<synchronous>, transform_indices = @transform_0, window_bounds = array<i64: 32, 192>}, {pipeline_mode = #tpu.pipeline_mode<synchronous>, transform_indices = @transform_1, window_bounds = array<i64: 192, 128>}, {pipeline_mode = #tpu.pipeline_mode<synchronous>, transform_indices = @transform_2, window_bounds = array<i64: 32, 128>}, {pipeline_mode = #tpu.pipeline_mode<synchronous>, transform_indices = @transform_3, window_bounds = array<i64: 1, 128>}, {pipeline_mode = #tpu.pipeline_mode<synchronous>, transform_indices = @transform_4, window_bounds = array<i64: 1, 128>}, {transform_indices = @transform_5, window_bounds = array<i64: 1, 1, 128>}, {transform_indices = @transform_6, window_bounds = array<i64: 1, 1, 128>}, {transform_indices = @transform_7, window_bounds = array<i64: 1, 128, 384>}, {transform_indices = @transform_8, window_bounds = array<i64: 1, 1, 384>}, {transform_indices = @transform_9, window_bounds = array<i64: 1, 128, 128>}, {transform_indices = @transform_10, window_bounds = array<i64: 1, 1, 128>}, {transform_indices = @transform_11, window_bounds = array<i64: 1, 1, 128>}, {transform_indices = @transform_12, window_bounds = array<i64: 1, 1, 128>}, {transform_indices = @transform_13, window_bounds = array<i64: 1, 128, 512>}, {transform_indices = @transform_14, window_bounds = array<i64: 1, 1, 512>}, {transform_indices = @transform_15, window_bounds = array<i64: 1, 512, 128>}, {transform_indices = @transform_16, window_bounds = array<i64: 1, 1, 128>}, {pipeline_mode = #tpu.pipeline_mode<synchronous>, transform_indices = @transform_17, window_bounds = array<i64: 1, 128>}, {pipeline_mode = #tpu.pipeline_mode<synchronous>, transform_indices = @transform_18, window_bounds = array<i64: 1, 128>}, {pipeline_mode = #tpu.pipeline_mode<synchronous>, transform_indices = @transform_19, window_bounds = array<i64: 128, 128>}, {pipeline_mode = #tpu.pipeline_mode<synchronous>, transform_indices = @transform_20, window_bounds = array<i64: 32, 128>}]} {
    %c0_i32 = arith.constant 0 : i32
    %0 = arith.cmpi eq, %arg0, %c0_i32 : i32
    %1 = arith.extui %0 : i1 to i32
    %c0_i32_0 = arith.constant 0 : i32
    %2 = arith.cmpi ne, %1, %c0_i32_0 : i32
    scf.if %2 {
      %c0_75 = arith.constant 0 : index
      %c0_76 = arith.constant 0 : index
      %187 = vector.load %arg1[%c0_75, %c0_76] : memref<32x192xbf16, #tpu.memory_space<vmem>>, vector<32x192xbf16>
      %c0_77 = arith.constant 0 : index
      %c0_78 = arith.constant 0 : index
      %188 = vector.load %arg2[%c0_77, %c0_78] : memref<192x128xbf16, #tpu.memory_space<vmem>>, vector<192x128xbf16>
      %cst_79 = arith.constant dense<0.000000e+00> : vector<32x128xf32>
      %189 = tpu.matmul %187, %188, %cst_79 {dimension_numbers = #tpu.dot_dimension_numbers<[1], [0], [0], [1], [0, 0, 1, 1], [], []>} : vector<32x192xbf16>, vector<192x128xbf16>, vector<32x128xf32> -> vector<32x128xf32>
      %c0_80 = arith.constant 0 : index
      %c0_81 = arith.constant 0 : index
      %190 = vector.load %arg3[%c0_80, %c0_81] : memref<32x128xf32, #tpu.memory_space<vmem>>, vector<32x128xf32>
      %191 = arith.addf %189, %190 : vector<32x128xf32>
      %c0_82 = arith.constant 0 : index
      %c0_83 = arith.constant 0 : index
      %192 = vector.load %arg4[%c0_82, %c0_83] : memref<1x128xf32, #tpu.memory_space<vmem>>, vector<1x128xf32>
      %c0_84 = arith.constant 0 : index
      %c0_85 = arith.constant 0 : index
      %193 = vector.load %arg5[%c0_84, %c0_85] : memref<1x128xf32, #tpu.memory_space<vmem>>, vector<1x128xf32>
      %cst_86 = arith.constant dense<0.000000e+00> : vector<32xf32>
      %194 = vector.multi_reduction <add>, %191, %cst_86 [1] : vector<32x128xf32> to vector<32xf32>
      %195 = vector.shape_cast %194 : vector<32xf32> to vector<32x1xf32>
      %cst_87 = arith.constant 1.280000e+02 : f32
      %196 = vector.broadcast %cst_87 : f32 to vector<32x1xf32>
      %197 = arith.divf %195, %196 : vector<32x1xf32>
      %198 = vector.broadcast %197 : vector<32x1xf32> to vector<32x128xf32>
      %199 = arith.subf %191, %198 : vector<32x128xf32>
      %200 = arith.mulf %199, %199 : vector<32x128xf32>
      %cst_88 = arith.constant dense<0.000000e+00> : vector<32xf32>
      %201 = vector.multi_reduction <add>, %200, %cst_88 [1] : vector<32x128xf32> to vector<32xf32>
      %202 = vector.shape_cast %201 : vector<32xf32> to vector<32x1xf32>
      %cst_89 = arith.constant 1.280000e+02 : f32
      %203 = vector.broadcast %cst_89 : f32 to vector<32x1xf32>
      %204 = arith.divf %202, %203 : vector<32x1xf32>
      %205 = vector.broadcast %197 : vector<32x1xf32> to vector<32x128xf32>
      %206 = arith.subf %191, %205 : vector<32x128xf32>
      %cst_90 = arith.constant 9.99999974E-6 : f32
      %207 = vector.broadcast %cst_90 : f32 to vector<32x1xf32>
      %208 = arith.addf %204, %207 : vector<32x1xf32>
      %209 = math.rsqrt %208 : vector<32x1xf32>
      %210 = vector.broadcast %209 : vector<32x1xf32> to vector<32x128xf32>
      %211 = arith.mulf %206, %210 : vector<32x128xf32>
      %212 = vector.broadcast %192 : vector<1x128xf32> to vector<32x128xf32>
      %213 = arith.mulf %211, %212 : vector<32x128xf32>
      %214 = vector.broadcast %193 : vector<1x128xf32> to vector<32x128xf32>
      %215 = arith.addf %213, %214 : vector<32x128xf32>
      %c0_91 = arith.constant 0 : index
      %c0_92 = arith.constant 0 : index
      %216 = vector.load %arg22[%c0_91, %c0_92] : memref<32x128xf32, #tpu.memory_space<vmem>>, vector<32x128xf32>
      tpu.vector_store %arg22[%c0_91, %c0_92], %215 {strides = array<i32>} : memref<32x128xf32, #tpu.memory_space<vmem>>, vector<32x128xf32>,
    } else {
    }
    %c0 = arith.constant 0 : index
    %c0_1 = arith.constant 0 : index
    %3 = vector.load %arg22[%c0, %c0_1] : memref<32x128xf32, #tpu.memory_space<vmem>>, vector<32x128xf32>
    %4 = tpu.iota {dimensions = array<i32: 1>} : vector<1x32xi32>
    %c17_i32 = arith.constant 17 : i32
    %5 = vector.broadcast %c17_i32 : i32 to vector<1x32xi32>
    %6 = arith.cmpi slt, %4, %5 : vector<1x32xi32>
    %cst = arith.constant 0.000000e+00 : f32
    %cst_2 = arith.constant -1.000000e+30 : f32
    %7 = vector.broadcast %cst : f32 to vector<1x32xf32>
    %8 = vector.broadcast %cst_2 : f32 to vector<1x32xf32>
    %9 = arith.select %6, %7, %8 : vector<1x32xi1>, vector<1x32xf32>
    %c0_3 = arith.constant 0 : index
    %c0_4 = arith.constant 0 : index
    %c0_5 = arith.constant 0 : index
    %10 = vector.load %arg6[%c0_3, %c0_4, %c0_5] : memref<1x1x128xf32, #tpu.memory_space<vmem>>, vector<1x1x128xf32>
    %11 = vector.shape_cast %10 : vector<1x1x128xf32> to vector<1x128xf32>
    %c0_6 = arith.constant 0 : index
    %c0_7 = arith.constant 0 : index
    %c0_8 = arith.constant 0 : index
    %12 = vector.load %arg7[%c0_6, %c0_7, %c0_8] : memref<1x1x128xf32, #tpu.memory_space<vmem>>, vector<1x1x128xf32>
    %13 = vector.shape_cast %12 : vector<1x1x128xf32> to vector<1x128xf32>
    %cst_9 = arith.constant dense<0.000000e+00> : vector<32xf32>
    %14 = vector.multi_reduction <add>, %3, %cst_9 [1] : vector<32x128xf32> to vector<32xf32>
    %15 = vector.shape_cast %14 : vector<32xf32> to vector<32x1xf32>
    %cst_10 = arith.constant 1.280000e+02 : f32
    %16 = vector.broadcast %cst_10 : f32 to vector<32x1xf32>
    %17 = arith.divf %15, %16 : vector<32x1xf32>
    %18 = vector.broadcast %17 : vector<32x1xf32> to vector<32x128xf32>
    %19 = arith.subf %3, %18 : vector<32x128xf32>
    %20 = arith.mulf %19, %19 : vector<32x128xf32>
    %cst_11 = arith.constant dense<0.000000e+00> : vector<32xf32>
    %21 = vector.multi_reduction <add>, %20, %cst_11 [1] : vector<32x128xf32> to vector<32xf32>
    %22 = vector.shape_cast %21 : vector<32xf32> to vector<32x1xf32>
    %cst_12 = arith.constant 1.280000e+02 : f32
    %23 = vector.broadcast %cst_12 : f32 to vector<32x1xf32>
    %24 = arith.divf %22, %23 : vector<32x1xf32>
    %25 = vector.broadcast %17 : vector<32x1xf32> to vector<32x128xf32>
    %26 = arith.subf %3, %25 : vector<32x128xf32>
    %cst_13 = arith.constant 9.99999974E-6 : f32
    %27 = vector.broadcast %cst_13 : f32 to vector<32x1xf32>
    %28 = arith.addf %24, %27 : vector<32x1xf32>
    %29 = math.rsqrt %28 : vector<32x1xf32>
    %30 = vector.broadcast %29 : vector<32x1xf32> to vector<32x128xf32>
    %31 = arith.mulf %26, %30 : vector<32x128xf32>
    %32 = vector.broadcast %11 : vector<1x128xf32> to vector<32x128xf32>
    %33 = arith.mulf %31, %32 : vector<32x128xf32>
    %34 = vector.broadcast %13 : vector<1x128xf32> to vector<32x128xf32>
    %35 = arith.addf %33, %34 : vector<32x128xf32>
    %36 = arith.truncf %35 : vector<32x128xf32> to vector<32x128xbf16>
    %c0_14 = arith.constant 0 : index
    %c0_15 = arith.constant 0 : index
    %c0_16 = arith.constant 0 : index
    %37 = vector.load %arg8[%c0_14, %c0_15, %c0_16] : memref<1x128x384xbf16, #tpu.memory_space<vmem>>, vector<1x128x384xbf16>
    %38 = vector.shape_cast %37 : vector<1x128x384xbf16> to vector<128x384xbf16>
    %cst_17 = arith.constant dense<0.000000e+00> : vector<32x384xf32>
    %39 = tpu.matmul %36, %38, %cst_17 {dimension_numbers = #tpu.dot_dimension_numbers<[1], [0], [0], [1], [0, 0, 1, 1], [], []>} : vector<32x128xbf16>, vector<128x384xbf16>, vector<32x384xf32> -> vector<32x384xf32>
    %c0_18 = arith.constant 0 : index
    %c0_19 = arith.constant 0 : index
    %c0_20 = arith.constant 0 : index
    %40 = vector.load %arg9[%c0_18, %c0_19, %c0_20] : memref<1x1x384xf32, #tpu.memory_space<vmem>>, vector<1x1x384xf32>
    %41 = vector.shape_cast %40 : vector<1x1x384xf32> to vector<1x384xf32>
    %42 = vector.broadcast %41 : vector<1x384xf32> to vector<32x384xf32>
    %43 = arith.addf %39, %42 : vector<32x384xf32>
    %44 = vector.extract_strided_slice %43 {offsets = [0, 0], sizes = [32, 128], strides = [1, 1]} : vector<32x384xf32> to vector<32x128xf32>
    %45 = arith.truncf %44 : vector<32x128xf32> to vector<32x128xbf16>
    %46 = vector.extract_strided_slice %43 {offsets = [0, 128], sizes = [32, 128], strides = [1, 1]} : vector<32x384xf32> to vector<32x128xf32>
    %47 = arith.truncf %46 : vector<32x128xf32> to vector<32x128xbf16>
    %48 = vector.extract_strided_slice %43 {offsets = [0, 256], sizes = [32, 128], strides = [1, 1]} : vector<32x384xf32> to vector<32x128xf32>
    %49 = arith.truncf %48 : vector<32x128xf32> to vector<32x128xbf16>
    %50 = vector.extract_strided_slice %45 {offsets = [0, 0], sizes = [32, 32], strides = [1, 1]} : vector<32x128xbf16> to vector<32x32xbf16>
    %51 = vector.extract_strided_slice %47 {offsets = [0, 0], sizes = [32, 32], strides = [1, 1]} : vector<32x128xbf16> to vector<32x32xbf16>
    %cst_21 = arith.constant dense<0.000000e+00> : vector<32x32xf32>
    %52 = tpu.matmul %50, %51, %cst_21 {dimension_numbers = #tpu.dot_dimension_numbers<[1], [1], [0], [0], [0, 0, 1, 0], [], []>} : vector<32x32xbf16>, vector<32x32xbf16>, vector<32x32xf32> -> vector<32x32xf32>
    %53 = vector.broadcast %9 : vector<1x32xf32> to vector<32x32xf32>
    %54 = arith.addf %52, %53 : vector<32x32xf32>
    %cst_22 = arith.constant dense<0xFF800000> : vector<32xf32>
    %55 = vector.multi_reduction <maximumf>, %54, %cst_22 [1] : vector<32x32xf32> to vector<32xf32>
    %56 = vector.shape_cast %55 : vector<32xf32> to vector<32x1xf32>
    %57 = vector.broadcast %56 : vector<32x1xf32> to vector<32x32xf32>
    %58 = arith.subf %54, %57 : vector<32x32xf32>
    %59 = math.exp %58 : vector<32x32xf32>
    %cst_23 = arith.constant dense<0.000000e+00> : vector<32xf32>
    %60 = vector.multi_reduction <add>, %59, %cst_23 [1] : vector<32x32xf32> to vector<32xf32>
    %61 = vector.shape_cast %60 : vector<32xf32> to vector<32x1xf32>
    %62 = tpu.reciprocal %61 {approx = true} : vector<32x1xf32> -> vector<32x1xf32>
    %63 = vector.broadcast %62 : vector<32x1xf32> to vector<32x32xf32>
    %64 = arith.mulf %59, %63 : vector<32x32xf32>
    %65 = arith.truncf %64 : vector<32x32xf32> to vector<32x32xbf16>
    %66 = vector.extract_strided_slice %49 {offsets = [0, 0], sizes = [32, 32], strides = [1, 1]} : vector<32x128xbf16> to vector<32x32xbf16>
    %cst_24 = arith.constant dense<0.000000e+00> : vector<32x32xf32>
    %67 = tpu.matmul %65, %66, %cst_24 {dimension_numbers = #tpu.dot_dimension_numbers<[1], [0], [0], [1], [0, 0, 1, 1], [], []>} : vector<32x32xbf16>, vector<32x32xbf16>, vector<32x32xf32> -> vector<32x32xf32>
    %68 = vector.extract_strided_slice %45 {offsets = [0, 32], sizes = [32, 32], strides = [1, 1]} : vector<32x128xbf16> to vector<32x32xbf16>
    %69 = vector.extract_strided_slice %47 {offsets = [0, 32], sizes = [32, 32], strides = [1, 1]} : vector<32x128xbf16> to vector<32x32xbf16>
    %cst_25 = arith.constant dense<0.000000e+00> : vector<32x32xf32>
    %70 = tpu.matmul %68, %69, %cst_25 {dimension_numbers = #tpu.dot_dimension_numbers<[1], [1], [0], [0], [0, 0, 1, 0], [], []>} : vector<32x32xbf16>, vector<32x32xbf16>, vector<32x32xf32> -> vector<32x32xf32>
    %71 = vector.broadcast %9 : vector<1x32xf32> to vector<32x32xf32>
    %72 = arith.addf %70, %71 : vector<32x32xf32>
    %cst_26 = arith.constant dense<0xFF800000> : vector<32xf32>
    %73 = vector.multi_reduction <maximumf>, %72, %cst_26 [1] : vector<32x32xf32> to vector<32xf32>
    %74 = vector.shape_cast %73 : vector<32xf32> to vector<32x1xf32>
    %75 = vector.broadcast %74 : vector<32x1xf32> to vector<32x32xf32>
    %76 = arith.subf %72, %75 : vector<32x32xf32>
    %77 = math.exp %76 : vector<32x32xf32>
    %cst_27 = arith.constant dense<0.000000e+00> : vector<32xf32>
    %78 = vector.multi_reduction <add>, %77, %cst_27 [1] : vector<32x32xf32> to vector<32xf32>
    %79 = vector.shape_cast %78 : vector<32xf32> to vector<32x1xf32>
    %80 = tpu.reciprocal %79 {approx = true} : vector<32x1xf32> -> vector<32x1xf32>
    %81 = vector.broadcast %80 : vector<32x1xf32> to vector<32x32xf32>
    %82 = arith.mulf %77, %81 : vector<32x32xf32>
    %83 = arith.truncf %82 : vector<32x32xf32> to vector<32x32xbf16>
    %84 = vector.extract_strided_slice %49 {offsets = [0, 32], sizes = [32, 32], strides = [1, 1]} : vector<32x128xbf16> to vector<32x32xbf16>
    %cst_28 = arith.constant dense<0.000000e+00> : vector<32x32xf32>
    %85 = tpu.matmul %83, %84, %cst_28 {dimension_numbers = #tpu.dot_dimension_numbers<[1], [0], [0], [1], [0, 0, 1, 1], [], []>} : vector<32x32xbf16>, vector<32x32xbf16>, vector<32x32xf32> -> vector<32x32xf32>
    %86 = vector.extract_strided_slice %45 {offsets = [0, 64], sizes = [32, 32], strides = [1, 1]} : vector<32x128xbf16> to vector<32x32xbf16>
    %87 = vector.extract_strided_slice %47 {offsets = [0, 64], sizes = [32, 32], strides = [1, 1]} : vector<32x128xbf16> to vector<32x32xbf16>
    %cst_29 = arith.constant dense<0.000000e+00> : vector<32x32xf32>
    %88 = tpu.matmul %86, %87, %cst_29 {dimension_numbers = #tpu.dot_dimension_numbers<[1], [1], [0], [0], [0, 0, 1, 0], [], []>} : vector<32x32xbf16>, vector<32x32xbf16>, vector<32x32xf32> -> vector<32x32xf32>
    %89 = vector.broadcast %9 : vector<1x32xf32> to vector<32x32xf32>
    %90 = arith.addf %88, %89 : vector<32x32xf32>
    %cst_30 = arith.constant dense<0xFF800000> : vector<32xf32>
    %91 = vector.multi_reduction <maximumf>, %90, %cst_30 [1] : vector<32x32xf32> to vector<32xf32>
    %92 = vector.shape_cast %91 : vector<32xf32> to vector<32x1xf32>
    %93 = vector.broadcast %92 : vector<32x1xf32> to vector<32x32xf32>
    %94 = arith.subf %90, %93 : vector<32x32xf32>
    %95 = math.exp %94 : vector<32x32xf32>
    %cst_31 = arith.constant dense<0.000000e+00> : vector<32xf32>
    %96 = vector.multi_reduction <add>, %95, %cst_31 [1] : vector<32x32xf32> to vector<32xf32>
    %97 = vector.shape_cast %96 : vector<32xf32> to vector<32x1xf32>
    %98 = tpu.reciprocal %97 {approx = true} : vector<32x1xf32> -> vector<32x1xf32>
    %99 = vector.broadcast %98 : vector<32x1xf32> to vector<32x32xf32>
    %100 = arith.mulf %95, %99 : vector<32x32xf32>
    %101 = arith.truncf %100 : vector<32x32xf32> to vector<32x32xbf16>
    %102 = vector.extract_strided_slice %49 {offsets = [0, 64], sizes = [32, 32], strides = [1, 1]} : vector<32x128xbf16> to vector<32x32xbf16>
    %cst_32 = arith.constant dense<0.000000e+00> : vector<32x32xf32>
    %103 = tpu.matmul %101, %102, %cst_32 {dimension_numbers = #tpu.dot_dimension_numbers<[1], [0], [0], [1], [0, 0, 1, 1], [], []>} : vector<32x32xbf16>, vector<32x32xbf16>, vector<32x32xf32> -> vector<32x32xf32>
    %104 = vector.extract_strided_slice %45 {offsets = [0, 96], sizes = [32, 32], strides = [1, 1]} : vector<32x128xbf16> to vector<32x32xbf16>
    %105 = vector.extract_strided_slice %47 {offsets = [0, 96], sizes = [32, 32], strides = [1, 1]} : vector<32x128xbf16> to vector<32x32xbf16>
    %cst_33 = arith.constant dense<0.000000e+00> : vector<32x32xf32>
    %106 = tpu.matmul %104, %105, %cst_33 {dimension_numbers = #tpu.dot_dimension_numbers<[1], [1], [0], [0], [0, 0, 1, 0], [], []>} : vector<32x32xbf16>, vector<32x32xbf16>, vector<32x32xf32> -> vector<32x32xf32>
    %107 = vector.broadcast %9 : vector<1x32xf32> to vector<32x32xf32>
    %108 = arith.addf %106, %107 : vector<32x32xf32>
    %cst_34 = arith.constant dense<0xFF800000> : vector<32xf32>
    %109 = vector.multi_reduction <maximumf>, %108, %cst_34 [1] : vector<32x32xf32> to vector<32xf32>
    %110 = vector.shape_cast %109 : vector<32xf32> to vector<32x1xf32>
    %111 = vector.broadcast %110 : vector<32x1xf32> to vector<32x32xf32>
    %112 = arith.subf %108, %111 : vector<32x32xf32>
    %113 = math.exp %112 : vector<32x32xf32>
    %cst_35 = arith.constant dense<0.000000e+00> : vector<32xf32>
    %114 = vector.multi_reduction <add>, %113, %cst_35 [1] : vector<32x32xf32> to vector<32xf32>
    %115 = vector.shape_cast %114 : vector<32xf32> to vector<32x1xf32>
    %116 = tpu.reciprocal %115 {approx = true} : vector<32x1xf32> -> vector<32x1xf32>
    %117 = vector.broadcast %116 : vector<32x1xf32> to vector<32x32xf32>
    %118 = arith.mulf %113, %117 : vector<32x32xf32>
    %119 = arith.truncf %118 : vector<32x32xf32> to vector<32x32xbf16>
    %120 = vector.extract_strided_slice %49 {offsets = [0, 96], sizes = [32, 32], strides = [1, 1]} : vector<32x128xbf16> to vector<32x32xbf16>
    %cst_36 = arith.constant dense<0.000000e+00> : vector<32x32xf32>
    %121 = tpu.matmul %119, %120, %cst_36 {dimension_numbers = #tpu.dot_dimension_numbers<[1], [0], [0], [1], [0, 0, 1, 1], [], []>} : vector<32x32xbf16>, vector<32x32xbf16>, vector<32x32xf32> -> vector<32x32xf32>
    %122 = tpu.concatenate %67, %85, %103, %121 in 1 : vector<32x32xf32>, vector<32x32xf32>, vector<32x32xf32>, vector<32x32xf32> -> vector<32x128xf32>
    %123 = arith.truncf %122 : vector<32x128xf32> to vector<32x128xbf16>
    %c0_37 = arith.constant 0 : index
    %c0_38 = arith.constant 0 : index
    %c0_39 = arith.constant 0 : index
    %124 = vector.load %arg10[%c0_37, %c0_38, %c0_39] : memref<1x128x128xbf16, #tpu.memory_space<vmem>>, vector<1x128x128xbf16>
    %125 = vector.shape_cast %124 : vector<1x128x128xbf16> to vector<128x128xbf16>
    %cst_40 = arith.constant dense<0.000000e+00> : vector<32x128xf32>
    %126 = tpu.matmul %123, %125, %cst_40 {dimension_numbers = #tpu.dot_dimension_numbers<[1], [0], [0], [1], [0, 0, 1, 1], [], []>} : vector<32x128xbf16>, vector<128x128xbf16>, vector<32x128xf32> -> vector<32x128xf32>
    %127 = arith.addf %3, %126 : vector<32x128xf32>
    %c0_41 = arith.constant 0 : index
    %c0_42 = arith.constant 0 : index
    %c0_43 = arith.constant 0 : index
    %128 = vector.load %arg11[%c0_41, %c0_42, %c0_43] : memref<1x1x128xf32, #tpu.memory_space<vmem>>, vector<1x1x128xf32>
    %129 = vector.shape_cast %128 : vector<1x1x128xf32> to vector<1x128xf32>
    %130 = vector.broadcast %129 : vector<1x128xf32> to vector<32x128xf32>
    %131 = arith.addf %127, %130 : vector<32x128xf32>
    %c0_44 = arith.constant 0 : index
    %c0_45 = arith.constant 0 : index
    %c0_46 = arith.constant 0 : index
    %132 = vector.load %arg12[%c0_44, %c0_45, %c0_46] : memref<1x1x128xf32, #tpu.memory_space<vmem>>, vector<1x1x128xf32>
    %133 = vector.shape_cast %132 : vector<1x1x128xf32> to vector<1x128xf32>
    %c0_47 = arith.constant 0 : index
    %c0_48 = arith.constant 0 : index
    %c0_49 = arith.constant 0 : index
    %134 = vector.load %arg13[%c0_47, %c0_48, %c0_49] : memref<1x1x128xf32, #tpu.memory_space<vmem>>, vector<1x1x128xf32>
    %135 = vector.shape_cast %134 : vector<1x1x128xf32> to vector<1x128xf32>
    %cst_50 = arith.constant dense<0.000000e+00> : vector<32xf32>
    %136 = vector.multi_reduction <add>, %131, %cst_50 [1] : vector<32x128xf32> to vector<32xf32>
    %137 = vector.shape_cast %136 : vector<32xf32> to vector<32x1xf32>
    %cst_51 = arith.constant 1.280000e+02 : f32
    %138 = vector.broadcast %cst_51 : f32 to vector<32x1xf32>
    %139 = arith.divf %137, %138 : vector<32x1xf32>
    %140 = vector.broadcast %139 : vector<32x1xf32> to vector<32x128xf32>
    %141 = arith.subf %131, %140 : vector<32x128xf32>
    %142 = arith.mulf %141, %141 : vector<32x128xf32>
    %cst_52 = arith.constant dense<0.000000e+00> : vector<32xf32>
    %143 = vector.multi_reduction <add>, %142, %cst_52 [1] : vector<32x128xf32> to vector<32xf32>
    %144 = vector.shape_cast %143 : vector<32xf32> to vector<32x1xf32>
    %cst_53 = arith.constant 1.280000e+02 : f32
    %145 = vector.broadcast %cst_53 : f32 to vector<32x1xf32>
    %146 = arith.divf %144, %145 : vector<32x1xf32>
    %147 = vector.broadcast %139 : vector<32x1xf32> to vector<32x128xf32>
    %148 = arith.subf %131, %147 : vector<32x128xf32>
    %cst_54 = arith.constant 9.99999974E-6 : f32
    %149 = vector.broadcast %cst_54 : f32 to vector<32x1xf32>
    %150 = arith.addf %146, %149 : vector<32x1xf32>
    %151 = math.rsqrt %150 : vector<32x1xf32>
    %152 = vector.broadcast %151 : vector<32x1xf32> to vector<32x128xf32>
    %153 = arith.mulf %148, %152 : vector<32x128xf32>
    %154 = vector.broadcast %133 : vector<1x128xf32> to vector<32x128xf32>
    %155 = arith.mulf %153, %154 : vector<32x128xf32>
    %156 = vector.broadcast %135 : vector<1x128xf32> to vector<32x128xf32>
    %157 = arith.addf %155, %156 : vector<32x128xf32>
    %158 = arith.truncf %157 : vector<32x128xf32> to vector<32x128xbf16>
    %c0_55 = arith.constant 0 : index
    %c0_56 = arith.constant 0 : index
    %c0_57 = arith.constant 0 : index
    %159 = vector.load %arg14[%c0_55, %c0_56, %c0_57] : memref<1x128x512xbf16, #tpu.memory_space<vmem>>, vector<1x128x512xbf16>
    %160 = vector.shape_cast %159 : vector<1x128x512xbf16> to vector<128x512xbf16>
    %cst_58 = arith.constant dense<0.000000e+00> : vector<32x512xf32>
    %161 = tpu.matmul %158, %160, %cst_58 {dimension_numbers = #tpu.dot_dimension_numbers<[1], [0], [0], [1], [0, 0, 1, 1], [], []>} : vector<32x128xbf16>, vector<128x512xbf16>, vector<32x512xf32> -> vector<32x512xf32>
    %c0_59 = arith.constant 0 : index
    %c0_60 = arith.constant 0 : index
    %c0_61 = arith.constant 0 : index
    %162 = vector.load %arg15[%c0_59, %c0_60, %c0_61] : memref<1x1x512xf32, #tpu.memory_space<vmem>>, vector<1x1x512xf32>
    %163 = vector.shape_cast %162 : vector<1x1x512xf32> to vector<1x512xf32>
    %164 = vector.broadcast %163 : vector<1x512xf32> to vector<32x512xf32>
    %165 = arith.addf %161, %164 : vector<32x512xf32>
    %cst_62 = arith.constant 8.510000e-01 : f32
    %166 = vector.broadcast %cst_62 : f32 to vector<32x512xf32>
    %167 = arith.mulf %166, %165 : vector<32x512xf32>
    %168 = math.tanh %167 : vector<32x512xf32>
    %cst_63 = arith.constant 1.000000e+00 : f32
    %169 = vector.broadcast %cst_63 : f32 to vector<32x512xf32>
    %170 = arith.addf %168, %169 : vector<32x512xf32>
    %cst_64 = arith.constant 5.000000e-01 : f32
    %171 = vector.broadcast %cst_64 : f32 to vector<32x512xf32>
    %172 = arith.mulf %171, %170 : vector<32x512xf32>
    %173 = arith.mulf %165, %172 : vector<32x512xf32>
    %174 = arith.truncf %173 : vector<32x512xf32> to vector<32x512xbf16>
    %c0_65 = arith.constant 0 : index
    %c0_66 = arith.constant 0 : index
    %c0_67 = arith.constant 0 : index
    %175 = vector.load %arg16[%c0_65, %c0_66, %c0_67] : memref<1x512x128xbf16, #tpu.memory_space<vmem>>, vector<1x512x128xbf16>
    %176 = vector.shape_cast %175 : vector<1x512x128xbf16> to vector<512x128xbf16>
    %cst_68 = arith.constant dense<0.000000e+00> : vector<32x128xf32>
    %177 = tpu.matmul %174, %176, %cst_68 {dimension_numbers = #tpu.dot_dimension_numbers<[1], [0], [0], [1], [0, 0, 1, 1], [], []>} : vector<32x512xbf16>, vector<512x128xbf16>, vector<32x128xf32> -> vector<32x128xf32>
    %178 = arith.addf %131, %177 : vector<32x128xf32>
    %c0_69 = arith.constant 0 : index
    %c0_70 = arith.constant 0 : index
    %c0_71 = arith.constant 0 : index
    %179 = vector.load %arg17[%c0_69, %c0_70, %c0_71] : memref<1x1x128xf32, #tpu.memory_space<vmem>>, vector<1x1x128xf32>
    %180 = vector.shape_cast %179 : vector<1x1x128xf32> to vector<1x128xf32>
    %181 = vector.broadcast %180 : vector<1x128xf32> to vector<32x128xf32>
    %182 = arith.addf %178, %181 : vector<32x128xf32>
    %c0_72 = arith.constant 0 : index
    %c0_73 = arith.constant 0 : index
    %183 = vector.load %arg22[%c0_72, %c0_73] : memref<32x128xf32, #tpu.memory_space<vmem>>, vector<32x128xf32>
    tpu.vector_store %arg22[%c0_72, %c0_73], %182 {strides = array<i32>} : memref<32x128xf32, #tpu.memory_space<vmem>>, vector<32x128xf32>,
    %c1_i32 = arith.constant 1 : i32
    %184 = arith.cmpi eq, %arg0, %c1_i32 : i32
    %185 = arith.extui %184 : i1 to i32
    %c0_i32_74 = arith.constant 0 : i32
    %186 = arith.cmpi ne, %185, %c0_i32_74 : i32
    scf.if %186 {
      %c0_75 = arith.constant 0 : index
      %c0_76 = arith.constant 0 : index
      %187 = vector.load %arg18[%c0_75, %c0_76] : memref<1x128xf32, #tpu.memory_space<vmem>>, vector<1x128xf32>
      %c0_77 = arith.constant 0 : index
      %c0_78 = arith.constant 0 : index
      %188 = vector.load %arg19[%c0_77, %c0_78] : memref<1x128xf32, #tpu.memory_space<vmem>>, vector<1x128xf32>
      %cst_79 = arith.constant dense<0.000000e+00> : vector<32xf32>
      %189 = vector.multi_reduction <add>, %182, %cst_79 [1] : vector<32x128xf32> to vector<32xf32>
      %190 = vector.shape_cast %189 : vector<32xf32> to vector<32x1xf32>
      %cst_80 = arith.constant 1.280000e+02 : f32
      %191 = vector.broadcast %cst_80 : f32 to vector<32x1xf32>
      %192 = arith.divf %190, %191 : vector<32x1xf32>
      %193 = vector.broadcast %192 : vector<32x1xf32> to vector<32x128xf32>
      %194 = arith.subf %182, %193 : vector<32x128xf32>
      %195 = arith.mulf %194, %194 : vector<32x128xf32>
      %cst_81 = arith.constant dense<0.000000e+00> : vector<32xf32>
      %196 = vector.multi_reduction <add>, %195, %cst_81 [1] : vector<32x128xf32> to vector<32xf32>
      %197 = vector.shape_cast %196 : vector<32xf32> to vector<32x1xf32>
      %cst_82 = arith.constant 1.280000e+02 : f32
      %198 = vector.broadcast %cst_82 : f32 to vector<32x1xf32>
      %199 = arith.divf %197, %198 : vector<32x1xf32>
      %200 = vector.broadcast %192 : vector<32x1xf32> to vector<32x128xf32>
      %201 = arith.subf %182, %200 : vector<32x128xf32>
      %cst_83 = arith.constant 9.99999974E-6 : f32
      %202 = vector.broadcast %cst_83 : f32 to vector<32x1xf32>
      %203 = arith.addf %199, %202 : vector<32x1xf32>
      %204 = math.rsqrt %203 : vector<32x1xf32>
      %205 = vector.broadcast %204 : vector<32x1xf32> to vector<32x128xf32>
      %206 = arith.mulf %201, %205 : vector<32x128xf32>
      %207 = vector.broadcast %187 : vector<1x128xf32> to vector<32x128xf32>
      %208 = arith.mulf %206, %207 : vector<32x128xf32>
      %209 = vector.broadcast %188 : vector<1x128xf32> to vector<32x128xf32>
      %210 = arith.addf %208, %209 : vector<32x128xf32>
      %211 = arith.truncf %210 : vector<32x128xf32> to vector<32x128xbf16>
      %c0_84 = arith.constant 0 : index
      %c0_85 = arith.constant 0 : index
      %212 = vector.load %arg20[%c0_84, %c0_85] : memref<128x128xbf16, #tpu.memory_space<vmem>>, vector<128x128xbf16>
      %cst_86 = arith.constant dense<0.000000e+00> : vector<32x128xf32>
      %213 = tpu.matmul %211, %212, %cst_86 {dimension_numbers = #tpu.dot_dimension_numbers<[1], [0], [0], [1], [0, 0, 1, 1], [], []>} : vector<32x128xbf16>, vector<128x128xbf16>, vector<32x128xf32> -> vector<32x128xf32>
      %c0_87 = arith.constant 0 : index
      %c0_88 = arith.constant 0 : index
      %214 = vector.load %arg21[%c0_87, %c0_88] : memref<32x128xf32, #tpu.memory_space<vmem>>, vector<32x128xf32>
      tpu.vector_store %arg21[%c0_87, %c0_88], %213 {strides = array<i32>} : memref<32x128xf32, #tpu.memory_space<vmem>>, vector<32x128xf32>,
    } else {
    }
    return
  }
  func.func @transform_0(%arg0: i32) -> (i32, i32) {
    %c0_i32 = arith.constant 0 : i32
    %c0_i32_0 = arith.constant 0 : i32
    %c0_i32_1 = arith.constant 0 : i32
    return %c0_i32, %c0_i32_0 : i32, i32
  }
  func.func @transform_1(%arg0: i32) -> (i32, i32) {
    %c0_i32 = arith.constant 0 : i32
    %c0_i32_0 = arith.constant 0 : i32
    %c0_i32_1 = arith.constant 0 : i32
    return %c0_i32, %c0_i32_0 : i32, i32
  }
  func.func @transform_2(%arg0: i32) -> (i32, i32) {
    %c0_i32 = arith.constant 0 : i32
    %c0_i32_0 = arith.constant 0 : i32
    %c0_i32_1 = arith.constant 0 : i32
    return %c0_i32, %c0_i32_0 : i32, i32
  }
  func.func @transform_3(%arg0: i32) -> (i32, i32) {
    %c0_i32 = arith.constant 0 : i32
    %c0_i32_0 = arith.constant 0 : i32
    %c0_i32_1 = arith.constant 0 : i32
    return %c0_i32, %c0_i32_0 : i32, i32
  }
  func.func @transform_4(%arg0: i32) -> (i32, i32) {
    %c0_i32 = arith.constant 0 : i32
    %c0_i32_0 = arith.constant 0 : i32
    %c0_i32_1 = arith.constant 0 : i32
    return %c0_i32, %c0_i32_0 : i32, i32
  }
  func.func @transform_5(%arg0: i32) -> (i32, i32, i32) {
    %c0_i32 = arith.constant 0 : i32
    %c0_i32_0 = arith.constant 0 : i32
    %c0_i32_1 = arith.constant 0 : i32
    return %arg0, %c0_i32, %c0_i32_0 : i32, i32, i32
  }
  func.func @transform_6(%arg0: i32) -> (i32, i32, i32) {
    %c0_i32 = arith.constant 0 : i32
    %c0_i32_0 = arith.constant 0 : i32
    %c0_i32_1 = arith.constant 0 : i32
    return %arg0, %c0_i32, %c0_i32_0 : i32, i32, i32
  }
  func.func @transform_7(%arg0: i32) -> (i32, i32, i32) {
    %c0_i32 = arith.constant 0 : i32
    %c0_i32_0 = arith.constant 0 : i32
    %c0_i32_1 = arith.constant 0 : i32
    return %arg0, %c0_i32, %c0_i32_0 : i32, i32, i32
  }
  func.func @transform_8(%arg0: i32) -> (i32, i32, i32) {
    %c0_i32 = arith.constant 0 : i32
    %c0_i32_0 = arith.constant 0 : i32
    %c0_i32_1 = arith.constant 0 : i32
    return %arg0, %c0_i32, %c0_i32_0 : i32, i32, i32
  }
  func.func @transform_9(%arg0: i32) -> (i32, i32, i32) {
    %c0_i32 = arith.constant 0 : i32
    %c0_i32_0 = arith.constant 0 : i32
    %c0_i32_1 = arith.constant 0 : i32
    return %arg0, %c0_i32, %c0_i32_0 : i32, i32, i32
  }
  func.func @transform_10(%arg0: i32) -> (i32, i32, i32) {
    %c0_i32 = arith.constant 0 : i32
    %c0_i32_0 = arith.constant 0 : i32
    %c0_i32_1 = arith.constant 0 : i32
    return %arg0, %c0_i32, %c0_i32_0 : i32, i32, i32
  }
  func.func @transform_11(%arg0: i32) -> (i32, i32, i32) {
    %c0_i32 = arith.constant 0 : i32
    %c0_i32_0 = arith.constant 0 : i32
    %c0_i32_1 = arith.constant 0 : i32
    return %arg0, %c0_i32, %c0_i32_0 : i32, i32, i32
  }
  func.func @transform_12(%arg0: i32) -> (i32, i32, i32) {
    %c0_i32 = arith.constant 0 : i32
    %c0_i32_0 = arith.constant 0 : i32
    %c0_i32_1 = arith.constant 0 : i32
    return %arg0, %c0_i32, %c0_i32_0 : i32, i32, i32
  }
  func.func @transform_13(%arg0: i32) -> (i32, i32, i32) {
    %c0_i32 = arith.constant 0 : i32
    %c0_i32_0 = arith.constant 0 : i32
    %c0_i32_1 = arith.constant 0 : i32
    return %arg0, %c0_i32, %c0_i32_0 : i32, i32, i32
  }
  func.func @transform_14(%arg0: i32) -> (i32, i32, i32) {
    %c0_i32 = arith.constant 0 : i32
    %c0_i32_0 = arith.constant 0 : i32
    %c0_i32_1 = arith.constant 0 : i32
    return %arg0, %c0_i32, %c0_i32_0 : i32, i32, i32
  }
  func.func @transform_15(%arg0: i32) -> (i32, i32, i32) {
    %c0_i32 = arith.constant 0 : i32
    %c0_i32_0 = arith.constant 0 : i32
    %c0_i32_1 = arith.constant 0 : i32
    return %arg0, %c0_i32, %c0_i32_0 : i32, i32, i32
  }
  func.func @transform_16(%arg0: i32) -> (i32, i32, i32) {
    %c0_i32 = arith.constant 0 : i32
    %c0_i32_0 = arith.constant 0 : i32
    %c0_i32_1 = arith.constant 0 : i32
    return %arg0, %c0_i32, %c0_i32_0 : i32, i32, i32
  }
  func.func @transform_17(%arg0: i32) -> (i32, i32) {
    %c0_i32 = arith.constant 0 : i32
    %c0_i32_0 = arith.constant 0 : i32
    %c0_i32_1 = arith.constant 0 : i32
    return %c0_i32, %c0_i32_0 : i32, i32
  }
  func.func @transform_18(%arg0: i32) -> (i32, i32) {
    %c0_i32 = arith.constant 0 : i32
    %c0_i32_0 = arith.constant 0 : i32
    %c0_i32_1 = arith.constant 0 : i32
    return %c0_i32, %c0_i32_0 : i32, i32
  }
  func.func @transform_19(%arg0: i32) -> (i32, i32) {
    %c0_i32 = arith.constant 0 : i32
    %c0_i32_0 = arith.constant 0 : i32
    %c0_i32_1 = arith.constant 0 : i32
    return %c0_i32, %c0_i32_0 : i32, i32
  }
  func.func @transform_20(%arg0: i32) -> (i32, i32) {
    %c0_i32 = arith.constant 0 : i32
    %c0_i32_0 = arith.constant 0 : i32
    %c0_i32_1 = arith.constant 0 : i32
    return %c0_i32, %c0_i32_0 : i32, i32
  }
}

</mosaic_0001>

<bundles_post_ra>
// kernel: _forward_impl.1
= control target key start
LH: loop header
LB: loop body
LE: loop exit
PB: predicated region body
PF: predicated region fallthrough
CT: control target
= control target key end

     0   :  { %s5950_s0 = inlined_call_operand.vmem [shape: bf16[32,192], index: 0, kind: input, shape index: {}]   ;;  %s5951_s1 = inlined_call_operand.hbm [shape: bf16[192,128], index: 1, kind: input, shape index: {}]   ;;  %s5952_s2 = inlined_call_operand.hbm [shape: f32[32,128], index: 2, kind: input, shape index: {}]   ;;  %s5953_s3 = inlined_call_operand.vmem [shape: f32[1,128], index: 3, kind: input, shape index: {}]   ;;  %s5954_s4 = inlined_call_operand.vmem [shape: f32[1,128], index: 4, kind: input, shape index: {}]   ;;  %s5955_s5 = inlined_call_operand.vmem [shape: f32[2,1,128], index: 5, kind: input, shape index: {}]   ;;  %s5956_s6 = inlined_call_operand.vmem [shape: f32[2,1,128], index: 6, kind: input, shape index: {}]   ;;  %s5957_s7 = inlined_call_operand.hbm [shape: bf16[2,128,384], index: 7, kind: input, shape index: {}]   ;;  %s5958_s8 = inlined_call_operand.hbm [shape: f32[2,1,384], index: 8, kind: input, shape index: {}]   ;;  %s5959_s9 = inlined_call_operand.hbm [shape: bf16[2,128,128], index: 9, kind: input, shape index: {}]   ;;  %s5960_s10 = inlined_call_operand.hbm [shape: f32[2,1,128], index: 10, kind: input, shape index: {}]   ;;  %s5961_s11 = inlined_call_operand.vmem [shape: f32[2,1,128], index: 11, kind: input, shape index: {}]   ;;  %s5962_s12 = inlined_call_operand.vmem [shape: f32[2,1,128], index: 12, kind: input, shape index: {}]   ;;  %s5963_s13 = inlined_call_operand.vmem [shape: bf16[2,128,512], index: 13, kind: input, shape index: {}]   ;;  %s5964_s14 = inlined_call_operand.hbm [shape: f32[2,1,512], index: 14, kind: input, shape index: {}]   ;;  %s5965_s15 = inlined_call_operand.vmem [shape: bf16[2,512,128], index: 15, kind: input, shape index: {}]   ;;  %s5966_s16 = inlined_call_operand.hbm [shape: f32[2,1,128], index: 16, kind: input, shape index: {}]   ;;  %s5967_s17 = inlined_call_operand.vmem [shape: f32[1,128], index: 17, kind: input, shape index: {}]   ;;  %s5968_s18 = inlined_call_operand.hbm [shape: f32[1,128], index: 18, kind: input, shape index: {}]   ;;  %s5969_s19 = inlined_call_operand.hbm [shape: bf16[128,128], index: 19, kind: input, shape index: {}]   ;;  %s5970_s20 = inlined_call_operand.vmem [shape: f32[32,128], index: 20, kind: output, shape index: {}]  }
   0x1   :  { %5994 = sst [smem:[#allocation26_spill]] %s5950_s0 }
   0x2   :  { %5995 = sst [smem:[#allocation27_spill]] %s5951_s1 }
   0x3   :  { %5996 = sst [smem:[#allocation28_spill]] %s5952_s2 }
   0x4   :  { %5997 = sst [smem:[#allocation29_spill]] %s5953_s3 }
   0x5   :  { %5998 = sst [smem:[#allocation30_spill]] %s5954_s4 }
   0x6   :  { %5999 = sst [smem:[#allocation31_spill]] %s5955_s5 }
   0x7   :  { %6000 = sst [smem:[#allocation32_spill]] %s5956_s6 }
   0x8   :  { %6001 = sst [smem:[#allocation33_spill]] %s5957_s7 }
   0x9   :  { %6002 = sst [smem:[#allocation34_spill]] %s5958_s8 }
   0xa   :  { %6003 = sst [smem:[#allocation35_spill]] %s5959_s9 }
   0xb   :  { %6004 = sst [smem:[#allocation36_spill]] %s5960_s10 }
   0xc   :  { %6005 = sst [smem:[#allocation37_spill]] %s5961_s11 }
   0xd   :  { %6006 = sst [smem:[#allocation38_spill]] %s5962_s12 }
   0xe   :  { %6007 = sst [smem:[#allocation39_spill]] %s5963_s13 }
   0xf   :  { %6008 = sst [smem:[#allocation40_spill]] %s5964_s14 }
  0x10   :  { %6009 = sst [smem:[#allocation41_spill]] %s5965_s15 }
  0x11   :  { %6010 = sst [smem:[#allocation42_spill]] %s5967_s17 }
  0x12   :  { %6011 = sst [smem:[#allocation43_spill]] %s5970_s20 }
  0x13   :  { %25 = vsyncpa [#allocation4], 0 }
  0x14   :  { %26 = vsyncpa [#allocation6], 0 }
  0x15   :  { %27 = vsyncpa [#allocation15], 0  ;;  %s5068_s1 = smov 0   ;;  %s5070_s22 = smov 0  }
  0x16   :  { %s5072_s23 = smov 0   ;;  %s5074_s24 = smov 0  }
  0x17 LB: > { %6012 = sst [smem:[#allocation21_spill]] %s4931_s22  ;;  %s5087_s2 = sadd.s32 4294967295, %s4939_s24   ;;  %s4939_s24 = sphi %s5074_s24, %s6071_s24   ;;  %s4935_s23 = sphi %s5072_s23, %s6074_s23   ;;  %s4931_s22 = sphi %s5070_s22, %s6073_s22   ;;  %s4927_s1 = sphi %s5068_s1, %s6072_s1  }
  0x18   : > { %6013 = sst [smem:[#allocation22_spill]] %s4935_s23  ;;  %s5090_s25 = sadd.s32 1, %s4939_s24  }
  0x19   : > { %6014 = sst [smem:[#allocation23_spill]] %s5090_s25  ;;  %s194_s3 = ssub.s32 %s4939_s24, %s5090_s25 }
  0x1a   : > { %s197_s26 = sadd.s32 1, %s4935_s23  ;;  %p195_p0 = scmp.eq.s32.totalorder %s194_s3, 0 }
  0x1b   : > { %p204_p1 = scmp.ne.s32.totalorder %s4935_s23, %s4931_s22  ;;  %p205_p2 = scmp.eq.s32.totalorder %s4939_s24, 0 }
  0x1c   : > { %p210_p3 = scmp.ne.s32.totalorder %s4931_s22, %s4927_s1  ;;  %p5976_p5 = scmp.eq.s32.totalorder %s5087_s2, 0 }
  0x1d   : > { %s5100_s27 = scalar_select %p195_p0, %s4935_s23, %s197_s26  }
  0x1e   : > { %p5102_p4 = por %p205_p2, %p204_p1  ;;  %p3729_p6 = scmp.ge.s32.totalorder %s4939_s24, 1 }
  0x1f   : > { %6015 = sst [smem:[#allocation24_spill]] %s5100_s27  ;;  %p539_p7 = scmp.lt.s32.totalorder %s4939_s24, 3 }
  0x20   : > { %p5111_p8 = por %p5976_p5, %p210_p3  ;;  %s4941_s30 = smov [#allocation3]  }
  0x21   : > { %p5116_p10 = pnand %p3729_p6, %p539_p7  ;;  %s554_s0 = sshll.u32 %s4941_s30, 4  ;;  %s555_s0 = int_to_ptr.vmem [resolvable:$true] %s554_s0 }
  0x22   : > { %s6017_s4 = scalar_select %p5111_p8, 1, 0 }
  0x23   : > { %s6019_s29 = scalar_select %p5116_p10, 1, 0 }
  0x24   : > { %6018 = sst [smem:[#allocation25_spill]] %s6017_s4  ;;  %p4220_p11 = pneg %p5116_p10 }
  0x25   : > { %p4256_p13 = scmp.lt.s32.totalorder %s4939_s24, 2  ;;  %s626_s1 = sand.u32 1, %s4939_s24  }
  0x26   : > { %p5124_p12 = pnand %p4220_p11, %p5976_p5  ;;  %s5131_s3 = sand.u32 1, %s4935_s23  }
  0x27   : > { %s4628_s26 = scalar_lea.vmem %s555_s0, 1536  ;;  %p4636_p6 = scmp.lt.s32.totalorder %s555_s0, %s555_s0 }
  0x28   : > { %s6020_s21 = scalar_select %p5124_p12, 1, 0 }
  0x29   : > { %p5977_p0 = pneg %p5124_p12  ;;  %p4629_p1 = scmp.ne.s32.totalorder %s555_s0, %s4628_s26 }
  0x2a   : > { %p4637_p7 = scmp.lt.s32.totalorder %s4628_s26, %s4628_s26 }
  0x2b   : > { %p4631_p2 = pnand %p4629_p1, %p5977_p0 }
  0x2c   : > { %p4638_p11 = por %p4637_p7, %p4636_p6 }
  0x2d   : > { %p4632_p3 = pneg %p4631_p2 }
  0x2f   : > { %p4639_p9 = pnand %p4638_p11, %p4632_p3 }
  0x31   : > { %4642 = shalt.err (!%p4639_p9)
}
  0x32   : > { %s5982_s30 = smov 64   ;;  %s5984_s27 = smov 4  }
  0x33   : > { %s6021_s20 = sld [smem:[#allocation27_spill]]  ;;  %s4186_s17 = smul.u32 192, %s5131_s3 }
  0x34   : > { %p5151_p1 = pnand %p4256_p13, %p5102_p4  ;;  %s4187_s15 = smul.u32 3072, %s4939_s24 }
  0x35   : > { %s6023_s7 = sld [smem:[#allocation33_spill]]  ;;  %s630_s6 = scalar_lea.vmem [#allocation7], %s4186_s17 }
  0x36   : > { %s637_s23 = sshll.u32 %s630_s6, 4  ;;  %p5169_p9 = pneg %p5151_p1  ;;  %s5161_s23 = int_to_ptr.vmem [resolvable:$true] %s637_s23 }
  0x38   : > { %s6024_s28 = scalar_select %p5169_p9, 1, 0 }
  0x39   : > { %4223 = dma.hbm_to_vmem [thread:$0]  (!%p5124_p12), %s6021_s20, 1536, %s555_s0, [#allocation4], %s5982_s30, %s5982_s30, %s5984_s27  }
  0x3a   : > { %s5163_s20 = scalar_lea.sflag [#allocation4], %s626_s1 }
  0x3b   : > { %s5159_s11 = scalar_lea.hbm %s6023_s7, %s4187_s15  ;;  %s4648_s15 = scalar_lea.hbm %s6023_s7, 6144 }
  0x3c   : > { %s4643_s25 = scalar_lea.hbm %s5159_s11, 3072  ;;  %p4649_p3 = scmp.lt.s32.totalorder %s5159_s11, %s6023_s7 }
  0x3d   : > { %p4644_p4 = scmp.ne.s32.totalorder %s5159_s11, %s4643_s25  ;;  %p4650_p6 = scmp.lt.s32.totalorder %s4648_s15, %s4643_s25 }
  0x3f   : > { %p4646_p13 = pnand %p5169_p9, %p4644_p4  ;;  %p4651_p7 = por %p4650_p6, %p4649_p3 }
  0x41   : > { %p4647_p2 = pneg %p4646_p13 }
  0x43   : > { %p4652_p11 = pnand %p4651_p7, %p4647_p2 }
  0x45   : > { %4655 = shalt.err (!%p4652_p11)
}
  0x46   : > { %s4656_s0 = scalar_lea.vmem %s5161_s23, 3072  ;;  %s4944_s1 = smov [#allocation7]  }
  0x47   : > { %p4657_p5 = scmp.ne.s32.totalorder %s5161_s23, %s4656_s0  ;;  %s4661_s12 = sshll.u32 %s4944_s1, 4  ;;  %s4662_s12 = int_to_ptr.vmem [resolvable:$false] %s4661_s12 }
  0x48   : > { %s4663_s13 = scalar_lea.vmem %s4662_s12, 6144  ;;  %p4664_p0 = scmp.lt.s32.totalorder %s5161_s23, %s4662_s12 }
  0x49   : > { %p4659_p4 = pnand %p4657_p5, %p5169_p9  ;;  %p4665_p8 = scmp.lt.s32.totalorder %s4663_s13, %s4656_s0 }
  0x4b   : > { %p4660_p13 = pneg %p4659_p4  ;;  %p4666_p10 = por %p4665_p8, %p4664_p0 }
  0x4d   : > { %p4667_p12 = pnand %p4666_p10, %p4660_p13 }
  0x4f   : > { %4670 = shalt.err (!%p4667_p12)
}
  0x50   : > { %s4945_s25 = smov 192   ;;  %s4946_s15 = smov 12  }
  0x51   : > { %4236 = dma.hbm_to_vmem [thread:$0]  (!%p5151_p1), %s5159_s11, 3072, %s5161_s23, %s5163_s20, %s4945_s25, %s4945_s25, %s4946_s15  }
  0x52   : > { %s4188_s6 = smul.u32 3, %s5131_s3  ;;  %s3737_s17 = sshll.u32 %s5131_s3, 6 }
  0x53   : > { %s4189_s1 = smul.u32 48, %s4939_s24  ;;  %s3908_s0 = sshll.u32 %s4939_s24, 10 }
  0x54   : > { %s6025_s8 = sld [smem:[#allocation34_spill]]  ;;  %s651_s27 = scalar_lea.vmem [#allocation8], %s4188_s6 }
  0x55   : > { %s659_s7 = sshll.u32 %s651_s27, 4  ;;  %s6026_s9 = sld [smem:[#allocation35_spill]]  ;;  %s660_s7 = int_to_ptr.vmem [resolvable:$true] %s659_s7 }
  0x5a   : > { %s5199_s30 = scalar_lea.hbm %s6025_s8, %s4189_s1  ;;  %s4676_s15 = scalar_lea.hbm %s6025_s8, 96 }
  0x5b   : > { %s5204_s22 = scalar_lea.hbm %s6026_s9, %s3908_s0  ;;  %s4671_s11 = scalar_lea.hbm %s5199_s30, 48 }
  0x5c   : > { %p4672_p5 = scmp.ne.s32.totalorder %s5199_s30, %s4671_s11  ;;  %p4677_p12 = scmp.lt.s32.totalorder %s5199_s30, %s6025_s8 }
  0x5d   : > { %p4678_p0 = scmp.lt.s32.totalorder %s4676_s15, %s4671_s11 }
  0x5e   : > { %p4674_p8 = pnand %p4672_p5, %p5169_p9 }
  0x5f   : > { %p4679_p2 = por %p4678_p0, %p4677_p12 }
  0x60   : > { %p4675_p10 = pneg %p4674_p8 }
  0x62   : > { %p4680_p3 = pnand %p4679_p2, %p4675_p10 }
  0x64   : > { %4683 = shalt.err (!%p4680_p3)
}
  0x65   : > { %s4684_s5 = scalar_lea.vmem %s660_s7, 48  ;;  %s4947_s27 = smov [#allocation8]  }
  0x66   : > { %p4685_p6 = scmp.ne.s32.totalorder %s660_s7, %s4684_s5  ;;  %s4689_s4 = sshll.u32 %s4947_s27, 4  ;;  %s4690_s4 = int_to_ptr.vmem [resolvable:$false] %s4689_s4 }
  0x67   : > { %s4691_s6 = scalar_lea.vmem %s4690_s4, 96  ;;  %p4692_p4 = scmp.lt.s32.totalorder %s660_s7, %s4690_s4 }
  0x68   : > { %p4687_p7 = pnand %p4685_p6, %p5169_p9  ;;  %p4693_p13 = scmp.lt.s32.totalorder %s4691_s6, %s4684_s5 }
  0x6a   : > { %p4688_p11 = pneg %p4687_p7  ;;  %p4694_p5 = por %p4693_p13, %p4692_p4 }
  0x6c   : > { %p4695_p8 = pnand %p4694_p5, %p4688_p11 }
  0x6e   : > { %4698 = shalt.err (!%p4695_p8)
}
  0x6f   : > { %4239 = dma.hbm_to_vmem [thread:$0]  (!%p5151_p1), %s5199_s30, 48, %s660_s7, %s5163_s20  }
  0x70   : > { %s670_s0 = scalar_lea.vmem [#allocation9], %s3737_s17  ;;  %s5991_s11 = sshll.u32 %s4939_s24, 4 }
  0x71   : > { %s677_s13 = sshll.u32 %s670_s0, 4  ;;  %s4699_s23 = scalar_lea.hbm %s5204_s22, 1024  ;;  %s5225_s13 = int_to_ptr.vmem [resolvable:$true] %s677_s13 }
  0x72   : > { %p4700_p10 = scmp.ne.s32.totalorder %s5204_s22, %s4699_s23  ;;  %s4704_s1 = scalar_lea.hbm %s6026_s9, 2048 }
  0x73   : > { %p4705_p2 = scmp.lt.s32.totalorder %s5204_s22, %s6026_s9  ;;  %p4706_p3 = scmp.lt.s32.totalorder %s4704_s1, %s4699_s23 }
  0x74   : > { %p4702_p12 = pnand %p4700_p10, %p5169_p9 }
  0x75   : > { %p4707_p6 = por %p4706_p3, %p4705_p2 }
  0x76   : > { %p4703_p0 = pneg %p4702_p12 }
  0x78   : > { %p4708_p7 = pnand %p4707_p6, %p4703_p0 }
  0x7a   : > { %4711 = shalt.err (!%p4708_p7)
}
  0x7b   : > { %s4712_s7 = scalar_lea.vmem %s5225_s13, 1024  ;;  %s4948_s30 = smov [#allocation9]  }
  0x7c   : > { %p4713_p11 = scmp.ne.s32.totalorder %s5225_s13, %s4712_s7  ;;  %s4717_s17 = sshll.u32 %s4948_s30, 4  ;;  %s4718_s17 = int_to_ptr.vmem [resolvable:$false] %s4717_s17 }
  0x7d   : > { %s4719_s27 = scalar_lea.vmem %s4718_s17, 2048  ;;  %p4720_p5 = scmp.lt.s32.totalorder %s5225_s13, %s4718_s17 }
  0x7e   : > { %p4715_p4 = pnand %p4713_p11, %p5169_p9  ;;  %p4721_p8 = scmp.lt.s32.totalorder %s4719_s27, %s4712_s7 }
  0x80   : > { %p4716_p13 = pneg %p4715_p4  ;;  %p4722_p10 = por %p4721_p8, %p4720_p5 }
  0x82   : > { %p4723_p12 = pnand %p4722_p10, %p4716_p13 }
  0x84   : > { %4726 = shalt.err (!%p4723_p12)
}
  0x85   : > { %s6027_s4 = smov 4   ;;  %s6028_s6 = smov 64  }
  0x86   : > { %4242 = dma.hbm_to_vmem [thread:$0]  (!%p5151_p1), %s5204_s22, 1024, %s5225_s13, %s5163_s20, %s6028_s6, %s6028_s6, %s6027_s4  }
  0x87   : > { %s6029_s10 = sld [smem:[#allocation36_spill]]  ;;  %s690_s15 = scalar_lea.vmem [#allocation10], %s5131_s3 }
  0x88   : > { %s697_s1 = sshll.u32 %s690_s15, 4  ;;  %s698_s1 = int_to_ptr.vmem [resolvable:$true] %s697_s1 }
  0x8d   : > { %s695_s25 = scalar_lea.hbm %s6029_s10, %s5991_s11  ;;  %s4732_s30 = scalar_lea.hbm %s6029_s10, 32 }
  0x8e   : > { %s4727_s12 = scalar_lea.hbm %s695_s25, 16  ;;  %p4733_p6 = scmp.lt.s32.totalorder %s695_s25, %s6029_s10 }
  0x8f   : > { %p4728_p0 = scmp.ne.s32.totalorder %s695_s25, %s4727_s12  ;;  %p4734_p7 = scmp.lt.s32.totalorder %s4732_s30, %s4727_s12 }
  0x91   : > { %p4730_p2 = pnand %p4728_p0, %p5169_p9  ;;  %p4735_p11 = por %p4734_p7, %p4733_p6 }
  0x93   : > { %p4731_p3 = pneg %p4730_p2 }
  0x95   : > { %p4736_p4 = pnand %p4735_p11, %p4731_p3 }
  0x97   : > { %4739 = shalt.err (!%p4736_p4)
}
  0x98   : > { %s4740_s22 = scalar_lea.vmem %s698_s1, 16  ;;  %s4949_s13 = smov [#allocation10]  }
  0x99   : > { %p4741_p13 = scmp.ne.s32.totalorder %s698_s1, %s4740_s22  ;;  %s4745_s0 = sshll.u32 %s4949_s13, 4  ;;  %s4746_s0 = int_to_ptr.vmem [resolvable:$false] %s4745_s0 }
  0x9a   : > { %s4747_s23 = scalar_lea.vmem %s4746_s0, 32  ;;  %p4748_p10 = scmp.lt.s32.totalorder %s698_s1, %s4746_s0 }
  0x9b   : > { %p4743_p5 = pnand %p4741_p13, %p5169_p9  ;;  %p4749_p12 = scmp.lt.s32.totalorder %s4747_s23, %s4740_s22 }
  0x9d   : > { %p4744_p8 = pneg %p4743_p5  ;;  %p4750_p0 = por %p4749_p12, %p4748_p10 }
  0x9f   : > { %p4751_p2 = pnand %p4750_p0, %p4744_p8 }
  0xa1   : > { %4754 = shalt.err (!%p4751_p2)
}
  0xa2   : > { %4245 = dma.hbm_to_vmem [thread:$0]  (!%p5151_p1), %s695_s25, 16, %s698_s1, %s5163_s20  }
  0xa3   : > { %s4950_s15 = smov [#allocation5]   ;;  %p6030_p6 = scmp.ne.s32.totalorder %s6020_s21, 0 }
  0xa4   : > { %s567_s12 = sshll.u32 %s4950_s15, 4  ;;  %s568_s12 = int_to_ptr.vmem [resolvable:$true] %s567_s12 }
  0xa5   : > { %s4766_s5 = scalar_lea.vmem %s568_s12, 512  ;;  %p6031_p7 = pneg %p6030_p6 }
  0xa6   : > { %p4767_p3 = scmp.ne.s32.totalorder %s568_s12, %s4766_s5  ;;  %p4774_p13 = scmp.lt.s32.totalorder %s568_s12, %s568_s12 }
  0xa7   : > { %p4775_p5 = scmp.lt.s32.totalorder %s4766_s5, %s4766_s5 }
  0xa8   : > { %p4769_p11 = pnand %p4767_p3, %p6031_p7 }
  0xa9   : > { %p4776_p9 = por %p4775_p5, %p4774_p13 }
  0xaa   : > { %p4770_p4 = pneg %p4769_p11 }
  0xac   : > { %p4777_p10 = pnand %p4776_p9, %p4770_p4 }
  0xae   : > { %4780 = shalt.err (!%p4777_p10)
}
  0xaf   : > { %s4951_s7 = smov 128   ;;  %s4952_s25 = smov 8  }
  0xb0   : > { %s6032_s17 = sld [smem:[#allocation28_spill]]  ;;  %s3741_s27 = sshll.u32 %s5131_s3, 2 }
  0xb1   : > { %s3909_s22 = sshll.u32 %s4939_s24, 6  ;;  %s6033_s14 = sld [smem:[#allocation40_spill]] }
  0xb2   : > { %s728_s15 = scalar_lea.vmem [#allocation11], %s3741_s27  ;;  %s4953_s11 = smov [#allocation13]  }
  0xb3   : > { %s736_s5 = sshll.u32 %s728_s15, 4  ;;  %s590_s8 = sshll.u32 %s4953_s11, 4  ;;  %s737_s5 = int_to_ptr.vmem [resolvable:$true] %s736_s5  ;;  %s591_s8 = int_to_ptr.vmem [resolvable:$true] %s590_s8 }
  0xb4   : > { %p6034_p8 = scmp.ne.s32.totalorder %s6024_s28, 0 }
  0xb6   : > { %4226 = dma.hbm_to_vmem [thread:$0]  (!%p6030_p6), %s6032_s17, 512, %s568_s12, [#allocation6], %s4951_s7, %s4951_s7, %s4952_s25  }
  0xb7   : > { %s5284_s23 = scalar_lea.hbm %s6033_s14, %s3909_s22  ;;  %s4786_s25 = scalar_lea.hbm %s6033_s14, 128 }
  0xb8   : > { %s4781_s9 = scalar_lea.hbm %s5284_s23, 64  ;;  %p4787_p2 = scmp.lt.s32.totalorder %s5284_s23, %s6033_s14 }
  0xb9   : > { %p4782_p9 = scmp.ne.s32.totalorder %s5284_s23, %s4781_s9  ;;  %p4788_p3 = scmp.lt.s32.totalorder %s4786_s25, %s4781_s9 }
  0xbb   : > { %p4784_p12 = pnand %p4782_p9, %p6034_p8  ;;  %p4789_p7 = por %p4788_p3, %p4787_p2 }
  0xbd   : > { %p4785_p0 = pneg %p4784_p12 }
  0xbf   : > { %p4790_p11 = pnand %p4789_p7, %p4785_p0 }
  0xc1   : > { %4793 = shalt.err (!%p4790_p11)
}
  0xc2   : > { %s4794_s17 = scalar_lea.vmem %s737_s5, 64  ;;  %s4954_s11 = smov [#allocation11]  }
  0xc3   : > { %p4795_p4 = scmp.ne.s32.totalorder %s737_s5, %s4794_s17  ;;  %s4799_s27 = sshll.u32 %s4954_s11, 4  ;;  %s4800_s27 = int_to_ptr.vmem [resolvable:$false] %s4799_s27 }
  0xc4   : > { %s4801_s22 = scalar_lea.vmem %s4800_s27, 128  ;;  %p4802_p10 = scmp.lt.s32.totalorder %s737_s5, %s4800_s27 }
  0xc5   : > { %p4797_p13 = pnand %p4795_p4, %p6034_p8  ;;  %p4803_p9 = scmp.lt.s32.totalorder %s4801_s22, %s4794_s17 }
  0xc7   : > { %p4798_p5 = pneg %p4797_p13  ;;  %p4804_p12 = por %p4803_p9, %p4802_p10 }
  0xc9   : > { %p4805_p6 = pnand %p4804_p12, %p4798_p5 }
  0xcb   : > { %4808 = shalt.err (!%p4805_p6)
}
  0xcc   : > { %4248 = dma.hbm_to_vmem [thread:$0]  (!%p5151_p1), %s5284_s23, 64, %s737_s5, %s5163_s20  }
  0xcd   : > { %s4820_s9 = scalar_lea.vmem %s591_s8, 16  ;;  %p6035_p2 = scmp.ne.s32.totalorder %s6020_s21, 0 }
  0xce   : > { %p4821_p0 = scmp.ne.s32.totalorder %s591_s8, %s4820_s9  ;;  %s4827_s13 = scalar_lea.vmem %s591_s8, 32 }
  0xcf   : > { %p6036_p3 = pneg %p6035_p2  ;;  %p4828_p4 = scmp.lt.s32.totalorder %s591_s8, %s591_s8 }
  0xd0   : > { %p4829_p13 = scmp.lt.s32.totalorder %s4827_s13, %s4820_s9 }
  0xd1   : > { %p4823_p7 = pnand %p4821_p0, %p6036_p3 }
  0xd2   : > { %p4830_p8 = por %p4829_p13, %p4828_p4 }
  0xd3   : > { %p4824_p11 = pneg %p4823_p7 }
  0xd5   : > { %p4831_p10 = pnand %p4830_p8, %p4824_p11 }
  0xd7   : > { %4834 = shalt.err (!%p4831_p10)
}
  0xd8   : > { %4229 = dma.hbm_to_vmem [thread:$0]  (!%p6035_p2), %s5968_s18, 16, %s591_s8, [#allocation6]  }
  0xd9   : > { %s4955_s23 = smov [#allocation14]   ;;  %s6037_s12 = sshll.u32 %s4939_s24, 4 }
  0xda   : > { %s600_s5 = sshll.u32 %s4955_s23, 4  ;;  %s5316_s1 = scalar_lea.hbm %s5966_s16, %s6037_s12  ;;  %s601_s5 = int_to_ptr.vmem [resolvable:$true] %s600_s5 }
  0xdb   : > { %s4846_s30 = scalar_lea.vmem %s601_s5, 1024  ;;  %p6038_p8 = pmov %p6036_p3 }
  0xdc   : > { %p4847_p6 = scmp.ne.s32.totalorder %s601_s5, %s4846_s30  ;;  %p4854_p12 = scmp.lt.s32.totalorder %s601_s5, %s601_s5 }
  0xdd   : > { %p4855_p0 = scmp.lt.s32.totalorder %s4846_s30, %s4846_s30 }
  0xde   : > { %p4849_p5 = pnand %p4847_p6, %p6038_p8 }
  0xdf   : > { %p4856_p3 = por %p4855_p0, %p4854_p12 }
  0xe0   : > { %p4850_p9 = pneg %p4849_p5 }
  0xe2   : > { %p4857_p7 = pnand %p4856_p3, %p4850_p9 }
  0xe4   : > { %4860 = shalt.err (!%p4857_p7)
}
  0xe5   : > { %4232 = dma.hbm_to_vmem [thread:$0]  (!%p6035_p2), %s5969_s19, 1024, %s601_s5, [#allocation15], %s6028_s6, %s6028_s6, %s6027_s4  }
  0xe6   : > { %s754_s17 = scalar_lea.vmem [#allocation12], %s5131_s3  ;;  %s4861_s27 = scalar_lea.hbm %s5316_s1, 16 }
  0xe7   : > { %s761_s11 = sshll.u32 %s754_s17, 4  ;;  %p4862_p11 = scmp.ne.s32.totalorder %s5316_s1, %s4861_s27  ;;  %s762_s11 = int_to_ptr.vmem [resolvable:$true] %s761_s11 }
  0xe8   : > { %p6039_p4 = scmp.ne.s32.totalorder %s6024_s28, 0  ;;  %s4866_s9 = scalar_lea.hbm %s5966_s16, 32 }
  0xe9   : > { %p4867_p6 = scmp.lt.s32.totalorder %s5316_s1, %s5966_s16  ;;  %p4868_p8 = scmp.lt.s32.totalorder %s4866_s9, %s4861_s27 }
  0xea   : > { %p4864_p13 = pnand %p4862_p11, %p6039_p4 }
  0xeb   : > { %p4869_p5 = por %p4868_p8, %p4867_p6 }
  0xec   : > { %p4865_p10 = pneg %p4864_p13 }
  0xee   : > { %p4870_p9 = pnand %p4869_p5, %p4865_p10 }
  0xf0   : > { %4873 = shalt.err (!%p4870_p9)
}
  0xf1   : > { %s4874_s3 = scalar_lea.vmem %s762_s11, 16  ;;  %s4956_s4 = smov [#allocation12]  }
  0xf2   : > { %p4875_p2 = scmp.ne.s32.totalorder %s762_s11, %s4874_s3  ;;  %s4879_s6 = sshll.u32 %s4956_s4, 4  ;;  %s4880_s6 = int_to_ptr.vmem [resolvable:$false] %s4879_s6 }
  0xf3   : > { %s4881_s15 = scalar_lea.vmem %s4880_s6, 32  ;;  %p4882_p3 = scmp.lt.s32.totalorder %s762_s11, %s4880_s6 }
  0xf4   : > { %p4877_p12 = pnand %p4875_p2, %p6039_p4  ;;  %p4883_p7 = scmp.lt.s32.totalorder %s4881_s15, %s4874_s3 }
  0xf6   : > { %p4878_p0 = pneg %p4877_p12  ;;  %p4884_p11 = por %p4883_p7, %p4882_p3 }
  0xf8   : > { %p4885_p13 = pnand %p4884_p11, %p4878_p0 }
  0xfa   : > { %4888 = shalt.err (!%p4885_p13)
}
  0xfb   : > { %4251 = dma.hbm_to_vmem [thread:$0]  (!%p5151_p1), %s5316_s1, 16, %s762_s11, %s5163_s20  }
  0xfc   : > { %p6040_p10 = scmp.ne.s32.totalorder %s6019_s29, 0 }
  0xfd   : > { %p6041_p4 = scmp.eq.s32.totalorder (!%p6040_p10), %s5087_s2, 0 }
  0xfe   : > { %770 = sbr.rel (%p6040_p10) target bundleno = 4803 (0x12c3), region = 100 }
 0x103   : > { %4906 = dma.done.wait (%p6041_p4), [#allocation4], 1536   ;;  %p6042_p6 = pmov %p6041_p4 }
 0x104   : > { %p6043_p8 = pmov %p6041_p4 }
 0x105   : > { %4908 = vsyncadd (%p6042_p6), [#allocation4], 4294965760 }
 0x106   : > { %4910 = dma.done.wait (%p6043_p8), [#allocation6], 512   ;;  %p6044_p5 = pmov %p6041_p4 }
 0x107   : > { %s6045_s26 = sld [smem:[#allocation21_spill]]  ;;  %s780_s23 = sand.u32 1, %s5087_s2  }
 0x108   : > { %4912 = vsyncadd (%p6044_p5), [#allocation6], 4294966784  ;;  %s6046_s28 = sld [smem:[#allocation25_spill]]  ;;  %s781_s5 = scalar_lea.sflag [#allocation4], %s780_s23 }
 0x10d   : > { %s5359_s20 = sand.u32 1, %s6045_s26  }
 0x10e   : > { %s4190_s29 = smul.u32 192, %s5359_s20  ;;  %p6047_p1 = scmp.ne.s32.totalorder %s6046_s28, 0 }
 0x110   : > { %s5362_s12 = scalar_lea.vmem [#allocation7], %s4190_s29 }
 0x111   : > { %4914 = dma.done.wait (%p6047_p1), %s781_s5, 4240  }
 0x112   : > { %4916 = vsyncadd (%p6047_p1), %s781_s5, 4294963056  ;;  %s4191_s7 = smul.u32 3, %s5359_s20  ;;  %s3748_s25 = sshll.u32 %s5359_s20, 6 }
 0x113   : > { %s3749_s1 = sshll.u32 %s5359_s20, 2  ;;  %s5373_s8 = scalar_lea.vmem [#allocation9], %s3748_s25 }
 0x114   : > { %s5371_s30 = scalar_lea.vmem [#allocation8], %s4191_s7  ;;  %s5376_s17 = scalar_lea.vmem [#allocation11], %s3749_s1 }
 0x115   : > { %p6048_p9 = pmov %p6041_p4 }
 0x116   : > { %p6049_p2 = pmov %p6041_p4 }
 0x117   : > { %4918 = dma.done.wait (%p6048_p9), [#allocation6], 16  }
 0x118   : > { %4920 = vsyncadd (%p6049_p2), [#allocation6], 4294967280  ;;  %p6050_p12 = pmov %p6049_p2 }
 0x119   : > { %p6051_p0 = pmov %p6049_p2 }
 0x11a   : > { %4922 = dma.done.wait (%p6050_p12), [#allocation15], 1024  }
 0x11b   : > { %4924 = vsyncadd (%p6051_p0), [#allocation15], 4294966272  ;;  %p932_p3 = scmp.lt.s32.totalorder %s5087_s2, 1  ;;  %s6053_s4 = sld [smem:[#allocation32_spill]] }
 0x11c   : > { %s6054_s28 = sld [smem:[#allocation37_spill]]  ;;  %p6058_p7 = scmp.ne.s32.totalorder %s5087_s2, 0 }
 0x11d   : > { %s5389_s27 = scalar_select %p932_p3, %s5087_s2, 1 }
 0x11e   : > { %s6055_s7 = sld [smem:[#allocation38_spill]] }
 0x11f   : > { %s3910_s1 = sshll.u32 %s5389_s27, 8  ;;  %s6056_s22 = sld [smem:[#allocation39_spill]] }
 0x120   : > { %s6057_s13 = sld [smem:[#allocation41_spill]] }
 0x121   : > { %s937_s6 = scalar_lea.vmem %s6053_s4, %s5389_s27 }
 0x122   : > { %s940_s23 = scalar_lea.vmem %s6054_s28, %s5389_s27  ;;  %958 = sbr.rel (%p6058_p7) target bundleno = 854 (0x356), region = 144 }
 0x124   : > { %s943_s25 = scalar_lea.vmem %s6055_s7, %s5389_s27  ;;  %s6060_s7 = sld [smem:[#allocation29_spill]] (!%p6058_p7) }
 0x125   : > { %s5411_s24 = scalar_lea.vmem %s6056_s22, %s3910_s1  ;;  %s6061_s22 = sld [smem:[#allocation30_spill]] (!%p6058_p7) }
 0x126   : > { %s5416_s14 = scalar_lea.vmem %s6057_s13, %s3910_s1  ;;  %s6059_s13 = sld [smem:[#allocation26_spill]] (!%p6058_p7) }
 0x127   : > { %v4309_v0 = vld [vmem:[#allocation3 + $0x38] sm:$0xff]   ;;  %v4957_v1 = vmov 0   ;;  %v4310_v2 = vld [vmem:[#allocation3 + $0x30] sm:$0xff]   ;;  %v4311_v3 = vld [vmem:[#allocation3 + $0x28] sm:$0xff]   ;;  %vm1081_vm0 = vcmask 523264  }
 0x128   : > { %1088 = vmatprep.subr.bf16.mxu0 %v4957_v1  ;;  %4154 = vmatprep.subr.bf16.mxu1 %v4957_v1  ;;  %v4312_v4 = vld [vmem:[#allocation3 + $0x20] sm:$0xff]   ;;  %v4313_v6 = vld [vmem:[#allocation3 + $0x18] sm:$0xff]   ;;  %v4314_v8 = vld [vmem:[#allocation3 + $0x10] sm:$0xff]  }
 0x129   : > { %1089 = vmatpush1.bf16.msra.mxu0 %v4309_v0  ;;  %4166 = vmatpush1.bf16.msra.mxu1 %v4309_v0  ;;  %v4315_v9 = vld [vmem:[#allocation3 + $0x8] sm:$0xff]   ;;  %v4316_v10 = vld [vmem:[#allocation3] sm:$0xff]   ;;  %v4317_v11 = vld [vmem:[#allocation3 + $0x58] sm:$0xff]  }
 0x12a   : > { %1090 = vmatprep.subr.bf16.mxu0 %v4957_v1  ;;  %4155 = vmatprep.subr.bf16.mxu1 %v4957_v1  ;;  %v4318_v12 = vld [vmem:[#allocation3 + $0x50] sm:$0xff]   ;;  %v4319_v13 = vld [vmem:[#allocation3 + $0x48] sm:$0xff]   ;;  %v4320_v14 = vld [vmem:[#allocation3 + $0x40] sm:$0xff]  }
 0x12b   : > { %v987_v17 = vld [vmem:[#allocation5] sm:$0xff]  ;;  %v989_v18 = vld [vmem:[#allocation5 + $0x10] sm:$0xff]  ;;  %v988_v25 = vld [vmem:[#allocation5 + $0x8] sm:$0xff] }
 0x12c   : > { %v4323_v5 = vld [vmem:[%s6059_s13 + $0x4] ss:$8 sps:$4 sm:$0xff]   ;;  %v4326_v7 = vld [vmem:[%s6059_s13 + $0x14] ss:$8 sps:$4 sm:$0xff]   ;;  %v4321_v15 = vld [vmem:[%s6059_s13] ss:$8 sps:$4 sm:$0xff]  }
 0x12d   : > { %1091 = vmatpush1.bf16.msra.mxu0 %v4310_v2  ;;  %4167 = vmatpush1.bf16.msra.mxu1 %v4310_v2  ;;  %v4324_v16 = vld [vmem:[%s6059_s13 + $0x10] ss:$8 sps:$4 sm:$0xff]   ;;  %v3775_v62 = vld [vmem:[%s6060_s7] ss:$0 sm:$0xff] }
 0x12e   : > { %1092 = vmatprep.subr.bf16.mxu0 %v4957_v1  ;;  %4156 = vmatprep.subr.bf16.mxu1 %v4957_v1  ;;  %v990_v26 = vld [vmem:[#allocation5 + $0x18] sm:$0xff]  ;;  %v3776_v0 = vld [vmem:[%s6061_s22] ss:$0 sm:$0xff] }
 0x12f   : > { %3773 = vmatprep.mubr.msk.bf16.mxu0 %vm1081_vm0, %v4323_v5  ;;  %3774 = vmatprep.mubr.msk.bf16.mxu1 %vm1081_vm0, %v4326_v7 }
 0x131   : > { %1093 = vmatpush1.bf16.msra.mxu0 %v4311_v3  ;;  %4168 = vmatpush1.bf16.msra.mxu1 %v4311_v3 }
 0x132   : > { %1094 = vmatprep.subr.bf16.mxu0 %v4957_v1  ;;  %4157 = vmatprep.subr.bf16.mxu1 %v4957_v1 }
 0x135   : > { %1095 = vmatpush1.bf16.msra.mxu0 %v4312_v4  ;;  %4169 = vmatpush1.bf16.msra.mxu1 %v4312_v4 }
 0x136   : > { %1096 = vmatprep.subr.bf16.mxu0 %v4957_v1  ;;  %4158 = vmatprep.subr.bf16.mxu1 %v4957_v1 }
 0x139   : > { %1097 = vmatpush1.bf16.msra.mxu0 %v4313_v6  ;;  %4170 = vmatpush1.bf16.msra.mxu1 %v4313_v6 }
 0x13a   : > { %1098 = vmatprep.subr.bf16.mxu0 %v4957_v1  ;;  %4159 = vmatprep.subr.bf16.mxu1 %v4957_v1 }
 0x13d   : > { %1099 = vmatpush1.bf16.msra.mxu0 %v4314_v8  ;;  %4171 = vmatpush1.bf16.msra.mxu1 %v4314_v8 }
 0x13e   : > { %1100 = vmatprep.subr.bf16.mxu0 %v4957_v1  ;;  %4160 = vmatprep.subr.bf16.mxu1 %v4957_v1 }
 0x141   : > { %1101 = vmatpush1.bf16.msra.mxu0 %v4315_v9  ;;  %4172 = vmatpush1.bf16.msra.mxu1 %v4315_v9 }
 0x142   : > { %1102 = vmatprep.subr.bf16.mxu0 %v4957_v1  ;;  %4161 = vmatprep.subr.bf16.mxu1 %v4957_v1 }
 0x145   : > { %1103 = vmatpush1.bf16.msra.mxu0 %v4316_v10  ;;  %4173 = vmatpush1.bf16.msra.mxu1 %v4316_v10 }
 0x146   : > { %1112 = vmatprep.subr.bf16.mxu0 %v4957_v1  ;;  %4162 = vmatprep.subr.bf16.mxu1 %v4957_v1 }
 0x149   : > { %1113 = vmatpush2.bf16.msra.mxu0 %v4317_v11  ;;  %4174 = vmatpush2.bf16.msra.mxu1 %v4317_v11 }
 0x14a   : > { %1114 = vmatprep.subr.bf16.mxu0 %v4957_v1  ;;  %4163 = vmatprep.subr.bf16.mxu1 %v4957_v1 }
 0x14d   : > { %1115 = vmatpush2.bf16.msra.mxu0 %v4318_v12  ;;  %4175 = vmatpush2.bf16.msra.mxu1 %v4318_v12 }
 0x14e   : > { %1116 = vmatprep.subr.bf16.mxu0 %v4957_v1  ;;  %4164 = vmatprep.subr.bf16.mxu1 %v4957_v1 }
 0x151   : > { %1117 = vmatpush2.bf16.msra.mxu0 %v4319_v13  ;;  %4176 = vmatpush2.bf16.msra.mxu1 %v4319_v13 }
 0x152   : > { %1118 = vmatprep.subr.bf16.mxu0 %v4957_v1  ;;  %4165 = vmatprep.subr.bf16.mxu1 %v4957_v1 }
 0x155   : > { %1119 = vmatpush2.bf16.msra.mxu0 %v4320_v14  ;;  %4177 = vmatpush2.bf16.msra.mxu1 %v4320_v14 }
 0x158   : > { %1121 = vmatmul.mubr.bf16.vlgmr.msra.gmra.mxu0 %v4321_v15  ;;  %1129 = vmatmul.mubr.bf16.vlgmr.msra.gmra.mxu1 %v4324_v16 }
 0x218   : > { %v1122_v19 = vpop.f32.mrf.mxu0  ;;  %v1130_v20 = vpop.f32.mrf.mxu1 }
 0x219   : > { %v1123_v21 = vadd.f32 %v1122_v19, %v987_v17  ;;  %v1131_v22 = vadd.f32 %v1130_v20, %v989_v18 }
 0x21a   : > { %v1124_v23 = vpop.f32.mrf.mxu0  ;;  %v1132_v24 = vpop.f32.mrf.mxu1 }
 0x21b   : > { %1143 = vadd.xlane.f32.xlu1 %v1131_v22  ;;  %1139 = vadd.xlane.f32.xlu0 %v1123_v21 }
 0x21c   : > { %v1125_v27 = vpop.f32.mrf.mxu0  ;;  %v1133_v28 = vpop.f32.mrf.mxu1 }
 0x21d   : > { %v1126_v29 = vadd.f32 %v1125_v27, %v988_v25  ;;  %v1134_v30 = vadd.f32 %v1133_v28, %v990_v26 }
 0x21e   : > { %v1127_v31 = vpop.f32.mrf.mxu0  ;;  %v1135_v32 = vpop.f32.mrf.mxu1 }
 0x21f   : > { %1145 = vadd.xlane.f32.xlu1 %v1134_v30  ;;  %1141 = vadd.xlane.f32.xlu0 %v1126_v29 }
 0x2a4   : > { %v1144_v33 = vpop.xlane.xlu1 %1143  ;;  %v1140_v34 = vpop.xlane.xlu0 %1139 }
 0x2a5   : > { %v1150_v35 = vmul.f32 0.0078125, %v1144_v33  ;;  %v1148_v36 = vmul.f32 0.0078125, %v1140_v34 }
 0x2a7   : > { %v1152_v37 = vsub.f32 %v1123_v21, %v1148_v36  ;;  %v1154_v40 = vsub.f32 %v1131_v22, %v1150_v35 }
 0x2a8   : > { %v1146_v38 = vpop.xlane.xlu1 %1145  ;;  %v1142_v39 = vpop.xlane.xlu0 %1141 }
 0x2a9   : > { %v1151_v41 = vmul.f32 0.0078125, %v1146_v38  ;;  %v1149_v42 = vmul.f32 0.0078125, %v1142_v39  ;;  %v1156_v43 = vmul.f32 %v1152_v37, %v1152_v37  ;;  %v1158_v46 = vmul.f32 %v1154_v40, %v1154_v40 }
 0x2ab   : > { %v1153_v44 = vsub.f32 %v1126_v29, %v1149_v42  ;;  %1160 = vadd.xlane.f32.xlu0 %v1156_v43  ;;  %v1155_v45 = vsub.f32 %v1134_v30, %v1151_v41 }
 0x2ad   : > { %v1157_v47 = vmul.f32 %v1153_v44, %v1153_v44  ;;  %v1159_v48 = vmul.f32 %v1155_v45, %v1155_v45 }
 0x2af   : > { %1164 = vadd.xlane.f32.xlu0 %v1158_v46  ;;  %1162 = vadd.xlane.f32.xlu1 %v1157_v47 }
 0x2b3   : > { %1166 = vadd.xlane.f32.xlu1 %v1159_v48 }
 0x334   : > { %v1161_v49 = vpop.xlane.xlu0 %1160 }
 0x335   : > { %v1168_v50 = vmul.f32 0.0078125, %v1161_v49 }
 0x337   : > { %v1172_v51 = vadd.f32 1e-05, %v1168_v50 }
 0x338   : > { %v1163_v52 = vpop.xlane.xlu1 %1162  ;;  %v1165_v53 = vpop.xlane.xlu0 %1164 }
 0x339   : > { %4327 = vrsqrt.f32 %v1172_v51  ;;  %v1169_v54 = vmul.f32 0.0078125, %v1163_v52  ;;  %v1170_v55 = vmul.f32 0.0078125, %v1165_v53 }
 0x33b   : > { %v1173_v56 = vadd.f32 1e-05, %v1169_v54  ;;  %v1174_v57 = vadd.f32 1e-05, %v1170_v55 }
 0x33c   : > { %v1167_v58 = vpop.xlane.xlu1 %1166 }
 0x33d   : > { %4329 = vrsqrt.f32 %v1173_v56  ;;  %v1171_v59 = vmul.f32 0.0078125, %v1167_v58 }
 0x33e   : > { %4331 = vrsqrt.f32 %v1174_v57 }
 0x33f   : > { %v1175_v60 = vadd.f32 1e-05, %v1171_v59 }
 0x341   : > { %4333 = vrsqrt.f32 %v1175_v60 }
 0x346   : > { %v4328_v61 = vpop.eup %4327 }
 0x347   : > { %v1180_v63 = vmul.f32 %v4328_v61, %v1152_v37 }
 0x349   : > { %v1190_v1 = vmul.f32 %v3775_v62, %v1180_v63 }
 0x34a   : > { %v4330_v2 = vpop.eup %4329 }
 0x34b   : > { %v4332_v3 = vpop.eup %4331  ;;  %v1200_v4 = vadd.f32 %v3776_v0, %v1190_v1  ;;  %v1181_v5 = vmul.f32 %v4330_v2, %v1153_v44 }
 0x34c   : > { %v1182_v6 = vmul.f32 %v4332_v3, %v1154_v40 }
 0x34d   : > { %1204 = vst [vmem:[#allocation2 + $0x10] sm:$0xff] %v1200_v4  ;;  %v1191_v7 = vmul.f32 %v3775_v62, %v1181_v5 }
 0x34e   : > { %v4334_v8 = vpop.eup %4333  ;;  %v1192_v9 = vmul.f32 %v3775_v62, %v1182_v6 }
 0x34f   : > { %v1201_v10 = vadd.f32 %v3776_v0, %v1191_v7  ;;  %v1183_v11 = vmul.f32 %v4334_v8, %v1155_v45 }
 0x350   : > { %v1202_v12 = vadd.f32 %v3776_v0, %v1192_v9 }
 0x351   : > { %1205 = vst [vmem:[#allocation2] sm:$0xff] %v1201_v10  ;;  %v1193_v13 = vmul.f32 %v3775_v62, %v1183_v11 }
 0x352   : > { %1206 = vst [vmem:[#allocation2 + $0x18] sm:$0xff] %v1202_v12 }
 0x353   : > { %v1203_v14 = vadd.f32 %v3776_v0, %v1193_v13 }
 0x355   : > { %1207 = vst [vmem:[#allocation2 + $0x8] sm:$0xff] %v1203_v14 }
 0x356 PF: > { %v1208_v15 = vld [vmem:[#allocation2 + $0x10] sm:$0xff]  ;;  %v4365_v19 = vld [vmem:[%s5362_s12 + $0xac] ss:$12 sps:$4 sm:$0xff]   ;;  %v4372_v40 = vld [vmem:[%s5362_s12 + $0x7c] ss:$12 sps:$4 sm:$0xff]   ;;  %v4958_v54 = vmov 0  }
 0x357   : > { %1218 = vadd.xlane.f32.xlu0 %v1208_v15  ;;  %v4367_v20 = vld [vmem:[%s5362_s12 + $0xa8] ss:$12 sps:$4 sm:$0xff]   ;;  %1462 = vmatprep.subr.bf16.mxu0 %v4365_v19  ;;  %v4370_v38 = vld [vmem:[%s5362_s12 + $0xb0] ss:$12 sps:$4 sm:$0xff]   ;;  %v4374_v41 = vld [vmem:[%s5362_s12 + $0x98] ss:$12 sps:$4 sm:$0xff]  }
 0x358   : > { %v1209_v17 = vld [vmem:[#allocation2] sm:$0xff]  ;;  %1463 = vmatpush1.bf16.msra.mxu0 %v4367_v20  ;;  %v4371_v39 = vld [vmem:[%s5362_s12 + $0x90] ss:$12 sps:$4 sm:$0xff]   ;;  %4030 = vmatprep.subr.bf16.mxu1 %v4370_v38  ;;  %v4380_v46 = vld [vmem:[%s5362_s12 + $0x4c] ss:$12 sps:$4 sm:$0xff]   ;;  %s6062_s10 = sld [smem:[#allocation31_spill]] }
 0x359   : > { %v1210_v16 = vld [vmem:[#allocation2 + $0x18] sm:$0xff]  ;;  %v4368_v37 = vld [vmem:[%s5362_s12 + $0x94] ss:$12 sps:$4 sm:$0xff]   ;;  %4031 = vmatpush3.bf16.msra.mxu1 %v4370_v38  ;;  %v4376_v43 = vld [vmem:[%s5362_s12 + $0x64] ss:$12 sps:$4 sm:$0xff]   ;;  %1494 = vmatprep.mubr.bf16.mxu0 %v4958_v54  ;;  %vm1570_vm1 = vcmask 261120  }
 0x35a   : > { %1222 = vadd.xlane.f32.xlu1 %v1210_v16  ;;  %1464 = vmatprep.subr.bf16.mxu0 %v4368_v37  ;;  %v4375_v42 = vld [vmem:[%s5362_s12 + $0x78] ss:$12 sps:$4 sm:$0xff]   ;;  %v4378_v44 = vld [vmem:[%s5362_s12 + $0x80] ss:$12 sps:$4 sm:$0xff]   ;;  %v4382_v47 = vld [vmem:[%s5362_s12 + $0x68] ss:$12 sps:$4 sm:$0xff]  }
 0x35b   : > { %1220 = vadd.xlane.f32.xlu0 %v1209_v17  ;;  %4032 = vmatprep.subr.bf16.mxu1 %v4374_v41  ;;  %v4379_v45 = vld [vmem:[%s5362_s12 + $0x60] ss:$12 sps:$4 sm:$0xff]   ;;  %v4383_v48 = vld [vmem:[%s5362_s12 + $0x48] ss:$12 sps:$4 sm:$0xff]   ;;  %v4386_v50 = vld [vmem:[%s5362_s12 + $0x50] ss:$12 sps:$4 sm:$0xff]  }
 0x35c   : > { %v1211_v18 = vld [vmem:[#allocation2 + $0x8] sm:$0xff]  ;;  %1465 = vmatpush1.bf16.msra.mxu0 %v4371_v39  ;;  %v4384_v49 = vld [vmem:[%s5362_s12 + $0x34] ss:$12 sps:$4 sm:$0xff]   ;;  %v4387_v51 = vld [vmem:[%s5362_s12 + $0x30] ss:$12 sps:$4 sm:$0xff]   ;;  %s4962_s15 = smov 32  }
 0x35d   : > { %1466 = vmatprep.subr.bf16.mxu0 %v4372_v40  ;;  %4033 = vmatpush3.bf16.msra.mxu1 %v4374_v41  ;;  %v4388_v52 = vld [vmem:[%s5362_s12 + $0x1c] ss:$12 sps:$4 sm:$0xff]   ;;  %v4390_v53 = vld [vmem:[%s5362_s12 + $0x38] ss:$12 sps:$4 sm:$0xff]   ;;  %v4394_v57 = vld [vmem:[%s5362_s12 + $0x20] ss:$12 sps:$4 sm:$0xff]  }
 0x35e   : > { %1224 = vadd.xlane.f32.xlu1 %v1211_v18  ;;  %4034 = vmatprep.subr.bf16.mxu1 %v4378_v44  ;;  %v4391_v55 = vld [vmem:[%s5362_s12 + $0x18] ss:$12 sps:$4 sm:$0xff]   ;;  %v4395_v58 = vld [vmem:[%s5362_s12] ss:$12 sps:$4 sm:$0xff]   ;;  %v4396_v59 = vld [vmem:[%s5362_s12 + $0x8] ss:$12 sps:$4 sm:$0xff]   ;;  %s6063_s11 = scalar_lea.vmem %s6062_s10, %s5389_s27 }
 0x35f   : > { %v4392_v56 = vld [vmem:[%s5362_s12 + $0x4] ss:$12 sps:$4 sm:$0xff]   ;;  %v3777_v10 = vld [vmem:[%s6063_s11] ss:$0 sm:$0xff]  ;;  %vm2319_vm3 = vcmask 523264   ;;  %vm2324_vm4 = vcmask 785408  }
 0x360   : > { %1467 = vmatpush1.bf16.msra.mxu0 %v4375_v42  ;;  %p3895_p11 = scmp.ne.s32.totalorder %s5087_s2, 1 }
 0x361   : > { %1468 = vmatprep.subr.bf16.mxu0 %v4376_v43  ;;  %4035 = vmatpush3.bf16.msra.mxu1 %v4378_v44 }
 0x362   : > { %4036 = vmatprep.subr.bf16.mxu1 %v4382_v47 }
 0x364   : > { %1469 = vmatpush1.bf16.msra.mxu0 %v4379_v45 }
 0x365   : > { %1470 = vmatprep.subr.bf16.mxu0 %v4380_v46  ;;  %4037 = vmatpush3.bf16.msra.mxu1 %v4382_v47 }
 0x366   : > { %4038 = vmatprep.subr.bf16.mxu1 %v4386_v50 }
 0x368   : > { %1471 = vmatpush1.bf16.msra.mxu0 %v4383_v48 }
 0x369   : > { %1472 = vmatprep.subr.bf16.mxu0 %v4384_v49  ;;  %4039 = vmatpush3.bf16.msra.mxu1 %v4386_v50 }
 0x36a   : > { %4040 = vmatprep.subr.bf16.mxu1 %v4390_v53 }
 0x36c   : > { %1473 = vmatpush1.bf16.msra.mxu0 %v4387_v51 }
 0x36d   : > { %1474 = vmatprep.subr.bf16.mxu0 %v4388_v52  ;;  %4041 = vmatpush3.bf16.msra.mxu1 %v4390_v53 }
 0x36e   : > { %4042 = vmatprep.subr.bf16.mxu1 %v4394_v57 }
 0x370   : > { %1475 = vmatpush1.bf16.msra.mxu0 %v4391_v55 }
 0x371   : > { %1476 = vmatprep.subr.bf16.mxu0 %v4392_v56  ;;  %4043 = vmatpush3.bf16.msra.mxu1 %v4394_v57 }
 0x372   : > { %4044 = vmatprep.subr.bf16.mxu1 %v4396_v59 }
 0x374   : > { %1477 = vmatpush1.bf16.msra.mxu0 %v4395_v58 }
 0x375   : > { %4045 = vmatpush3.bf16.msra.mxu1 %v4396_v59 }
 0x3e0   : > { %v1219_v21 = vpop.xlane.xlu0 %1218 }
 0x3e1   : > { %v1227_v23 = vmul.f32 0.0078125, %v1219_v21 }
 0x3e3   : > { %v1223_v22 = vpop.xlane.xlu1 %1222  ;;  %v5440_v25 = vsub.f32 %v1208_v15, %v1227_v23  ;;  %v3778_v15 = vld [vmem:[%s937_s6] ss:$0 sm:$0xff]  ;;  %s4961_s6 = smov 64  }
 0x3e4   : > { %v1229_v24 = vmul.f32 0.0078125, %v1223_v22  ;;  %v1221_v27 = vpop.xlane.xlu0 %1220 }
 0x3e5   : > { %v1228_v29 = vmul.f32 0.0078125, %v1221_v27  ;;  %v1235_v30 = vmul.f32 %v5440_v25, %v5440_v25 }
 0x3e6   : > { %v5442_v26 = vsub.f32 %v1210_v16, %v1229_v24 }
 0x3e7   : > { %v1225_v28 = vpop.xlane.xlu1 %1224  ;;  %v5446_v32 = vsub.f32 %v1209_v17, %v1228_v29  ;;  %1239 = vadd.xlane.f32.xlu0 %v1235_v30 }
 0x3e8   : > { %v1230_v31 = vmul.f32 0.0078125, %v1225_v28  ;;  %v1237_v34 = vmul.f32 %v5442_v26, %v5442_v26 }
 0x3e9   : > { %v1236_v35 = vmul.f32 %v5446_v32, %v5446_v32 }
 0x3ea   : > { %v5448_v33 = vsub.f32 %v1211_v18, %v1230_v31  ;;  %v1317_v31 = vld [vmem:[%s5371_s30] sm:$0x7]  ;;  %s4960_s30 = smov 96  }
 0x3eb   : > { %1243 = vadd.xlane.f32.xlu0 %v1237_v34  ;;  %1241 = vadd.xlane.f32.xlu1 %v1236_v35 }
 0x3ec   : > { %v1238_v36 = vmul.f32 %v5448_v33, %v5448_v33 }
 0x3ef   : > { %1245 = vadd.xlane.f32.xlu1 %v1238_v36 }
 0x470   : > { %v1240_v60 = vpop.xlane.xlu0 %1239 }
 0x471   : > { %v1247_v61 = vmul.f32 0.0078125, %v1240_v60 }
 0x473   : > { %v1251_v62 = vadd.f32 1e-05, %v1247_v61 }
 0x474   : > { %v1242_v63 = vpop.xlane.xlu1 %1241  ;;  %v1244_v0 = vpop.xlane.xlu0 %1243 }
 0x475   : > { %4485 = vrsqrt.f32 %v1251_v62  ;;  %v1248_v1 = vmul.f32 0.0078125, %v1242_v63  ;;  %v1249_v2 = vmul.f32 0.0078125, %v1244_v0 }
 0x477   : > { %v1252_v3 = vadd.f32 1e-05, %v1248_v1  ;;  %v1253_v4 = vadd.f32 1e-05, %v1249_v2 }
 0x478   : > { %v1246_v5 = vpop.xlane.xlu1 %1245 }
 0x479   : > { %4487 = vrsqrt.f32 %v1252_v3  ;;  %v1250_v6 = vmul.f32 0.0078125, %v1246_v5 }
 0x47a   : > { %4489 = vrsqrt.f32 %v1253_v4 }
 0x47b   : > { %v1254_v7 = vadd.f32 1e-05, %v1250_v6 }
 0x47d   : > { %4491 = vrsqrt.f32 %v1254_v7 }
 0x482   : > { %v4486_v8 = vpop.eup %4485 }
 0x483   : > { %v1259_v9 = vmul.f32 %v4486_v8, %v5440_v25  ;;  %v4959_v8 = vmov -1e+30  }
 0x485   : > { %v1269_v14 = vmul.f32 %v3777_v10, %v1259_v9 }
 0x486   : > { %v4488_v11 = vpop.eup %4487 }
 0x487   : > { %v4490_v12 = vpop.eup %4489  ;;  %v1260_v13 = vmul.f32 %v4488_v11, %v5446_v32  ;;  %v1279_v19 = vadd.f32 %v3778_v15, %v1269_v14 }
 0x488   : > { %v1261_v16 = vmul.f32 %v4490_v12, %v5442_v26  ;;  %v1212_v26 = vlaneseq }
 0x489   : > { %v1270_v17 = vmul.f32 %v3777_v10, %v1260_v13 }
 0x48a   : > { %v4492_v18 = vpop.eup %4491  ;;  %v1271_v22 = vmul.f32 %v3777_v10, %v1261_v16  ;;  %v5494_v29 = vshrl.u32 %v1212_v26, 7  ;;  %v1213_v6 = vand.u32 127, %v1212_v26 }
 0x48b   : > { %v1280_v20 = vadd.f32 %v3778_v15, %v1270_v17  ;;  %v1262_v21 = vmul.f32 %v4492_v18, %v5448_v33 }
 0x48c   : > { %v1281_v25 = vadd.f32 %v3778_v15, %v1271_v22  ;;  %v1321_v30 = vsub.s32 0, %v5494_v29  ;;  %v1329_v34 = vsub.s32 2, %v5494_v29  ;;  %v1325_v46 = vsub.s32 1, %v5494_v29 }
 0x48d   : > { %v1283_v23 = vpack.c.bf16 %v1280_v20, %v1279_v19  ;;  %v1272_v24 = vmul.f32 %v3777_v10, %v1262_v21  ;;  %vm1214_vm2 = vcmp.lt.s32.totalorder %v1213_v6, 17 }
 0x48e   : > { %v1322_v33 = vrot.slane %v1317_v31, %v1321_v30  ;;  %v1330_v40 = vrot.slane %v1317_v31, %v1329_v34  ;;  %v1326_v56 = vrot.slane %v1317_v31, %v1325_v46  ;;  %v5534_v9 = vsel %vm1214_vm2, 0.0, %v4959_v8 }
 0x48f   : > { %1495 = vmatmul.mubr.bf16.vlgmr.msra.gmra.mxu0 %v1283_v23  ;;  %4046 = vmatprep.mubr.bf16.mxu1 %v1283_v23  ;;  %v1282_v27 = vadd.f32 %v3778_v15, %v1272_v24 }
 0x490   : > { %1504 = vmatprep.mubr.bf16.mxu0 %v4958_v54 }
 0x491   : > { %v1284_v28 = vpack.c.bf16 %v1282_v27, %v1281_v25 }
 0x493   : > { %4047 = vmatmul.mubr.bf16.vlgmr.msra.gmra.mxu1 %v1284_v28 }
 0x497   : > { %1505 = vmatmul.mubr.bf16.gmra.mxu0 %v1284_v28 }
 0x54f   : > { %v1496_v32 = vpop.f32.mrf.mxu0 }
 0x550   : > { %v1497_v38 = vadd.f32 %v1496_v32, %v1322_v33 }
 0x551   : > { %v1498_v35 = vpop.f32.mrf.mxu0 }
 0x552   : > { %v1499_v62 = vadd.f32 %v1498_v35, %v1326_v56 }
 0x553   : > { %v1500_v36 = vpop.f32.mrf.mxu0  ;;  %v4048_v37 = vpop.f32.mrf.mxu1 }
 0x554   : > { %v1501_v39 = vadd.f32 %v1500_v36, %v1322_v33  ;;  %v1558_v47 = vadd.f32 %v4048_v37, %v1330_v40 }
 0x555   : > { %v1502_v41 = vpop.f32.mrf.mxu0  ;;  %v1549_v42 = vpop.f32.mrf.mxu1 }
 0x556   : > { %v5503_v43 = vpack.c.bf16 %v1501_v39, %v1497_v38  ;;  %v1550_v51 = vadd.f32 %v1549_v42, %v1330_v40  ;;  %v1503_v59 = vadd.f32 %v1502_v41, %v1326_v56 }
 0x557   : > { %v1506_v44 = vpop.f32.mrf.mxu0  ;;  %v4049_v45 = vpop.f32.mrf.mxu1 }
 0x558   : > { %v1561_v48 = vadd.f32 %v4049_v45, %v1330_v40  ;;  %4054 = vmatprep.mubr.msk.bf16.mxu0 %vm1570_vm1, %v5503_v43  ;;  %v5520_v0 = vpack.c.bf16 %v1503_v59, %v1499_v62  ;;  %v1507_v4 = vadd.f32 %v1506_v44, %v1322_v33 }
 0x559   : > { %v1508_v49 = vpop.f32.mrf.mxu0  ;;  %v1552_v50 = vpop.f32.mrf.mxu1 }
 0x55a   : > { %v5508_v52 = vpack.c.bf16 %v1561_v48, %v1558_v47  ;;  %v1553_v53 = vadd.f32 %v1552_v50, %v1330_v40  ;;  %v1509_v60 = vadd.f32 %v1508_v49, %v1326_v56  ;;  %v1578_v2 = vsel %vm1570_vm1, %v5520_v0, 0 }
 0x55b   : > { %v1510_v55 = vpop.f32.mrf.mxu0 }
 0x55c   : > { %v5512_v57 = vpack.c.bf16 %v1553_v53, %v1550_v51  ;;  %4058 = vmatprep.subr.bf16.mxu1 %v5508_v52  ;;  %v1511_v3 = vadd.f32 %v1510_v55, %v1322_v33 }
 0x55d   : > { %v1512_v58 = vpop.f32.mrf.mxu0  ;;  %4059 = vmatpush3.bf16.msra.mxu1 %v5508_v52 }
 0x55e   : > { %v1513_v61 = vadd.f32 %v1512_v58, %v1326_v56  ;;  %4060 = vmatprep.subr.bf16.mxu1 %v5512_v57  ;;  %v5530_v5 = vpack.c.bf16 %v1511_v3, %v1507_v4 }
 0x560   : > { %v5517_v63 = vpack.c.bf16 %v1513_v61, %v1509_v60 }
 0x561   : > { %4061 = vmatpush3.bf16.msra.mxu1 %v5512_v57 }
 0x562   : > { %4178 = vmatprep.subr.msk.bf16.mxu0 %vm1570_vm1, %v5517_v63  ;;  %v1581_v1 = vsel %vm1570_vm1, %v5517_v63, 0 }
 0x563   : > { %4051 = vmatpush3.bf16.xpose.msra.mxu0 %v1581_v1 }
 0x564   : > { %4179 = vmatprep.subr.msk.bf16.mxu0 %vm1570_vm1, %v5520_v0 }
 0x56b   : > { %4053 = vmatpush3.bf16.xpose.msra.mxu0 %v1578_v2 }
 0x572   : > { %4055 = vmatmul.mubr.msk.bf16.vlgmr.msra.gmra.mxu0 %vm1570_vm1, %v5530_v5 }
 0x632   : > { %v4056_v7 = vpop.f32.mrf.mxu0 }
 0x633   : > { %v1626_v13 = vadd.f32 %v4056_v7, %v5534_v9 }
 0x634   : > { %v1617_v10 = vpop.f32.mrf.mxu0 }
 0x635   : > { %v1618_v11 = vadd.f32 %v1617_v10, %v5534_v9  ;;  %v1638_v19 = vsel %vm1570_vm1, %v1626_v13, -inf }
 0x636   : > { %v4057_v12 = vpop.f32.mrf.mxu0 }
 0x637   : > { %v1632_v14 = vsel %vm1570_vm1, %v1618_v11, -inf  ;;  %v1629_v17 = vadd.f32 %v4057_v12, %v5534_v9 }
 0x638   : > { %v1620_v15 = vpop.f32.mrf.mxu0  ;;  %1633 = vmax.xlane.f32.xlu0 %v1632_v14 }
 0x639   : > { %v1621_v16 = vadd.f32 %v1620_v15, %v5534_v9  ;;  %v1641_v20 = vsel %vm1570_vm1, %v1629_v17, -inf }
 0x63b   : > { %v1635_v18 = vsel %vm1570_vm1, %v1621_v16, -inf }
 0x63c   : > { %1636 = vmax.xlane.f32.xlu1 %v1635_v18  ;;  %1639 = vmax.xlane.f32.xlu0 %v1638_v19 }
 0x640   : > { %1642 = vmax.xlane.f32.xlu1 %v1641_v20 }
 0x6c1   : > { %v1634_v21 = vpop.xlane.xlu0 %1633 }
 0x6c2   : > { %v1644_v22 = vsub.f32 %v1618_v11, %v1634_v21 }
 0x6c4   : > { %v1648_v31 = vmul.f32 1.442695, %v1644_v22 }
 0x6c5   : > { %v1637_v23 = vpop.xlane.xlu1 %1636  ;;  %v1640_v24 = vpop.xlane.xlu0 %1639 }
 0x6c6   : > { %v1645_v25 = vsub.f32 %v1621_v16, %v1637_v23  ;;  %v1646_v27 = vsub.f32 %v1626_v13, %v1640_v24 }
 0x6c8   : > { %v1650_v28 = vmul.f32 1.442695, %v1645_v25  ;;  %v1652_v26 = vmul.f32 1.442695, %v1646_v27 }
 0x6c9   : > { %v1643_v32 = vpop.xlane.xlu1 %1642 }
 0x6ca   : > { %4493 = vpow2.f32 %v1650_v28  ;;  %v1647_v33 = vsub.f32 %v1629_v17, %v1643_v32 }
 0x6cb   : > { %4495 = vpow2.f32 %v1652_v26 }
 0x6cc   : > { %v1654_v35 = vmul.f32 1.442695, %v1647_v33  ;;  %4497 = vpow2.f32 %v1648_v31 }
 0x6ce   : > { %4499 = vpow2.f32 %v1654_v35 }
 0x6d7   : > { %v4494_v36 = vpop.eup %4493 }
 0x6d8   : > { %v4496_v37 = vpop.eup %4495  ;;  %v1659_v38 = vsel %vm1570_vm1, %v4494_v36, 0.0 }
 0x6d9   : > { %1660 = vadd.xlane.f32.xlu1 %v1659_v38  ;;  %v1662_v39 = vsel %vm1570_vm1, %v4496_v37, 0.0  ;;  %v4498_v40 = vpop.eup %4497 }
 0x6da   : > { %1663 = vadd.xlane.f32.xlu0 %v1662_v39  ;;  %v1656_v44 = vsel %vm1570_vm1, %v4498_v40, 0.0 }
 0x6db   : > { %v4500_v41 = vpop.eup %4499 }
 0x6dc   : > { %v1665_v42 = vsel %vm1570_vm1, %v4500_v41, 0.0 }
 0x6dd   : > { %1666 = vadd.xlane.f32.xlu1 %v1665_v42 }
 0x6de   : > { %1657 = vadd.xlane.f32.xlu0 %v1656_v44 }
 0x6ee   : > { %1741 = vrot.lane.b32.xlu1 %v5520_v0, %s4960_s30 }
 0x6f2   : > { %1735 = vrot.lane.b32.xlu1 %v5503_v43, %s4960_s30 }
 0x6f4   : > { %1743 = vrot.lane.b32.xlu0 %v5517_v63, %s4960_s30 }
 0x6f6   : > { %1921 = vrot.lane.b32.xlu1 %v5517_v63, %s4961_s6 }
 0x6f8   : > { %1737 = vrot.lane.b32.xlu0 %v5530_v5, %s4960_s30 }
 0x6fa   : > { %1919 = vrot.lane.b32.xlu1 %v5520_v0, %s4961_s6 }
 0x6fc   : > { %1915 = vrot.lane.b32.xlu0 %v5503_v43, %s4961_s6 }
 0x6fe   : > { %1917 = vrot.lane.b32.xlu1 %v5530_v5, %s4961_s6 }
 0x762   : > { %v1661_v45 = vpop.xlane.xlu1 %1660 }
 0x763   : > { %v1664_v47 = vpop.xlane.xlu0 %1663 }
 0x764   : > { %4501 = vrcp.f32 %v1664_v47 }
 0x765   : > { %4503 = vrcp.f32 %v1661_v45 }
 0x766   : > { %v1667_v48 = vpop.xlane.xlu1 %1666 }
 0x767   : > { %4505 = vrcp.f32 %v1667_v48  ;;  %v1658_v49 = vpop.xlane.xlu0 %1657 }
 0x768   : > { %4507 = vrcp.f32 %v1658_v49 }
 0x76a   : > { %v1742_v58 = vpop.permute.xlu1 %1741 }
 0x76b   : > { %v1744_v50 = vpop.permute.xlu0 %1743  ;;  %v1752_v6 = vsel %vm1570_vm1, %v1742_v58, 0 }
 0x76c   : > { %4180 = vmatprep.subr.msk.bf16.mxu1 %vm1570_vm1, %v1744_v50  ;;  %v1755_v3 = vsel %vm1570_vm1, %v1744_v50, 0 }
 0x76e   : > { %v1736_v4 = vpop.permute.xlu1 %1735 }
 0x76f   : > { %v1738_v8 = vpop.permute.xlu0 %1737 }
 0x771   : > { %v4502_v51 = vpop.eup %4501 }
 0x772   : > { %v4504_v53 = vpop.eup %4503  ;;  %v1674_v59 = vmul.f32 %v4502_v51, %v4496_v37  ;;  %v1922_v7 = vpop.permute.xlu1 %1921 }
 0x773   : > { %v1673_v62 = vmul.f32 %v4504_v53, %v4494_v36  ;;  %v1933_v10 = vsel %vm1570_vm1, %v1922_v7, 0  ;;  %v1916_v11 = vpop.permute.xlu0 %1915 }
 0x774   : > { %v4506_v55 = vpop.eup %4505 }
 0x775   : > { %v4508_v56 = vpop.eup %4507  ;;  %v1675_v60 = vmul.f32 %v4506_v55, %v4500_v41 }
 0x776   : > { %v1672_v61 = vmul.f32 %v4508_v56, %v4498_v40  ;;  %v1920_v12 = vpop.permute.xlu1 %1919 }
 0x777   : > { %v1677_v1 = vpack.c.bf16 %v1675_v60, %v1674_v59  ;;  %v1930_v13 = vsel %vm1570_vm1, %v1920_v12, 0 }
 0x778   : > { %v1676_v2 = vpack.c.bf16 %v1673_v62, %v1672_v61 }
 0x77a   : > { %4062 = vmatprep.mubr.msk.bf16.mxu1 %vm1570_vm1, %v1676_v2  ;;  %v1918_v14 = vpop.permute.xlu1 %1917 }
 0x77b   : > { %4063 = vmatmul.mubr.msk.bf16.vlgmr.msra.gmra.mxu1 %vm1570_vm1, %v1677_v1 }
 0x77c   : > { %4067 = vmatpush3.bf16.xpose.msra.mxu1 %v1755_v3  ;;  %4070 = vmatprep.mubr.msk.bf16.mxu1 %vm1570_vm1, %v1736_v4 }
 0x77d   : > { %4181 = vmatprep.subr.msk.bf16.mxu1 %vm1570_vm1, %v1742_v58 }
 0x784   : > { %4069 = vmatpush3.bf16.xpose.msra.mxu1 %v1752_v6 }
 0x785   : > { %4182 = vmatprep.subr.msk.bf16.mxu1 %vm1570_vm1, %v1922_v7 }
 0x78b   : > { %4071 = vmatmul.mubr.msk.bf16.vlgmr.msra.gmra.mxu1 %vm1570_vm1, %v1738_v8 }
 0x78c   : > { %4083 = vmatpush3.bf16.xpose.msra.mxu1 %v1933_v10  ;;  %4086 = vmatprep.mubr.msk.bf16.mxu1 %vm1570_vm1, %v1916_v11 }
 0x78d   : > { %4183 = vmatprep.subr.msk.bf16.mxu1 %vm1570_vm1, %v1920_v12 }
 0x794   : > { %4085 = vmatpush3.bf16.xpose.msra.mxu1 %v1930_v13 }
 0x79b   : > { %4087 = vmatmul.mubr.msk.bf16.vlgmr.msra.gmra.mxu1 %vm1570_vm1, %v1918_v14 }
 0x83b   : > { %v5578_v15 = vpop.f32.mrf.mxu1 }
 0x83d   : > { %v5580_v16 = vpop.f32.mrf.mxu1 }
 0x83f   : > { %v5582_v17 = vpop.f32.mrf.mxu1 }
 0x841   : > { %v5584_v18 = vpop.f32.mrf.mxu1 }
 0x84b   : > { %v4072_v19 = vpop.f32.mrf.mxu1 }
 0x84c   : > { %v5612_v2 = vadd.f32 %v4072_v19, %v5534_v9 }
 0x84d   : > { %v1791_v20 = vpop.f32.mrf.mxu1 }
 0x84e   : > { %v1792_v1 = vadd.f32 %v1791_v20, %v5534_v9 }
 0x84f   : > { %v4073_v21 = vpop.f32.mrf.mxu1 }
 0x850   : > { %v1806_v3 = vsel %vm1570_vm1, %v1792_v1, -inf  ;;  %v5619_v4 = vadd.f32 %v4073_v21, %v5534_v9 }
 0x851   : > { %v1794_v22 = vpop.f32.mrf.mxu1 }
 0x85b   : > { %v4088_v23 = vpop.f32.mrf.mxu1 }
 0x85c   : > { %v1978_v28 = vadd.f32 %v4088_v23, %v5534_v9 }
 0x85d   : > { %v1969_v24 = vpop.f32.mrf.mxu1 }
 0x85e   : > { %v1970_v25 = vadd.f32 %v1969_v24, %v5534_v9  ;;  %v1990_v36 = vsel %vm1570_vm1, %v1978_v28, -inf }
 0x85f   : > { %v4089_v27 = vpop.f32.mrf.mxu1 }
 0x860   : > { %v1984_v26 = vsel %vm1570_vm1, %v1970_v25, -inf  ;;  %v1981_v33 = vadd.f32 %v4089_v27, %v5534_v9 }
 0x861   : > { %v1972_v31 = vpop.f32.mrf.mxu1  ;;  %1985 = vmax.xlane.f32.xlu0 %v1984_v26 }
 0x862   : > { %v1973_v32 = vadd.f32 %v1972_v31, %v5534_v9  ;;  %v1993_v37 = vsel %vm1570_vm1, %v1981_v33, -inf }
 0x864   : > { %v1987_v35 = vsel %vm1570_vm1, %v1973_v32, -inf }
 0x865   : > { %1988 = vmax.xlane.f32.xlu1 %v1987_v35  ;;  %1991 = vmax.xlane.f32.xlu0 %v1990_v36 }
 0x869   : > { %1994 = vmax.xlane.f32.xlu0 %v1993_v37 }
 0x876   : > { %2030 = vrot.lane.b32.xlu1 %v5512_v57, %s4961_s6 }
 0x8ea   : > { %v1986_v38 = vpop.xlane.xlu0 %1985 }
 0x8eb   : > { %v1996_v39 = vsub.f32 %v1970_v25, %v1986_v38 }
 0x8ed   : > { %v2000_v47 = vmul.f32 1.442695, %v1996_v39 }
 0x8ee   : > { %v1989_v40 = vpop.xlane.xlu1 %1988  ;;  %v1992_v41 = vpop.xlane.xlu0 %1991 }
 0x8ef   : > { %v1998_v42 = vsub.f32 %v1978_v28, %v1992_v41  ;;  %v1997_v44 = vsub.f32 %v1973_v32, %v1989_v40 }
 0x8f1   : > { %v2004_v45 = vmul.f32 1.442695, %v1998_v42  ;;  %v2002_v50 = vmul.f32 1.442695, %v1997_v44 }
 0x8f2   : > { %v1995_v48 = vpop.xlane.xlu0 %1994  ;;  %v2031_v6 = vpop.permute.xlu1 %2030 }
 0x8f3   : > { %v1999_v49 = vsub.f32 %v1981_v33, %v1995_v48  ;;  %4509 = vpow2.f32 %v2004_v45 }
 0x8f4   : > { %4511 = vpow2.f32 %v2000_v47 }
 0x8f5   : > { %v2006_v51 = vmul.f32 1.442695, %v1999_v49 }
 0x8f7   : > { %4513 = vpow2.f32 %v2006_v51 }
 0x8f8   : > { %4515 = vpow2.f32 %v2002_v50 }
 0x900   : > { %v4510_v53 = vpop.eup %4509 }
 0x901   : > { %v2014_v55 = vsel %vm1570_vm1, %v4510_v53, 0.0  ;;  %v4512_v56 = vpop.eup %4511 }
 0x902   : > { %2015 = vadd.xlane.f32.xlu0 %v2014_v55  ;;  %v2008_v61 = vsel %vm1570_vm1, %v4512_v56, 0.0 }
 0x904   : > { %v4514_v58 = vpop.eup %4513 }
 0x905   : > { %v2017_v59 = vsel %vm1570_vm1, %v4514_v58, 0.0  ;;  %v4516_v60 = vpop.eup %4515 }
 0x906   : > { %2018 = vadd.xlane.f32.xlu1 %v2017_v59  ;;  %2009 = vadd.xlane.f32.xlu0 %v2008_v61  ;;  %v2011_v62 = vsel %vm1570_vm1, %v4516_v60, 0.0 }
 0x90a   : > { %2012 = vadd.xlane.f32.xlu1 %v2011_v62 }
 0x91b   : > { %2097 = vrot.lane.b32.xlu1 %v5517_v63, %s4962_s15  ;;  %v5616_v63 = vadd.f32 %v1794_v22, %v5534_v9 }
 0x91c   : > { %2032 = vrot.lane.b32.xlu0 %v5508_v52, %s4961_s6 }
 0x91f   : > { %2095 = vrot.lane.b32.xlu1 %v5520_v0, %s4962_s15  ;;  %v1809_v0 = vsel %vm1570_vm1, %v5616_v63, -inf }
 0x920   : > { %2091 = vrot.lane.b32.xlu0 %v5503_v43, %s4962_s15  ;;  %v1812_v43 = vsel %vm1570_vm1, %v5612_v2, -inf }
 0x923   : > { %2093 = vrot.lane.b32.xlu1 %v5530_v5, %s4962_s15  ;;  %v1815_v5 = vsel %vm1570_vm1, %v5619_v4, -inf }
 0x93f   : > { %1807 = vmax.xlane.f32.xlu0 %v1806_v3 }
 0x943   : > { %1813 = vmax.xlane.f32.xlu0 %v1812_v43 }
 0x947   : > { %1810 = vmax.xlane.f32.xlu1 %v1809_v0  ;;  %1816 = vmax.xlane.f32.xlu0 %v1815_v5 }
 0x98b   : > { %v2016_v7 = vpop.xlane.xlu0 %2015 }
 0x98f   : > { %v2019_v8 = vpop.xlane.xlu1 %2018  ;;  %v2010_v10 = vpop.xlane.xlu0 %2009 }
 0x990   : > { %4517 = vrcp.f32 %v2019_v8 }
 0x991   : > { %4519 = vrcp.f32 %v2010_v10 }
 0x992   : > { %4521 = vrcp.f32 %v2016_v7 }
 0x993   : > { %v2013_v11 = vpop.xlane.xlu1 %2012  ;;  %v2033_v12 = vpop.permute.xlu0 %2032 }
 0x994   : > { %4523 = vrcp.f32 %v2013_v11  ;;  %4090 = vmatprep.subr.bf16.mxu1 %v2033_v12 }
 0x995   : > { %4091 = vmatpush3.bf16.msra.mxu1 %v2033_v12 }
 0x996   : > { %4092 = vmatprep.subr.bf16.mxu1 %v2031_v6 }
 0x997   : > { %v2098_v13 = vpop.permute.xlu1 %2097  ;;  %v2092_v31 = vpop.permute.xlu0 %2091 }
 0x998   : > { %v2109_v26 = vsel %vm1570_vm1, %v2098_v13, 0 }
 0x999   : > { %4093 = vmatpush3.bf16.msra.mxu1 %v2031_v6 }
 0x99a   : > { %4184 = vmatprep.subr.msk.bf16.mxu1 %vm1570_vm1, %v2098_v13 }
 0x99b   : > { %v2096_v32 = vpop.permute.xlu1 %2095 }
 0x99c   : > { %v2106_v33 = vsel %vm1570_vm1, %v2096_v32, 0 }
 0x99d   : > { %v4518_v14 = vpop.eup %4517 }
 0x99e   : > { %v4520_v19 = vpop.eup %4519  ;;  %v2027_v22 = vmul.f32 %v4518_v14, %v4514_v58 }
 0x99f   : > { %v4522_v20 = vpop.eup %4521  ;;  %v2024_v23 = vmul.f32 %v4520_v19, %v4512_v56  ;;  %v2094_v35 = vpop.permute.xlu1 %2093 }
 0x9a0   : > { %v2026_v25 = vmul.f32 %v4522_v20, %v4510_v53 }
 0x9a1   : > { %v4524_v21 = vpop.eup %4523 }
 0x9a2   : > { %v2025_v24 = vmul.f32 %v4524_v21, %v4516_v60  ;;  %v2029_v28 = vpack.c.bf16 %v2027_v22, %v2026_v25 }
 0x9a4   : > { %v2028_v27 = vpack.c.bf16 %v2025_v24, %v2024_v23 }
 0x9a6   : > { %4094 = vmatprep.mubr.msk.bf16.mxu1 %vm1570_vm1, %v2028_v27 }
 0x9a7   : > { %4095 = vmatmul.mubr.msk.bf16.vlgmr.msra.gmra.mxu1 %vm1570_vm1, %v2029_v28 }
 0x9a8   : > { %4099 = vmatpush3.bf16.xpose.msra.mxu1 %v2109_v26  ;;  %4102 = vmatprep.mubr.msk.bf16.mxu1 %vm1570_vm1, %v2092_v31 }
 0x9a9   : > { %4185 = vmatprep.subr.msk.bf16.mxu1 %vm1570_vm1, %v2096_v32 }
 0x9b0   : > { %4101 = vmatpush3.bf16.xpose.msra.mxu1 %v2106_v33 }
 0x9b7   : > { %4103 = vmatmul.mubr.msk.bf16.vlgmr.msra.gmra.mxu1 %vm1570_vm1, %v2094_v35 }
 0x9b8   : > { %2773 = vmatprep.mubr.bf16.mxu1 %v4958_v54 }
 0x9c8   : > { %v1808_v36 = vpop.xlane.xlu0 %1807 }
 0x9c9   : > { %v1818_v41 = vsub.f32 %v1792_v1, %v1808_v36 }
 0x9cb   : > { %v1822_v49 = vmul.f32 1.442695, %v1818_v41 }
 0x9cc   : > { %v1814_v39 = vpop.xlane.xlu0 %1813 }
 0x9cd   : > { %v1820_v48 = vsub.f32 %v5612_v2, %v1814_v39  ;;  %4525 = vpow2.f32 %v1822_v49 }
 0x9cf   : > { %v1826_v53 = vmul.f32 1.442695, %v1820_v48 }
 0x9d0   : > { %v1811_v44 = vpop.xlane.xlu1 %1810  ;;  %v1817_v51 = vpop.xlane.xlu0 %1816 }
 0x9d1   : > { %v1819_v50 = vsub.f32 %v5616_v63, %v1811_v44  ;;  %v1821_v56 = vsub.f32 %v5619_v4, %v1817_v51  ;;  %4527 = vpow2.f32 %v1826_v53 }
 0x9d3   : > { %v1824_v55 = vmul.f32 1.442695, %v1819_v50  ;;  %v1828_v59 = vmul.f32 1.442695, %v1821_v56 }
 0x9d5   : > { %4529 = vpow2.f32 %v1824_v55 }
 0x9d6   : > { %4531 = vpow2.f32 %v1828_v59 }
 0x9da   : > { %v4526_v5 = vpop.eup %4525 }
 0x9db   : > { %v1830_v8 = vsel %vm1570_vm1, %v4526_v5, 0.0 }
 0x9de   : > { %v5658_v6 = vpop.eup %4527 }
 0x9e2   : > { %v4530_v10 = vpop.eup %4529 }
 0x9e3   : > { %v1833_v11 = vsel %vm1570_vm1, %v4530_v10, 0.0  ;;  %v5665_v12 = vpop.eup %4531 }
 0x9e4   : > { %v1839_v13 = vsel %vm1570_vm1, %v5665_v12, 0.0 }
 0xa67   : > { %v5636_v37 = vpop.f32.mrf.mxu1 }
 0xa69   : > { %v5638_v38 = vpop.f32.mrf.mxu1 }
 0xa6b   : > { %v5640_v40 = vpop.f32.mrf.mxu1 }
 0xa6c   : > { %v4350_v42 = vpack.i.bf16 %v5640_v40, %v5636_v37 }
 0xa6d   : > { %v5644_v45 = vpop.f32.mrf.mxu1 }
 0xa6e   : > { %v4345_v47 = vpack.i.bf16 %v5644_v45, %v5638_v38 }
 0xa77   : > { %v4104_v58 = vpop.f32.mrf.mxu1 }
 0xa78   : > { %v2154_v1 = vadd.f32 %v4104_v58, %v5534_v9 }
 0xa79   : > { %v2145_v60 = vpop.f32.mrf.mxu1 }
 0xa7a   : > { %v2146_v61 = vadd.f32 %v2145_v60, %v5534_v9  ;;  %v2166_v0 = vsel %vm1570_vm1, %v2154_v1, -inf }
 0xa7b   : > { %v4105_v62 = vpop.f32.mrf.mxu1 }
 0xa7c   : > { %v2160_v2 = vsel %vm1570_vm1, %v2146_v61, -inf  ;;  %v2157_v43 = vadd.f32 %v4105_v62, %v5534_v9 }
 0xa7d   : > { %v2148_v3 = vpop.f32.mrf.mxu1  ;;  %2161 = vmax.xlane.f32.xlu0 %v2160_v2 }
 0xa7e   : > { %v2149_v63 = vadd.f32 %v2148_v3, %v5534_v9  ;;  %v2169_v7 = vsel %vm1570_vm1, %v2157_v43, -inf  ;;  %v1836_v9 = vsel %vm1570_vm1, %v5658_v6, 0.0 }
 0xa80   : > { %v2163_v4 = vsel %vm1570_vm1, %v2149_v63, -inf }
 0xa81   : > { %2164 = vmax.xlane.f32.xlu1 %v2163_v4  ;;  %2167 = vmax.xlane.f32.xlu0 %v2166_v0 }
 0xa85   : > { %2170 = vmax.xlane.f32.xlu1 %v2169_v7  ;;  %1831 = vadd.xlane.f32.xlu0 %v1830_v8 }
 0xa89   : > { %1834 = vadd.xlane.f32.xlu1 %v1833_v11  ;;  %1837 = vadd.xlane.f32.xlu0 %v1836_v9 }
 0xa8d   : > { %1840 = vadd.xlane.f32.xlu1 %v1839_v13 }
 0xa9e   : > { %1854 = vrot.lane.b32.xlu1 %v5512_v57, %s4960_s30 }
 0xaa2   : > { %2208 = vrot.lane.b32.xlu1 %v5508_v52, %s4962_s15 }
 0xb06   : > { %v2162_v14 = vpop.xlane.xlu0 %2161 }
 0xb07   : > { %v2172_v19 = vsub.f32 %v2146_v61, %v2162_v14 }
 0xb09   : > { %v2176_v23 = vmul.f32 1.442695, %v2172_v19 }
 0xb0a   : > { %v2165_v20 = vpop.xlane.xlu1 %2164  ;;  %v2168_v21 = vpop.xlane.xlu0 %2167 }
 0xb0b   : > { %v2174_v22 = vsub.f32 %v2154_v1, %v2168_v21  ;;  %v2173_v24 = vsub.f32 %v2149_v63, %v2165_v20  ;;  %v4397_v21 = vld [vmem:[%s5373_s8 + $0x38] sm:$0xff]  }
 0xb0d   : > { %v2180_v25 = vmul.f32 1.442695, %v2174_v22  ;;  %v2178_v31 = vmul.f32 1.442695, %v2173_v24  ;;  %v4398_v22 = vld [vmem:[%s5373_s8 + $0x30] sm:$0xff]   ;;  %v4400_v24 = vld [vmem:[%s5373_s8 + $0x20] sm:$0xff]  }
 0xb0e   : > { %v2171_v27 = vpop.xlane.xlu1 %2170  ;;  %v1832_v26 = vpop.xlane.xlu0 %1831 }
 0xb0f   : > { %v2175_v28 = vsub.f32 %v2157_v43, %v2171_v27  ;;  %4533 = vpow2.f32 %v2180_v25  ;;  %v4401_v25 = vld [vmem:[%s5373_s8 + $0x18] sm:$0xff]  }
 0xb10   : > { %4535 = vpow2.f32 %v2176_v23  ;;  %v4399_v23 = vld [vmem:[%s5373_s8 + $0x28] sm:$0xff]  }
 0xb11   : > { %v2182_v32 = vmul.f32 1.442695, %v2175_v28  ;;  %4537 = vrcp.f32 %v1832_v26  ;;  %v4402_v28 = vld [vmem:[%s5373_s8 + $0x10] sm:$0xff]  }
 0xb12   : > { %v1835_v33 = vpop.xlane.xlu1 %1834  ;;  %v1838_v61 = vpop.xlane.xlu0 %1837 }
 0xb13   : > { %4539 = vpow2.f32 %v2182_v32  ;;  %v4403_v32 = vld [vmem:[%s5373_s8 + $0x8] sm:$0xff]  }
 0xb14   : > { %4541 = vrcp.f32 %v1835_v33 }
 0xb15   : > { %4543 = vpow2.f32 %v2178_v31 }
 0xb16   : > { %v1841_v59 = vpop.xlane.xlu1 %1840 }
 0xb17   : > { %4545 = vrcp.f32 %v1841_v59 }
 0xb18   : > { %4547 = vrcp.f32 %v1838_v61 }
 0xb1a   : > { %v1855_v60 = vpop.permute.xlu1 %1854 }
 0xb1c   : > { %v4534_v35 = vpop.eup %4533 }
 0xb1d   : > { %v4536_v36 = vpop.eup %4535  ;;  %v2190_v39 = vsel %vm1570_vm1, %v4534_v35, 0.0 }
 0xb1e   : > { %v4538_v41 = vpop.eup %4537  ;;  %2191 = vadd.xlane.f32.xlu0 %v2190_v39  ;;  %v2184_v51 = vsel %vm1570_vm1, %v4536_v36, 0.0  ;;  %v2209_v62 = vpop.permute.xlu1 %2208  ;;  %v4404_v39 = vld [vmem:[%s5373_s8] sm:$0xff]   ;;  %s6065_s8 = scalar_lea.vmem [#allocation10], %s5359_s20 }
 0xb1f   : > { %v1846_v53 = vmul.f32 %v4538_v41, %v4526_v5 }
 0xb20   : > { %v4540_v44 = vpop.eup %4539 }
 0xb21   : > { %v4542_v48 = vpop.eup %4541  ;;  %v2193_v49 = vsel %vm1570_vm1, %v4540_v44, 0.0 }
 0xb22   : > { %v4544_v50 = vpop.eup %4543  ;;  %2194 = vadd.xlane.f32.xlu1 %v2193_v49  ;;  %v1847_v55 = vmul.f32 %v4542_v48, %v4530_v10  ;;  %2185 = vadd.xlane.f32.xlu0 %v2184_v51 }
 0xb23   : > { %v2187_v58 = vsel %vm1570_vm1, %v4544_v50, 0.0 }
 0xb24   : > { %v1850_v56 = vpack.c.bf16 %v1847_v55, %v1846_v53  ;;  %v4546_v43 = vpop.eup %4545 }
 0xb26   : > { %4078 = vmatprep.mubr.msk.bf16.mxu0 %vm1570_vm1, %v1850_v56  ;;  %2188 = vadd.xlane.f32.xlu1 %v2187_v58 }
 0xb37   : > { %2206 = vrot.lane.b32.xlu1 %v5512_v57, %s4962_s15  ;;  %v4548_v57 = vpop.eup %4547 }
 0xb38   : > { %1856 = vrot.lane.b32.xlu0 %v5508_v52, %s4960_s30  ;;  %v1849_v52 = vmul.f32 %v4546_v43, %v5665_v12  ;;  %v1848_v0 = vmul.f32 %v4548_v57, %v5658_v6 }
 0xb3a   : > { %v1851_v5 = vpack.c.bf16 %v1849_v52, %v1848_v0 }
 0xba7   : > { %v2192_v1 = vpop.xlane.xlu0 %2191 }
 0xbab   : > { %v2195_v2 = vpop.xlane.xlu1 %2194  ;;  %v2186_v3 = vpop.xlane.xlu0 %2185 }
 0xbac   : > { %4549 = vrcp.f32 %v2195_v2 }
 0xbad   : > { %4551 = vrcp.f32 %v2186_v3 }
 0xbae   : > { %4553 = vrcp.f32 %v2192_v1 }
 0xbaf   : > { %v2189_v63 = vpop.xlane.xlu1 %2188  ;;  %v1857_v4 = vpop.permute.xlu0 %1856 }
 0xbb0   : > { %4555 = vrcp.f32 %v2189_v63  ;;  %4074 = vmatprep.subr.bf16.mxu0 %v1857_v4 }
 0xbb1   : > { %4075 = vmatpush3.bf16.msra.mxu0 %v1857_v4 }
 0xbb2   : > { %4076 = vmatprep.subr.bf16.mxu0 %v1855_v60 }
 0xbb3   : > { %v2207_v8 = vpop.permute.xlu1 %2206 }
 0xbb5   : > { %4077 = vmatpush3.bf16.msra.mxu0 %v1855_v60 }
 0xbb6   : > { %4106 = vmatprep.subr.bf16.mxu0 %v2209_v62 }
 0xbb8   : > { %4079 = vmatmul.mubr.msk.bf16.vlgmr.msra.gmra.mxu0 %vm1570_vm1, %v1851_v5 }
 0xbb9   : > { %v4550_v7 = vpop.eup %4549  ;;  %4107 = vmatpush3.bf16.msra.mxu0 %v2209_v62 }
 0xbba   : > { %v4552_v10 = vpop.eup %4551  ;;  %4108 = vmatprep.subr.bf16.mxu0 %v2207_v8  ;;  %v2203_v13 = vmul.f32 %v4550_v7, %v4540_v44 }
 0xbbb   : > { %v4554_v11 = vpop.eup %4553  ;;  %v2200_v12 = vmul.f32 %v4552_v10, %v4536_v36 }
 0xbbc   : > { %v2202_v14 = vmul.f32 %v4554_v11, %v4534_v35 }
 0xbbd   : > { %v4556_v9 = vpop.eup %4555  ;;  %4109 = vmatpush3.bf16.msra.mxu0 %v2207_v8 }
 0xbbe   : > { %v2201_v6 = vmul.f32 %v4556_v9, %v4544_v50  ;;  %v2205_v20 = vpack.c.bf16 %v2203_v13, %v2202_v14  ;;  %4114 = vmatprep.subr.bf16.mxu0 %v4397_v21  ;;  %v3827_v14 = vld [vmem:[%s6065_s8] ss:$0 sm:$0xff] }
 0xbc0   : > { %v2204_v19 = vpack.c.bf16 %v2201_v6, %v2200_v12  ;;  %v4597_v12 = vld [vmem:[#allocation2 + $0x10] sm:$0xff] }
 0xbc2   : > { %4110 = vmatprep.mubr.msk.bf16.mxu0 %vm1570_vm1, %v2204_v19 }
 0xbc3   : > { %4111 = vmatmul.mubr.msk.bf16.vlgmr.msra.gmra.mxu0 %vm1570_vm1, %v2205_v20  ;;  %v4598_v20 = vld [vmem:[#allocation2 + $0x18] sm:$0xff] }
 0xbc4   : > { %4115 = vmatpush3.bf16.msra.mxu0 %v4397_v21 }
 0xbc5   : > { %4116 = vmatprep.subr.bf16.mxu0 %v4398_v22 }
 0xbc8   : > { %4117 = vmatpush3.bf16.msra.mxu0 %v4398_v22 }
 0xbc9   : > { %4118 = vmatprep.subr.bf16.mxu0 %v4399_v23 }
 0xbcc   : > { %4119 = vmatpush3.bf16.msra.mxu0 %v4399_v23 }
 0xbcd   : > { %4120 = vmatprep.subr.bf16.mxu0 %v4400_v24 }
 0xbd0   : > { %4121 = vmatpush3.bf16.msra.mxu0 %v4400_v24  ;;  %v4599_v24 = vld [vmem:[#allocation2] sm:$0xff] }
 0xbd1   : > { %4122 = vmatprep.subr.bf16.mxu0 %v4401_v25 }
 0xbd4   : > { %4123 = vmatpush3.bf16.msra.mxu0 %v4401_v25 }
 0xbd5   : > { %4124 = vmatprep.subr.bf16.mxu0 %v4402_v28 }
 0xbd8   : > { %4125 = vmatpush3.bf16.msra.mxu0 %v4402_v28  ;;  %v4600_v28 = vld [vmem:[#allocation2 + $0x8] sm:$0xff] }
 0xbd9   : > { %4126 = vmatprep.subr.bf16.mxu0 %v4403_v32 }
 0xbdc   : > { %4127 = vmatpush3.bf16.msra.mxu0 %v4403_v32 }
 0xbdd   : > { %4128 = vmatprep.subr.bf16.mxu0 %v4404_v39 }
 0xbe0   : > { %4129 = vmatpush3.bf16.msra.mxu0 %v4404_v39  ;;  %v4410_v39 = vld [vmem:[%s5411_s24 + $0xec] ss:$16 sps:$4 sm:$0xff]  }
 0xbe1   : > { %2794 = vmatprep.subr.bf16.mxu0 %v4410_v39 }
 0xc78   : > { %v4080_v27 = vpop.f32.mrf.mxu0 }
 0xc7a   : > { %v1900_v26 = vpop.f32.mrf.mxu0 }
 0xc7c   : > { %v4081_v31 = vpop.f32.mrf.mxu0 }
 0xc7d   : > { %v4340_v33 = vpack.i.bf16 %v4081_v31, %v4080_v27 }
 0xc7e   : > { %v1903_v35 = vpop.f32.mrf.mxu0 }
 0xc7f   : > { %v4335_v36 = vpack.i.bf16 %v1903_v35, %v1900_v26  ;;  %4341 = vrot.lane.b32.xlu1 %v4340_v33, %s4962_s15  ;;  %v4405_v33 = vld [vmem:[%s5411_s24 + $0xe0] ss:$16 sps:$4 sm:$0xff]   ;;  %v4407_v35 = vld [vmem:[%s5411_s24 + $0xe4] ss:$16 sps:$4 sm:$0xff]  }
 0xc80   : > { %2741 = vmatprep.subr.bf16.mxu1 %v4407_v35 }
 0xc81   : > { %4336 = vrot.lane.b32.xlu0 %v4335_v36, %s4962_s15  ;;  %v4408_v36 = vld [vmem:[%s5411_s24 + $0xe8] ss:$16 sps:$4 sm:$0xff]   ;;  %2742 = vmatpush1.bf16.msra.mxu1 %v4405_v33 }
 0xc83   : > { %v4112_v41 = vpop.f32.mrf.mxu0  ;;  %4351 = vrot.lane.b32.xlu1 %v4350_v42, %s4961_s6 }
 0xc85   : > { %v2252_v44 = vpop.f32.mrf.mxu0  ;;  %4346 = vrot.lane.b32.xlu0 %v4345_v47, %s4961_s6 }
 0xc87   : > { %v4113_v48 = vpop.f32.mrf.mxu0 }
 0xc88   : > { %v4360_v49 = vpack.i.bf16 %v4113_v48, %v4112_v41 }
 0xc89   : > { %v2255_v50 = vpop.f32.mrf.mxu0 }
 0xc8a   : > { %v4355_v51 = vpack.i.bf16 %v2255_v50, %v2252_v44  ;;  %4361 = vrot.lane.b32.xlu1 %v4360_v49, %s4960_s30 }
 0xc8c   : > { %4356 = vrot.lane.b32.xlu0 %v4355_v51, %s4960_s30 }
 0xcf1   : > { %v4342_v53 = vpop.permute.xlu1 %4341 }
 0xcf2   : > { %v4344_v40 = vunpack.i.h.bf16 %v4342_v53  ;;  %v4343_v42 = vunpack.i.l.bf16 %v4342_v53 }
 0xcf3   : > { %v4337_v55 = vpop.permute.xlu0 %4336 }
 0xcf4   : > { %v4339_v58 = vunpack.i.h.bf16 %v4337_v55  ;;  %v4338_v59 = vunpack.i.l.bf16 %v4337_v55  ;;  %v2318_v2 = vsel %vm1570_vm1, %v5582_v17, %v4344_v40  ;;  %v2317_v3 = vsel %vm1570_vm1, %v5578_v15, %v4343_v42 }
 0xcf5   : > { %v4352_v56 = vpop.permute.xlu1 %4351 }
 0xcf6   : > { %v4354_v60 = vunpack.i.h.bf16 %v4352_v56  ;;  %v4353_v61 = vunpack.i.l.bf16 %v4352_v56  ;;  %v2316_v63 = vsel %vm1570_vm1, %v5584_v18, %v4339_v58  ;;  %v2315_v43 = vsel %vm1570_vm1, %v5580_v16, %v4338_v59 }
 0xcf7   : > { %v4347_v37 = vpop.permute.xlu0 %4346 }
 0xcf8   : > { %v4349_v38 = vunpack.i.h.bf16 %v4347_v37  ;;  %v4348_v45 = vunpack.i.l.bf16 %v4347_v37  ;;  %v2322_v57 = vsel %vm2319_vm3, %v2317_v3, %v4353_v61  ;;  %v2323_v52 = vsel %vm2319_vm3, %v2318_v2, %v4354_v60  ;;  %v4422_v2 = vld [vmem:[%s5411_s24 + $0xac] ss:$16 sps:$4 sm:$0xff]   ;;  %v4417_v3 = vld [vmem:[%s5411_s24 + $0xa0] ss:$16 sps:$4 sm:$0xff]  }
 0xcfa   : > { %v2320_v7 = vsel %vm2319_vm3, %v2315_v43, %v4348_v45  ;;  %v2321_v17 = vsel %vm2319_vm3, %v2316_v63, %v4349_v38  ;;  %v4413_v38 = vld [vmem:[%s5411_s24 + $0xc4] ss:$16 sps:$4 sm:$0xff]   ;;  %v4416_v45 = vld [vmem:[%s5411_s24 + $0xcc] ss:$16 sps:$4 sm:$0xff]   ;;  %v4420_v63 = vld [vmem:[%s5411_s24 + $0xa8] ss:$16 sps:$4 sm:$0xff]  }
 0xcfb   : > { %2743 = vmatprep.subr.bf16.mxu1 %v4413_v38  ;;  %v4425_v43 = vld [vmem:[%s5411_s24 + $0x84] ss:$16 sps:$4 sm:$0xff]  }
 0xcfc   : > { %v4362_v47 = vpop.permute.xlu1 %4361 }
 0xcfd   : > { %v4364_v62 = vunpack.i.h.bf16 %v4362_v47  ;;  %v4363_v1 = vunpack.i.l.bf16 %v4362_v47  ;;  %v4411_v47 = vld [vmem:[%s5411_s24 + $0xc0] ss:$16 sps:$4 sm:$0xff]  }
 0xcfe   : > { %v4357_v4 = vpop.permute.xlu0 %4356  ;;  %2744 = vmatpush1.bf16.msra.mxu1 %v4411_v47 }
 0xcff   : > { %v4359_v0 = vunpack.i.h.bf16 %v4357_v4  ;;  %v4358_v5 = vunpack.i.l.bf16 %v4357_v4  ;;  %v2328_v15 = vsel %vm2324_vm4, %v2323_v52, %v4364_v62  ;;  %v2327_v8 = vsel %vm2324_vm4, %v2322_v57, %v4363_v1  ;;  %v4414_v62 = vld [vmem:[%s5411_s24 + $0xc8] ss:$16 sps:$4 sm:$0xff]   ;;  %v4419_v1 = vld [vmem:[%s5411_s24 + $0xa4] ss:$16 sps:$4 sm:$0xff]   ;;  %v4428_v4 = vld [vmem:[%s5411_s24 + $0x8c] ss:$16 sps:$4 sm:$0xff]  }
 0xd00   : > { %v2330_v11 = vpack.c.bf16 %v2328_v15, %v2327_v8  ;;  %2745 = vmatprep.subr.bf16.mxu1 %v4419_v1  ;;  %v4423_v57 = vld [vmem:[%s5411_s24 + $0x80] ss:$16 sps:$4 sm:$0xff]   ;;  %v4426_v52 = vld [vmem:[%s5411_s24 + $0x88] ss:$16 sps:$4 sm:$0xff]   ;;  %v4437_v15 = vld [vmem:[%s5411_s24 + $0x44] ss:$16 sps:$4 sm:$0xff]  }
 0xd01   : > { %v2325_v18 = vsel %vm2324_vm4, %v2320_v7, %v4358_v5  ;;  %v2326_v16 = vsel %vm2324_vm4, %v2321_v17, %v4359_v0  ;;  %v4431_v0 = vld [vmem:[%s5411_s24 + $0x64] ss:$16 sps:$4 sm:$0xff]   ;;  %v4429_v5 = vld [vmem:[%s5411_s24 + $0x60] ss:$16 sps:$4 sm:$0xff]   ;;  %v4432_v7 = vld [vmem:[%s5411_s24 + $0x68] ss:$16 sps:$4 sm:$0xff]  }
 0xd02   : > { %v2329_v10 = vpack.c.bf16 %v2326_v16, %v2325_v18  ;;  %2746 = vmatpush1.bf16.msra.mxu1 %v4417_v3  ;;  %v4434_v17 = vld [vmem:[%s5411_s24 + $0x6c] ss:$16 sps:$4 sm:$0xff]   ;;  %v4435_v18 = vld [vmem:[%s5411_s24 + $0x40] ss:$16 sps:$4 sm:$0xff]   ;;  %v4438_v16 = vld [vmem:[%s5411_s24 + $0x48] ss:$16 sps:$4 sm:$0xff]  }
 0xd03   : > { %2747 = vmatprep.subr.bf16.mxu1 %v4425_v43  ;;  %v4440_v8 = vld [vmem:[%s5411_s24 + $0x4c] ss:$16 sps:$4 sm:$0xff]  }
 0xd04   : > { %4130 = vmatprep.mubr.bf16.mxu0 %v2329_v10  ;;  %v4443_v10 = vld [vmem:[%s5411_s24 + $0x24] ss:$16 sps:$4 sm:$0xff]   ;;  %v4454_v3 = vld [vmem:[%s5416_s14 + $0xf8] sm:$0xff]  }
 0xd05   : > { %4131 = vmatmul.mubr.bf16.vlgmr.msra.gmra.mxu0 %v2330_v11  ;;  %v4446_v11 = vld [vmem:[%s5411_s24 + $0x2c] ss:$16 sps:$4 sm:$0xff]  }
 0xd06   : > { %2826 = vmatprep.mubr.bf16.mxu0 %v4958_v54  ;;  %2795 = vmatpush1.bf16.msra.mxu0 %v4408_v36  ;;  %v4456_v43 = vld [vmem:[%s5416_s14 + $0xb8] sm:$0xff]  }
 0xd07   : > { %2796 = vmatprep.subr.bf16.mxu0 %v4416_v45  ;;  %2748 = vmatpush1.bf16.msra.mxu1 %v4423_v57  ;;  %v4459_v57 = vld [vmem:[%s5416_s14 + $0x30] sm:$0xff]  }
 0xd08   : > { %2749 = vmatprep.subr.bf16.mxu1 %v4431_v0  ;;  %v4461_v0 = vld [vmem:[%s5416_s14 + $0x68] sm:$0xff]  }
 0xd0a   : > { %2797 = vmatpush1.bf16.msra.mxu0 %v4414_v62 }
 0xd0b   : > { %2798 = vmatprep.subr.bf16.mxu0 %v4422_v2  ;;  %2750 = vmatpush1.bf16.msra.mxu1 %v4429_v5  ;;  %v4462_v5 = vld [vmem:[%s5416_s14 + $0xe8] sm:$0xff]  }
 0xd0c   : > { %2751 = vmatprep.subr.bf16.mxu1 %v4437_v15  ;;  %v4465_v15 = vld [vmem:[%s5416_s14 + $0x60] sm:$0xff]  }
 0xd0e   : > { %2799 = vmatpush1.bf16.msra.mxu0 %v4420_v63  ;;  %v4455_v63 = vld [vmem:[%s5416_s14 + $0x38] sm:$0xff]  }
 0xd0f   : > { %2800 = vmatprep.subr.bf16.mxu0 %v4428_v4  ;;  %2752 = vmatpush1.bf16.msra.mxu1 %v4435_v18  ;;  %v4458_v4 = vld [vmem:[%s5416_s14 + $0xf0] sm:$0xff]   ;;  %v4467_v18 = vld [vmem:[%s5416_s14 + $0x20] sm:$0xff]  }
 0xd10   : > { %2753 = vmatprep.subr.bf16.mxu1 %v4443_v10  ;;  %v4469_v10 = vld [vmem:[%s5416_s14 + $0x58] sm:$0xff]  }
 0xd12   : > { %2801 = vmatpush1.bf16.msra.mxu0 %v4426_v52  ;;  %v4460_v52 = vld [vmem:[%s5416_s14 + $0xb0] sm:$0xff]  }
 0xd13   : > { %2802 = vmatprep.subr.bf16.mxu0 %v4434_v17  ;;  %v4464_v17 = vld [vmem:[%s5416_s14 + $0xa8] sm:$0xff]  }
 0xd16   : > { %2803 = vmatpush1.bf16.msra.mxu0 %v4432_v7  ;;  %v4463_v7 = vld [vmem:[%s5416_s14 + $0x28] sm:$0xff]  }
 0xd17   : > { %2804 = vmatprep.subr.bf16.mxu0 %v4440_v8  ;;  %v4466_v8 = vld [vmem:[%s5416_s14 + $0xe0] sm:$0xff]  }
 0xd1a   : > { %2805 = vmatpush1.bf16.msra.mxu0 %v4438_v16  ;;  %v4468_v16 = vld [vmem:[%s5416_s14 + $0xa0] sm:$0xff]  }
 0xd1b   : > { %2806 = vmatprep.subr.bf16.mxu0 %v4446_v11  ;;  %v4470_v11 = vld [vmem:[%s5416_s14 + $0xd8] sm:$0xff]  }
 0xdc5   : > { %v4132_v9 = vpop.f32.mrf.mxu0 }
 0xdc6   : > { %v2446_v21 = vadd.f32 %v4598_v20, %v4132_v9  ;;  %v4441_v9 = vld [vmem:[%s5411_s24 + $0x20] ss:$16 sps:$4 sm:$0xff]  }
 0xdc7   : > { %v2429_v13 = vpop.f32.mrf.mxu0  ;;  %2754 = vmatpush1.bf16.msra.mxu1 %v4441_v9  ;;  %v4471_v9 = vld [vmem:[%s5416_s14 + $0x18] sm:$0xff]  }
 0xdc8   : > { %v2444_v6 = vadd.f32 %v4597_v12, %v2429_v13  ;;  %v5729_v27 = vadd.f32 %v3827_v14, %v2446_v21  ;;  %v4444_v13 = vld [vmem:[%s5411_s24 + $0x28] ss:$16 sps:$4 sm:$0xff]   ;;  %v4449_v12 = vld [vmem:[%s5411_s24 + $0x4] ss:$16 sps:$4 sm:$0xff]  }
 0xdc9   : > { %v4133_v19 = vpop.f32.mrf.mxu0  ;;  %2807 = vmatpush1.bf16.msra.mxu0 %v4444_v13  ;;  %2755 = vmatprep.subr.bf16.mxu1 %v4449_v12  ;;  %v4472_v13 = vld [vmem:[%s5416_s14 + $0x98] sm:$0xff]   ;;  %v4473_v12 = vld [vmem:[%s5416_s14 + $0x50] sm:$0xff]  }
 0xdca   : > { %v5726_v22 = vadd.f32 %v3827_v14, %v2444_v6  ;;  %v2447_v26 = vadd.f32 %v4600_v28, %v4133_v19  ;;  %v4452_v6 = vld [vmem:[%s5411_s24 + $0xc] ss:$16 sps:$4 sm:$0xff]   ;;  %v4450_v19 = vld [vmem:[%s5411_s24 + $0x8] ss:$16 sps:$4 sm:$0xff]  }
 0xdcb   : > { %v2432_v23 = vpop.f32.mrf.mxu0  ;;  %2808 = vmatprep.subr.bf16.mxu0 %v4452_v6  ;;  %v4474_v6 = vld [vmem:[%s5416_s14 + $0xd0] sm:$0xff]  }
 0xdcc   : > { %v2445_v25 = vadd.f32 %v4599_v24, %v2432_v23  ;;  %2461 = vadd.xlane.f32.xlu0 %v5726_v22  ;;  %v5735_v32 = vadd.f32 %v3827_v14, %v2447_v26 }
 0xdcd   : > { %2809 = vmatpush1.bf16.msra.mxu0 %v4450_v19  ;;  %v4476_v19 = vld [vmem:[%s5416_s14 + $0x90] sm:$0xff]  }
 0xdce   : > { %v5731_v31 = vadd.f32 %v3827_v14, %v2445_v25  ;;  %v4447_v14 = vld [vmem:[%s5411_s24] ss:$16 sps:$4 sm:$0xff]   ;;  %3992 = vmatprep.subr.bf16.mxu0 %v4454_v3 }
 0xdcf   : > { %2756 = vmatpush1.bf16.msra.mxu1 %v4447_v14  ;;  %v4475_v14 = vld [vmem:[%s5416_s14 + $0x10] sm:$0xff]  }
 0xdd0   : > { %2465 = vadd.xlane.f32.xlu0 %v5729_v27  ;;  %2463 = vadd.xlane.f32.xlu1 %v5731_v31 }
 0xdd4   : > { %2467 = vadd.xlane.f32.xlu0 %v5735_v32 }
 0xe55   : > { %v2462_v41 = vpop.xlane.xlu0 %2461 }
 0xe56   : > { %v2469_v44 = vmul.f32 0.0078125, %v2462_v41 }
 0xe58   : > { %v5743_v48 = vsub.f32 %v5726_v22, %v2469_v44 }
 0xe59   : > { %v2466_v49 = vpop.xlane.xlu0 %2465  ;;  %v2464_v50 = vpop.xlane.xlu1 %2463 }
 0xe5a   : > { %v2471_v51 = vmul.f32 0.0078125, %v2466_v49  ;;  %v2470_v53 = vmul.f32 0.0078125, %v2464_v50  ;;  %v2477_v55 = vmul.f32 %v5743_v48, %v5743_v48  ;;  %v3828_v50 = vld [vmem:[%s940_s23] ss:$0 sm:$0xff] }
 0xe5c   : > { %v5748_v56 = vsub.f32 %v5729_v27, %v2471_v51  ;;  %v5751_v37 = vsub.f32 %v5731_v31, %v2470_v53  ;;  %2481 = vadd.xlane.f32.xlu0 %v2477_v55 }
 0xe5d   : > { %v2468_v40 = vpop.xlane.xlu0 %2467 }
 0xe5e   : > { %v2472_v42 = vmul.f32 0.0078125, %v2468_v40  ;;  %v2479_v58 = vmul.f32 %v5748_v56, %v5748_v56  ;;  %v2478_v59 = vmul.f32 %v5751_v37, %v5751_v37 }
 0xe60   : > { %v5758_v60 = vsub.f32 %v5735_v32, %v2472_v42  ;;  %2485 = vadd.xlane.f32.xlu0 %v2479_v58  ;;  %2483 = vadd.xlane.f32.xlu1 %v2478_v59  ;;  %v3829_v42 = vld [vmem:[%s943_s25] ss:$0 sm:$0xff]  ;;  %s6070_s25 = sld [smem:[#allocation43_spill]] (!%p3895_p11) }
 0xe62   : > { %v2480_v61 = vmul.f32 %v5758_v60, %v5758_v60 }
 0xe64   : > { %2487 = vadd.xlane.f32.xlu1 %v2480_v61 }
 0xee5   : > { %v2482_v20 = vpop.xlane.xlu0 %2481 }
 0xee6   : > { %v2489_v21 = vmul.f32 0.0078125, %v2482_v20  ;;  %v4477_v20 = vld [vmem:[%s5416_s14 + $0x48] sm:$0xff]  }
 0xee8   : > { %v2493_v23 = vadd.f32 1e-05, %v2489_v21  ;;  %v4478_v21 = vld [vmem:[%s5416_s14 + $0xc8] sm:$0xff]  }
 0xee9   : > { %v2486_v24 = vpop.xlane.xlu0 %2485  ;;  %v2484_v25 = vpop.xlane.xlu1 %2483 }
 0xeea   : > { %4557 = vrsqrt.f32 %v2493_v23  ;;  %v2491_v28 = vmul.f32 0.0078125, %v2486_v24  ;;  %v2490_v26 = vmul.f32 0.0078125, %v2484_v25  ;;  %v4479_v23 = vld [vmem:[%s5416_s14 + $0x8] sm:$0xff]   ;;  %v4481_v25 = vld [vmem:[%s5416_s14 + $0x40] sm:$0xff]  }
 0xeeb   : > { %v4480_v24 = vld [vmem:[%s5416_s14 + $0x88] sm:$0xff]  }
 0xeec   : > { %v2494_v33 = vadd.f32 1e-05, %v2490_v26  ;;  %v2495_v35 = vadd.f32 1e-05, %v2491_v28  ;;  %v4482_v28 = vld [vmem:[%s5416_s14 + $0xc0] sm:$0xff]  }
 0xeed   : > { %v2488_v36 = vpop.xlane.xlu1 %2487  ;;  %v4483_v26 = vld [vmem:[%s5416_s14] sm:$0xff]  }
 0xeee   : > { %v2492_v39 = vmul.f32 0.0078125, %v2488_v36  ;;  %4559 = vrsqrt.f32 %v2494_v33  ;;  %v4484_v33 = vld [vmem:[%s5416_s14 + $0x80] sm:$0xff]   ;;  %v2575_v36 = vsub.s32 3, %v5494_v29 }
 0xeef   : > { %4561 = vrsqrt.f32 %v2495_v35  ;;  %v2559_v35 = vld [vmem:[%s5376_s17] sm:$0xf]  ;;  %s6069_s17 = sld [smem:[#allocation42_spill]] (!%p3895_p11) }
 0xef0   : > { %v2496_v41 = vadd.f32 1e-05, %v2492_v39  ;;  %v2564_v39 = vrot.slane %v2559_v35, %v1321_v30 }
 0xef2   : > { %4563 = vrsqrt.f32 %v2496_v41  ;;  %v2572_v41 = vrot.slane %v2559_v35, %v1329_v34 }
 0xef7   : > { %v4558_v44 = vpop.eup %4557 }
 0xef8   : > { %v2501_v49 = vmul.f32 %v4558_v44, %v5743_v48  ;;  %v2568_v44 = vrot.slane %v2559_v35, %v1325_v46 }
 0xefa   : > { %v2511_v55 = vmul.f32 %v3828_v50, %v2501_v49  ;;  %v2576_v49 = vrot.slane %v2559_v35, %v2575_v36 }
 0xefb   : > { %v4560_v51 = vpop.eup %4559 }
 0xefc   : > { %v2502_v53 = vmul.f32 %v4560_v51, %v5751_v37  ;;  %v4562_v40 = vpop.eup %4561  ;;  %v2521_v48 = vadd.f32 %v3829_v42, %v2511_v55 }
 0xefd   : > { %v2503_v45 = vmul.f32 %v4562_v40, %v5748_v56  ;;  %v4453_v56 = vld [vmem:[%s5416_s14 + $0x78] sm:$0xff]  }
 0xefe   : > { %v2512_v59 = vmul.f32 %v3828_v50, %v2502_v53  ;;  %3964 = vmatprep.subr.bf16.mxu1 %v4453_v56 }
 0xeff   : > { %v4564_v58 = vpop.eup %4563  ;;  %v2513_v62 = vmul.f32 %v3828_v50, %v2503_v45 }
 0xf00   : > { %v2504_v61 = vmul.f32 %v4564_v58, %v5758_v60  ;;  %v2522_v38 = vadd.f32 %v3829_v42, %v2512_v59 }
 0xf01   : > { %v2523_v1 = vadd.f32 %v3829_v42, %v2513_v62 }
 0xf02   : > { %v2525_v37 = vpack.c.bf16 %v2522_v38, %v2521_v48  ;;  %v2514_v47 = vmul.f32 %v3828_v50, %v2504_v61 }
 0xf04   : > { %2774 = vmatmul.mubr.bf16.vlgmr.msra.gmra.mxu1 %v2525_v37  ;;  %2827 = vmatmul.mubr.bf16.vlgmr.msra.gmra.mxu0 %v2525_v37  ;;  %v2524_v60 = vadd.f32 %v3829_v42, %v2514_v47 }
 0xf05   : > { %2783 = vmatprep.mubr.bf16.mxu1 %v4958_v54  ;;  %2836 = vmatprep.mubr.bf16.mxu0 %v4958_v54  ;;  %v4457_v54 = vld [vmem:[%s5416_s14 + $0x70] sm:$0xff]   ;;  %s6068_s14 = scalar_lea.vmem [#allocation12], %s5359_s20 }
 0xf06   : > { %v2526_v2 = vpack.c.bf16 %v2524_v60, %v2523_v1  ;;  %3965 = vmatpush3.bf16.msra.mxu1 %v4455_v63  ;;  %3993 = vmatpush3.bf16.msra.mxu0 %v4456_v43 }
 0xf07   : > { %3966 = vmatprep.subr.bf16.mxu1 %v4457_v54  ;;  %3994 = vmatprep.subr.bf16.mxu0 %v4458_v4 }
 0xf0a   : > { %3967 = vmatpush3.bf16.msra.mxu1 %v4459_v57  ;;  %3995 = vmatpush3.bf16.msra.mxu0 %v4460_v52 }
 0xf0b   : > { %3968 = vmatprep.subr.bf16.mxu1 %v4461_v0  ;;  %3996 = vmatprep.subr.bf16.mxu0 %v4462_v5 }
 0xf0c   : > { %2784 = vmatmul.mubr.bf16.gmra.mxu1 %v2526_v2  ;;  %2837 = vmatmul.mubr.bf16.gmra.mxu0 %v2526_v2 }
 0xf0e   : > { %3969 = vmatpush3.bf16.msra.mxu1 %v4463_v7  ;;  %3997 = vmatpush3.bf16.msra.mxu0 %v4464_v17 }
 0xf0f   : > { %3970 = vmatprep.subr.bf16.mxu1 %v4465_v15  ;;  %3998 = vmatprep.subr.bf16.mxu0 %v4466_v8 }
 0xf12   : > { %3971 = vmatpush3.bf16.msra.mxu1 %v4467_v18  ;;  %3999 = vmatpush3.bf16.msra.mxu0 %v4468_v16 }
 0xf13   : > { %3972 = vmatprep.subr.bf16.mxu1 %v4469_v10  ;;  %4000 = vmatprep.subr.bf16.mxu0 %v4470_v11 }
 0xf16   : > { %3973 = vmatpush3.bf16.msra.mxu1 %v4471_v9  ;;  %4001 = vmatpush3.bf16.msra.mxu0 %v4472_v13 }
 0xf17   : > { %3974 = vmatprep.subr.bf16.mxu1 %v4473_v12  ;;  %4002 = vmatprep.subr.bf16.mxu0 %v4474_v6 }
 0xf1a   : > { %3975 = vmatpush3.bf16.msra.mxu1 %v4475_v14  ;;  %4003 = vmatpush3.bf16.msra.mxu0 %v4476_v19 }
 0xf1b   : > { %3976 = vmatprep.subr.bf16.mxu1 %v4477_v20  ;;  %4004 = vmatprep.subr.bf16.mxu0 %v4478_v21 }
 0xf1e   : > { %3977 = vmatpush3.bf16.msra.mxu1 %v4479_v23  ;;  %4005 = vmatpush3.bf16.msra.mxu0 %v4480_v24 }
 0xf1f   : > { %3978 = vmatprep.subr.bf16.mxu1 %v4481_v25  ;;  %4006 = vmatprep.subr.bf16.mxu0 %v4482_v28 }
 0xf22   : > { %3979 = vmatpush3.bf16.msra.mxu1 %v4483_v26  ;;  %4007 = vmatpush3.bf16.msra.mxu0 %v4484_v33 }
 0xfc4   : > { %v2775_v50 = vpop.f32.mrf.mxu1  ;;  %v2828_v51 = vpop.f32.mrf.mxu0 }
 0xfc5   : > { %v5846_v53 = vadd.f32 %v2775_v50, %v2564_v39  ;;  %v5848_v55 = vadd.f32 %v2828_v51, %v2572_v41 }
 0xfc6   : > { %v2777_v40 = vpop.f32.mrf.mxu1  ;;  %v2830_v42 = vpop.f32.mrf.mxu0 }
 0xfc7   : > { %v2847_v58 = vmul.f32 0.851, %v5846_v53  ;;  %v2849_v59 = vmul.f32 0.851, %v5848_v55  ;;  %v5852_v30 = vadd.f32 %v2777_v40, %v2568_v44  ;;  %v5854_v61 = vadd.f32 %v2830_v42, %v2576_v49 }
 0xfc8   : > { %v2779_v34 = vpop.f32.mrf.mxu1  ;;  %v2832_v29 = vpop.f32.mrf.mxu0 }
 0xfc9   : > { %4565 = vtanh.f32 %v2847_v58  ;;  %v2848_v46 = vmul.f32 0.851, %v5852_v30  ;;  %v2850_v48 = vmul.f32 0.851, %v5854_v61  ;;  %v5858_v38 = vadd.f32 %v2779_v34, %v2564_v39 }
 0xfca   : > { %4567 = vtanh.f32 %v2849_v59  ;;  %v5860_v45 = vadd.f32 %v2832_v29, %v2572_v41  ;;  %v2781_v37 = vpop.f32.mrf.mxu1  ;;  %v2834_v47 = vpop.f32.mrf.mxu0 }
 0xfcb   : > { %4569 = vtanh.f32 %v2848_v46  ;;  %v2851_v62 = vmul.f32 0.851, %v5858_v38  ;;  %v5863_v60 = vadd.f32 %v2781_v37, %v2568_v44  ;;  %v5865_v1 = vadd.f32 %v2834_v47, %v2576_v49 }
 0xfcc   : > { %4571 = vtanh.f32 %v2850_v48  ;;  %v2853_v2 = vmul.f32 0.851, %v5860_v45  ;;  %v2785_v56 = vpop.f32.mrf.mxu1  ;;  %v2838_v3 = vpop.f32.mrf.mxu0 }
 0xfcd   : > { %4573 = vtanh.f32 %v2851_v62  ;;  %v2852_v63 = vmul.f32 0.851, %v5863_v60  ;;  %v2854_v43 = vmul.f32 0.851, %v5865_v1  ;;  %v5870_v54 = vadd.f32 %v2785_v56, %v2564_v39 }
 0xfce   : > { %4575 = vtanh.f32 %v2853_v2  ;;  %v5872_v4 = vadd.f32 %v2838_v3, %v2572_v41  ;;  %v2787_v57 = vpop.f32.mrf.mxu1  ;;  %v2840_v52 = vpop.f32.mrf.mxu0 }
 0xfcf   : > { %4577 = vtanh.f32 %v2852_v63  ;;  %v2855_v0 = vmul.f32 0.851, %v5870_v54  ;;  %v5875_v5 = vadd.f32 %v2787_v57, %v2568_v44  ;;  %v5877_v7 = vadd.f32 %v2840_v52, %v2576_v49 }
 0xfd0   : > { %4579 = vtanh.f32 %v2854_v43  ;;  %v2857_v17 = vmul.f32 0.851, %v5872_v4  ;;  %v2789_v15 = vpop.f32.mrf.mxu1  ;;  %v2842_v8 = vpop.f32.mrf.mxu0 }
 0xfd1   : > { %4581 = vtanh.f32 %v2855_v0  ;;  %v2856_v18 = vmul.f32 0.851, %v5875_v5  ;;  %v2858_v16 = vmul.f32 0.851, %v5877_v7  ;;  %v5882_v10 = vadd.f32 %v2789_v15, %v2564_v39 }
 0xfd2   : > { %4583 = vtanh.f32 %v2857_v17  ;;  %v5884_v11 = vadd.f32 %v2842_v8, %v2572_v41  ;;  %v2791_v9 = vpop.f32.mrf.mxu1  ;;  %v2844_v13 = vpop.f32.mrf.mxu0 }
 0xfd3   : > { %4585 = vtanh.f32 %v2856_v18  ;;  %v2859_v12 = vmul.f32 0.851, %v5882_v10  ;;  %v5887_v6 = vadd.f32 %v2791_v9, %v2568_v44  ;;  %v5889_v14 = vadd.f32 %v2844_v13, %v2576_v49 }
 0xfd4   : > { %4587 = vtanh.f32 %v2858_v16  ;;  %v2861_v19 = vmul.f32 0.851, %v5884_v11 }
 0xfd5   : > { %4589 = vtanh.f32 %v2859_v12  ;;  %v2860_v20 = vmul.f32 0.851, %v5887_v6  ;;  %v2862_v21 = vmul.f32 0.851, %v5889_v14 }
 0xfd6   : > { %v4566_v23 = vpop.eup %4565  ;;  %4591 = vtanh.f32 %v2861_v19 }
 0xfd7   : > { %v4568_v24 = vpop.eup %4567  ;;  %4593 = vtanh.f32 %v2860_v20  ;;  %v2879_v28 = vadd.f32 1.0, %v4566_v23 }
 0xfd8   : > { %v4570_v25 = vpop.eup %4569  ;;  %4595 = vtanh.f32 %v2862_v21  ;;  %v2881_v41 = vadd.f32 1.0, %v4568_v24 }
 0xfd9   : > { %v4572_v26 = vpop.eup %4571  ;;  %v2880_v33 = vadd.f32 1.0, %v4570_v25  ;;  %v2895_v50 = vmul.f32 0.5, %v2879_v28 }
 0xfda   : > { %v4574_v35 = vpop.eup %4573  ;;  %v2882_v36 = vadd.f32 1.0, %v4572_v26  ;;  %v2897_v47 = vmul.f32 0.5, %v2881_v41 }
 0xfdb   : > { %v4576_v39 = vpop.eup %4575  ;;  %v2883_v44 = vadd.f32 1.0, %v4574_v35  ;;  %v2896_v42 = vmul.f32 0.5, %v2880_v33  ;;  %v2911_v56 = vmul.f32 %v2895_v50, %v5846_v53 }
 0xfdc   : > { %v4578_v49 = vpop.eup %4577  ;;  %v2885_v51 = vadd.f32 1.0, %v4576_v39  ;;  %v2898_v29 = vmul.f32 0.5, %v2882_v36  ;;  %v2913_v53 = vmul.f32 %v2897_v47, %v5848_v55 }
 0xfdd   : > { %v4580_v40 = vpop.eup %4579  ;;  %v2899_v58 = vmul.f32 0.5, %v2883_v44  ;;  %v2884_v59 = vadd.f32 1.0, %v4578_v49  ;;  %v2912_v57 = vmul.f32 %v2896_v42, %v5852_v30 }
 0xfde   : > { %v4582_v34 = vpop.eup %4581  ;;  %v2901_v46 = vmul.f32 0.5, %v2885_v51  ;;  %v2886_v48 = vadd.f32 1.0, %v4580_v40  ;;  %v2914_v8 = vmul.f32 %v2898_v29, %v5854_v61 }
 0xfdf   : > { %v4584_v37 = vpop.eup %4583  ;;  %v2900_v62 = vmul.f32 0.5, %v2884_v59  ;;  %v2915_v3 = vmul.f32 %v2899_v58, %v5858_v38  ;;  %v2887_v16 = vadd.f32 1.0, %v4582_v34 }
 0xfe0   : > { %v4586_v2 = vpop.eup %4585  ;;  %v2902_v63 = vmul.f32 0.5, %v2886_v48  ;;  %v2917_v52 = vmul.f32 %v2901_v46, %v5860_v45  ;;  %v2889_v38 = vadd.f32 1.0, %v4584_v37 }
 0xfe1   : > { %v4588_v43 = vpop.eup %4587  ;;  %v2916_v0 = vmul.f32 %v2900_v62, %v5863_v60  ;;  %v2888_v17 = vadd.f32 1.0, %v4586_v2  ;;  %v2927_v30 = vpack.c.bf16 %v2915_v3, %v2911_v56  ;;  %v2903_v61 = vmul.f32 0.5, %v2887_v16 }
 0xfe2   : > { %v4590_v15 = vpop.eup %4589  ;;  %v2918_v18 = vmul.f32 %v2902_v63, %v5865_v1  ;;  %v2890_v9 = vadd.f32 1.0, %v4588_v43  ;;  %v2929_v60 = vpack.c.bf16 %v2917_v52, %v2913_v53  ;;  %v2905_v55 = vmul.f32 0.5, %v2889_v38 }
 0xfe3   : > { %v4592_v13 = vpop.eup %4591  ;;  %v2891_v12 = vadd.f32 1.0, %v4590_v15  ;;  %v2928_v19 = vpack.c.bf16 %v2916_v0, %v2912_v57  ;;  %v2904_v24 = vmul.f32 0.5, %v2888_v17  ;;  %v2919_v50 = vmul.f32 %v2903_v61, %v5870_v54 }
 0xfe4   : > { %v4594_v20 = vpop.eup %4593  ;;  %v2893_v21 = vadd.f32 1.0, %v4592_v13  ;;  %v2930_v45 = vpack.c.bf16 %v2918_v18, %v2914_v8  ;;  %v2906_v1 = vmul.f32 0.5, %v2890_v9  ;;  %v2921_v42 = vmul.f32 %v2905_v55, %v5872_v4  ;;  %v3894_v4 = vld [vmem:[%s6068_s14] ss:$0 sm:$0xff] }
 0xfe5   : > { %v4596_v23 = vpop.eup %4595  ;;  %v2907_v25 = vmul.f32 0.5, %v2891_v12  ;;  %v2892_v28 = vadd.f32 1.0, %v4594_v20  ;;  %3223 = vmatprep.mubr.bf16.mxu1 %v2928_v19  ;;  %v2920_v41 = vmul.f32 %v2904_v24, %v5875_v5 }
 0xfe6   : > { %v2909_v26 = vmul.f32 0.5, %v2893_v21  ;;  %v2894_v33 = vadd.f32 1.0, %v4596_v23  ;;  %3272 = vmatprep.mubr.bf16.mxu0 %v2930_v45  ;;  %3224 = vmatmul.mubr.bf16.vlgmr.msra.gmra.mxu1 %v2927_v30  ;;  %v2922_v51 = vmul.f32 %v2906_v1, %v5877_v7 }
 0xfe7   : > { %v2908_v35 = vmul.f32 0.5, %v2892_v28  ;;  %3273 = vmatmul.mubr.bf16.vlgmr.msra.gmra.mxu0 %v2929_v60  ;;  %v2923_v36 = vmul.f32 %v2907_v25, %v5882_v10 }
 0xfe8   : > { %v2910_v39 = vmul.f32 0.5, %v2894_v33  ;;  %v2925_v44 = vmul.f32 %v2909_v26, %v5884_v11 }
 0xfe9   : > { %v2924_v49 = vmul.f32 %v2908_v35, %v5887_v6  ;;  %v2931_v34 = vpack.c.bf16 %v2923_v36, %v2919_v50 }
 0xfea   : > { %v2926_v40 = vmul.f32 %v2910_v39, %v5889_v14  ;;  %v2933_v10 = vpack.c.bf16 %v2925_v44, %v2921_v42 }
 0xfeb   : > { %v2932_v58 = vpack.c.bf16 %v2924_v49, %v2920_v41 }
 0xfec   : > { %v2934_v59 = vpack.c.bf16 %v2926_v40, %v2922_v51 }
 0xfed   : > { %3231 = vmatprep.mubr.bf16.mxu1 %v2932_v58 }
 0xfee   : > { %3280 = vmatprep.mubr.bf16.mxu0 %v2934_v59  ;;  %3232 = vmatmul.mubr.bf16.gmra.mxu1 %v2931_v34 }
 0xfef   : > { %3281 = vmatmul.mubr.bf16.gmra.mxu0 %v2933_v10 }
0x10a6   : > { %v3980_v5 = vpop.f32.mrf.mxu1 }
0x10a7   : > { %v4008_v11 = vpop.f32.mrf.mxu0 }
0x10a8   : > { %v3981_v6 = vpop.f32.mrf.mxu1 }
0x10a9   : > { %v3982_v29 = vadd.f32 %v3981_v6, %v3980_v5  ;;  %v4009_v54 = vpop.f32.mrf.mxu0 }
0x10aa   : > { %v4010_v46 = vadd.f32 %v4009_v54, %v4008_v11  ;;  %v3983_v7 = vpop.f32.mrf.mxu1 }
0x10ab   : > { %v4011_v48 = vpop.f32.mrf.mxu0 }
0x10ac   : > { %v3275_v14 = vadd.f32 %v4010_v46, %v3982_v29  ;;  %v3984_v37 = vpop.f32.mrf.mxu1 }
0x10ad   : > { %v3985_v47 = vadd.f32 %v3984_v37, %v3983_v7  ;;  %v4012_v62 = vpop.f32.mrf.mxu0 }
0x10ae   : > { %v3289_v2 = vadd.f32 %v3275_v14, %v5726_v22  ;;  %v4013_v56 = vadd.f32 %v4012_v62, %v4011_v48  ;;  %v3986_v3 = vpop.f32.mrf.mxu1 }
0x10af   : > { %v4014_v63 = vpop.f32.mrf.mxu0 }
0x10b0   : > { %v3300_v43 = vadd.f32 %v3894_v4, %v3289_v2  ;;  %v3278_v57 = vadd.f32 %v4013_v56, %v3985_v47  ;;  %v3987_v52 = vpop.f32.mrf.mxu1 }
0x10b1   : > { %v3988_v0 = vadd.f32 %v3987_v52, %v3986_v3  ;;  %v4015_v17 = vpop.f32.mrf.mxu0 }
0x10b2   : > { %3304 = vst [vmem:[#allocation2 + $0x10] sm:$0xff] %v3300_v43  ;;  %v3290_v15 = vadd.f32 %v3278_v57, %v5731_v31  ;;  %v4016_v8 = vadd.f32 %v4015_v17, %v4014_v63  ;;  %v3989_v18 = vpop.f32.mrf.mxu1 }
0x10b3   : > { %v4017_v16 = vpop.f32.mrf.mxu0 }
0x10b4   : > { %v3301_v9 = vadd.f32 %v3894_v4, %v3290_v15  ;;  %v3283_v13 = vadd.f32 %v4016_v8, %v3988_v0  ;;  %v3990_v53 = vpop.f32.mrf.mxu1 }
0x10b5   : > { %v3991_v38 = vadd.f32 %v3990_v53, %v3989_v18  ;;  %v4018_v12 = vpop.f32.mrf.mxu0 }
0x10b6   : > { %3305 = vst [vmem:[#allocation2] sm:$0xff] %v3301_v9  ;;  %v3291_v22 = vadd.f32 %v3283_v13, %v5729_v27  ;;  %v4019_v19 = vadd.f32 %v4018_v12, %v4017_v16 }
0x10b8   : > { %v3302_v20 = vadd.f32 %v3894_v4, %v3291_v22  ;;  %v3286_v30 = vadd.f32 %v4019_v19, %v3991_v38 }
0x10ba   : > { %3306 = vst [vmem:[#allocation2 + $0x18] sm:$0xff] %v3302_v20  ;;  %v3292_v21 = vadd.f32 %v3286_v30, %v5735_v32  ;;  %3311 = sbr.rel (%p3895_p11) target bundleno = 4803 (0x12c3), region = 148 }
0x10bc   : > { %v3303_v45 = vadd.f32 %v3894_v4, %v3292_v21 }
0x10be   : > { %3307 = vst [vmem:[#allocation2 + $0x8] sm:$0xff] %v3303_v45 }
0x10bf   : > { %3314 = vadd.xlane.f32.xlu0 %v3300_v43  ;;  %3318 = vadd.xlane.f32.xlu1 %v3302_v20  ;;  %v4601_v41 = vld [vmem:[#allocation14 + $0x38] sm:$0xff]   ;;  %v4602_v44 = vld [vmem:[#allocation14 + $0x30] sm:$0xff]   ;;  %v4603_v49 = vld [vmem:[#allocation14 + $0x28] sm:$0xff]  }
0x10c0   : > { %4134 = vmatprep.subr.bf16.mxu0 %v4601_v41  ;;  %v4604_v50 = vld [vmem:[#allocation14 + $0x20] sm:$0xff]   ;;  %v4605_v51 = vld [vmem:[#allocation14 + $0x18] sm:$0xff]   ;;  %v4606_v40 = vld [vmem:[#allocation14 + $0x10] sm:$0xff]  }
0x10c1   : > { %4135 = vmatpush3.bf16.msra.mxu0 %v4601_v41  ;;  %v4607_v42 = vld [vmem:[#allocation14 + $0x8] sm:$0xff]   ;;  %v4608_v58 = vld [vmem:[#allocation14] sm:$0xff]   ;;  %v3897_v63 = vld [vmem:[#allocation13] ss:$0 sm:$0xff] }
0x10c2   : > { %4136 = vmatprep.subr.bf16.mxu0 %v4602_v44  ;;  %v3896_v47 = vld [vmem:[%s6069_s17] ss:$0 sm:$0xff] }
0x10c3   : > { %3316 = vadd.xlane.f32.xlu0 %v3301_v9  ;;  %3320 = vadd.xlane.f32.xlu1 %v3303_v45 }
0x10c5   : > { %4137 = vmatpush3.bf16.msra.mxu0 %v4602_v44 }
0x10c6   : > { %4138 = vmatprep.subr.bf16.mxu0 %v4603_v49 }
0x10c9   : > { %4139 = vmatpush3.bf16.msra.mxu0 %v4603_v49 }
0x10ca   : > { %4140 = vmatprep.subr.bf16.mxu0 %v4604_v50 }
0x10cd   : > { %4141 = vmatpush3.bf16.msra.mxu0 %v4604_v50 }
0x10ce   : > { %4142 = vmatprep.subr.bf16.mxu0 %v4605_v51 }
0x10d1   : > { %4143 = vmatpush3.bf16.msra.mxu0 %v4605_v51 }
0x10d2   : > { %4144 = vmatprep.subr.bf16.mxu0 %v4606_v40 }
0x10d5   : > { %4145 = vmatpush3.bf16.msra.mxu0 %v4606_v40 }
0x10d6   : > { %4146 = vmatprep.subr.bf16.mxu0 %v4607_v42 }
0x10d9   : > { %4147 = vmatpush3.bf16.msra.mxu0 %v4607_v42 }
0x10da   : > { %4148 = vmatprep.subr.bf16.mxu0 %v4608_v58 }
0x10dd   : > { %4149 = vmatpush3.bf16.msra.mxu0 %v4608_v58 }
0x1148   : > { %v3315_v31 = vpop.xlane.xlu0 %3314  ;;  %v3319_v23 = vpop.xlane.xlu1 %3318 }
0x1149   : > { %v3322_v60 = vmul.f32 0.0078125, %v3315_v31  ;;  %v3324_v24 = vmul.f32 0.0078125, %v3319_v23 }
0x114b   : > { %v3326_v27 = vsub.f32 %v3300_v43, %v3322_v60  ;;  %v5917_v25 = vsub.f32 %v3302_v20, %v3324_v24 }
0x114c   : > { %v3317_v28 = vpop.xlane.xlu0 %3316  ;;  %v3321_v61 = vpop.xlane.xlu1 %3320 }
0x114d   : > { %v3323_v1 = vmul.f32 0.0078125, %v3317_v28  ;;  %v3330_v32 = vmul.f32 %v3326_v27, %v3326_v27  ;;  %v3325_v26 = vmul.f32 0.0078125, %v3321_v61  ;;  %v3332_v35 = vmul.f32 %v5917_v25, %v5917_v25 }
0x114f   : > { %v3327_v33 = vsub.f32 %v3301_v9, %v3323_v1  ;;  %3334 = vadd.xlane.f32.xlu0 %v3330_v32  ;;  %v3329_v55 = vsub.f32 %v3303_v45, %v3325_v26 }
0x1151   : > { %v3331_v36 = vmul.f32 %v3327_v33, %v3327_v33  ;;  %v3333_v39 = vmul.f32 %v3329_v55, %v3329_v55 }
0x1153   : > { %3338 = vadd.xlane.f32.xlu0 %v3332_v35  ;;  %3336 = vadd.xlane.f32.xlu1 %v3331_v36 }
0x1157   : > { %3340 = vadd.xlane.f32.xlu1 %v3333_v39 }
0x11d8   : > { %v3335_v59 = vpop.xlane.xlu0 %3334 }
0x11d9   : > { %v3342_v34 = vmul.f32 0.0078125, %v3335_v59 }
0x11db   : > { %v3346_v10 = vadd.f32 1e-05, %v3342_v34 }
0x11dc   : > { %v3337_v5 = vpop.xlane.xlu1 %3336  ;;  %v3339_v11 = vpop.xlane.xlu0 %3338 }
0x11dd   : > { %4609 = vrsqrt.f32 %v3346_v10  ;;  %v3343_v6 = vmul.f32 0.0078125, %v3337_v5  ;;  %v3344_v29 = vmul.f32 0.0078125, %v3339_v11 }
0x11df   : > { %v3347_v54 = vadd.f32 1e-05, %v3343_v6  ;;  %v3348_v46 = vadd.f32 1e-05, %v3344_v29 }
0x11e0   : > { %v3341_v7 = vpop.xlane.xlu1 %3340 }
0x11e1   : > { %4611 = vrsqrt.f32 %v3347_v54  ;;  %v3345_v48 = vmul.f32 0.0078125, %v3341_v7 }
0x11e2   : > { %4613 = vrsqrt.f32 %v3348_v46 }
0x11e3   : > { %v3349_v14 = vadd.f32 1e-05, %v3345_v48 }
0x11e5   : > { %4615 = vrsqrt.f32 %v3349_v14 }
0x11ea   : > { %v4610_v37 = vpop.eup %4609 }
0x11eb   : > { %v3354_v4 = vmul.f32 %v4610_v37, %v3326_v27 }
0x11ed   : > { %v3364_v3 = vmul.f32 %v3896_v47, %v3354_v4 }
0x11ee   : > { %v4612_v62 = vpop.eup %4611 }
0x11ef   : > { %v4614_v2 = vpop.eup %4613  ;;  %v3355_v56 = vmul.f32 %v4612_v62, %v3327_v33  ;;  %v3374_v0 = vadd.f32 %v3897_v63, %v3364_v3 }
0x11f0   : > { %v3356_v43 = vmul.f32 %v4614_v2, %v5917_v25 }
0x11f1   : > { %v3365_v57 = vmul.f32 %v3896_v47, %v3355_v56 }
0x11f2   : > { %v4616_v52 = vpop.eup %4615  ;;  %v3366_v8 = vmul.f32 %v3896_v47, %v3356_v43 }
0x11f3   : > { %v3375_v17 = vadd.f32 %v3897_v63, %v3365_v57  ;;  %v3357_v15 = vmul.f32 %v4616_v52, %v3329_v55 }
0x11f4   : > { %v3376_v9 = vadd.f32 %v3897_v63, %v3366_v8 }
0x11f5   : > { %v3378_v18 = vpack.c.bf16 %v3375_v17, %v3374_v0  ;;  %v3367_v16 = vmul.f32 %v3896_v47, %v3357_v15 }
0x11f7   : > { %4150 = vmatprep.mubr.bf16.mxu0 %v3378_v18  ;;  %v3377_v13 = vadd.f32 %v3897_v63, %v3367_v16 }
0x11f9   : > { %v3379_v53 = vpack.c.bf16 %v3377_v13, %v3376_v9 }
0x11fb   : > { %4151 = vmatmul.mubr.bf16.vlgmr.msra.gmra.mxu0 %v3379_v53 }
0x12bb   : > { %v4152_v38 = vpop.f32.mrf.mxu0 }
0x12bc   : > { %3495 = vst [vmem:[%s6070_s25 + $0x10] sm:$0xff] %v4152_v38 }
0x12bd   : > { %v3478_v12 = vpop.f32.mrf.mxu0 }
0x12be   : > { %3493 = vst [vmem:[%s6070_s25] sm:$0xff] %v3478_v12 }
0x12bf   : > { %v4153_v22 = vpop.f32.mrf.mxu0 }
0x12c0   : > { %3496 = vst [vmem:[%s6070_s25 + $0x18] sm:$0xff] %v4153_v22 }
0x12c1   : > { %v3481_v19 = vpop.f32.mrf.mxu0 }
0x12c2   : > { %3494 = vst [vmem:[%s6070_s25 + $0x8] sm:$0xff] %v3481_v19 }
0x12c3 PF: > { %s6071_s24 = sld [smem:[#allocation23_spill]] }
0x12c4   : > { %s6072_s1 = sld [smem:[#allocation21_spill]] }
0x12c5   : > { %s6073_s22 = sld [smem:[#allocation22_spill]] }
0x12c6   : > { %s6074_s23 = sld [smem:[#allocation24_spill]] }
0x12c9   : > { %p30_p13 = scmp.ge.s32.totalorder %s6071_s24, 4  }
0x12cb   :  { %32 = sbr.rel (!%p30_p13) target bundleno = 23 (0x17), region = 232 }
0x12d0   :  { %3508 = vsyncpa [#allocation4], 1 }
0x12d1   :  { %3510 = vsyncpa [#allocation4 + $0x1], 1 }
0x12d2   :  { %3511 = vsyncpa [#allocation6], 1 }
0x12d3   :  { %3512 = vsyncpa [#allocation15], 1 }

</bundles_post_ra>
